<compile_context>
chip_gen: v5e
topology: v5e:2x2
jax: 0.10.0
libtpu: 0.0.40
codegen_flags: <defaults>
</compile_context>

<pallas_src>
import functools

import jax
import jax.numpy as jnp
from jax import lax
from jax.experimental import pallas as pl
from jax.experimental.pallas import tpu as pltpu


def _round_up(x, m):
    return (x + m - 1) // m * m


# --------------------------------------------------------------------------
# Pallas kernel: Y = act(X @ W + b), bf16 operands, f32 accumulation.
# --------------------------------------------------------------------------
def _matmul_bias_act_kernel(x_ref, w_ref, b_ref, o_ref, *, relu):
    acc = jnp.dot(x_ref[...], w_ref[...], preferred_element_type=jnp.float32)
    acc = acc + b_ref[...]          # b_ref is (1, N) f32, broadcasts over rows
    if relu:
        acc = jnp.maximum(acc, 0.0)
    o_ref[...] = acc.astype(o_ref.dtype)


def matmul_bias_act(x, w, b, *, relu, out_dtype=jnp.float32, tile_m=512):
    """x: (M, K), w: (K, N), b: (N,)  ->  (M, N) in out_dtype."""
    M, K = x.shape
    K2, N = w.shape
    assert K == K2

    # Pick an M tile: at most tile_m, at least sublane-aligned (multiple of 8),
    # then pad M up to a multiple of the tile so every grid step is full.
    TM = min(tile_m, _round_up(M, 8))
    M_pad = _round_up(M, TM)
    if M_pad != M:
        x = jnp.pad(x, ((0, M_pad - M), (0, 0)))

    x_bf = x.astype(jnp.bfloat16)
    w_bf = w.astype(jnp.bfloat16)
    b_f32 = b.reshape(1, N).astype(jnp.float32)

    out = pl.pallas_call(
        functools.partial(_matmul_bias_act_kernel, relu=relu),
        out_shape=jax.ShapeDtypeStruct((M_pad, N), out_dtype),
        grid=(M_pad // TM,),
        in_specs=[
            pl.BlockSpec((TM, K), lambda i: (i, 0)),   # pipelined patch tiles
            pl.BlockSpec((K, N), lambda i: (0, 0)),    # weights resident
            pl.BlockSpec((1, N), lambda i: (0, 0)),    # bias resident
        ],
        out_specs=pl.BlockSpec((TM, N), lambda i: (i, 0)),
        compiler_params=pltpu.CompilerParams(
            dimension_semantics=("parallel",),         # megacore on v7x
            vmem_limit_bytes=32 * 1024 * 1024,
        ),
    )(x_bf, w_bf, b_f32)

    if M_pad != M:
        out = out[:M]
    return out


# --------------------------------------------------------------------------
# Conv2d(kernel=4, stride=2, padding=0) + ReLU  via  im2col + Pallas matmul
# --------------------------------------------------------------------------
def _im2col(x, kh, kw, stride):
    """x: (B, H, W, C) NHWC -> patches (B*Ho*Wo, kh*kw*C), plus (Ho, Wo)."""
    B, H, W, C = x.shape
    Ho = (H - kh) // stride + 1
    Wo = (W - kw) // stride + 1
    cols = []
    for i in range(kh):
        for j in range(kw):
            cols.append(x[:, i:i + stride * Ho:stride, j:j + stride * Wo:stride, :])
    p = jnp.concatenate(cols, axis=-1)              # (B, Ho, Wo, kh*kw*C)
    return p.reshape(B * Ho * Wo, kh * kw * C), Ho, Wo


def conv2d_relu(x, w_hwio, b, stride):
    """x: (B, H, W, Cin) NHWC bf16;  w_hwio: (kh, kw, Cin, Cout);  b: (Cout,)."""
    kh, kw, cin, cout = w_hwio.shape
    B = x.shape[0]
    patches, Ho, Wo = _im2col(x.astype(jnp.bfloat16), kh, kw, stride)
    w_mat = w_hwio.reshape(kh * kw * cin, cout)
    y = matmul_bias_act(patches, w_mat, b, relu=True, out_dtype=jnp.bfloat16)
    return y.reshape(B, Ho, Wo, cout)


# --------------------------------------------------------------------------
# Parameter init (deterministic, PyTorch-like uniform(-1/sqrt(fan_in), ...))
# --------------------------------------------------------------------------
def _uniform(key, shape, fan_in):
    bound = 1.0 / jnp.sqrt(jnp.float32(fan_in))
    return jax.random.uniform(key, shape, jnp.float32, -bound, bound)


def init_params(key, img_channels, latent_size):
    ks = jax.random.split(key, 12)
    conv_dims = [(img_channels, 32), (32, 64), (64, 128), (128, 256)]
    params = {}
    for idx, (cin, cout) in enumerate(conv_dims, start=1):
        fan_in = cin * 4 * 4
        params[f"w{idx}"] = _uniform(ks[2 * (idx - 1)], (4, 4, cin, cout), fan_in)
        params[f"b{idx}"] = _uniform(ks[2 * (idx - 1) + 1], (cout,), fan_in)
    fc_in = 2 * 2 * 256
    params["w_mu"] = _uniform(ks[8], (fc_in, latent_size), fc_in)
    params["b_mu"] = _uniform(ks[9], (latent_size,), fc_in)
    params["w_ls"] = _uniform(ks[10], (fc_in, latent_size), fc_in)
    params["b_ls"] = _uniform(ks[11], (latent_size,), fc_in)
    return params


# --------------------------------------------------------------------------
# Encoder forward (Pallas version)
# --------------------------------------------------------------------------
def encoder_forward(params, x_nchw):
    # NCHW -> NHWC, bf16 activations through the conv pipeline.
    x = jnp.transpose(x_nchw, (0, 2, 3, 1)).astype(jnp.bfloat16)
    x = conv2d_relu(x, params["w1"], params["b1"], 2)   # (B, 31, 31, 32)
    x = conv2d_relu(x, params["w2"], params["b2"], 2)   # (B, 14, 14, 64)
    x = conv2d_relu(x, params["w3"], params["b3"], 2)   # (B, 6, 6, 128)
    x = conv2d_relu(x, params["w4"], params["b4"], 2)   # (B, 2, 2, 256)
    B, Ho, Wo, C = x.shape
    # Flatten NHWC directly (no runtime activation transpose); the PyTorch
    # CHW flatten order is absorbed into a one-time row permutation of the
    # tiny head weight matrix below.
    x_flat = x.reshape(B, Ho * Wo * C)                   # (B, 1024)

    latent = params["w_mu"].shape[1]
    w_heads = jnp.concatenate([params["w_mu"], params["w_ls"]], axis=1)
    # rows: CHW order -> HWC order
    w_heads = (w_heads.reshape(C, Ho, Wo, 2 * latent)
               .transpose(1, 2, 0, 3)
               .reshape(Ho * Wo * C, 2 * latent))
    b_heads = jnp.concatenate([params["b_mu"], params["b_ls"]], axis=0)

    # Pad the fused head output to a 128-lane multiple -> unmasked stores in
    # the kernel; mu/logsigma are sliced out afterwards anyway.
    n_heads = 2 * latent
    n_pad = _round_up(n_heads, 128)
    if n_pad != n_heads:
        w_heads = jnp.pad(w_heads, ((0, 0), (0, n_pad - n_heads)))
        b_heads = jnp.pad(b_heads, ((0, n_pad - n_heads),))

    heads = matmul_bias_act(x_flat, w_heads, b_heads, relu=False,
                            out_dtype=jnp.float32)
    mu = heads[:, :latent]
    logsigma = heads[:, latent:2 * latent]
    return mu, logsigma


# --------------------------------------------------------------------------
# Pure-JAX f32 reference (correctness check against XLA conv)
# --------------------------------------------------------------------------
def encoder_reference(params, x_nchw):
    x = x_nchw.astype(jnp.float32)
    dn = ("NCHW", "OIHW", "NCHW")
    for idx in range(1, 5):
        w_oihw = jnp.transpose(params[f"w{idx}"], (3, 2, 0, 1))
        x = lax.conv_general_dilated(x, w_oihw, (2, 2), "VALID",
                                     dimension_numbers=dn)
        x = jax.nn.relu(x + params[f"b{idx}"][None, :, None, None])
    B = x.shape[0]
    x_flat = x.reshape(B, -1)
    mu = x_flat @ params["w_mu"] + params["b_mu"]
    logsigma = x_flat @ params["w_ls"] + params["b_ls"]
    return mu, logsigma


if __name__ == "__main__":
    img_channels, latent_size, batch = 3, 32, 2
    key = jax.random.PRNGKey(0)
    k_param, k_x = jax.random.split(key)
    params = init_params(k_param, img_channels, latent_size)
    # Input must be 64x64 so the conv stack yields 2x2x256 = 1024 features.
    x = jax.random.normal(k_x, (batch, img_channels, 64, 64), jnp.float32)

    mu, logsigma = jax.jit(encoder_forward)(params, x)
    jax.block_until_ready((mu, logsigma))

    mu_ref, ls_ref = jax.jit(encoder_reference)(params, x)
    jax.block_until_ready((mu_ref, ls_ref))

    assert mu.shape == (batch, latent_size) and logsigma.shape == (batch, latent_size)
    # bf16 operands with f32 accumulation: slightly looser tolerance than pure f32.
    assert jnp.allclose(mu, mu_ref, atol=2e-2, rtol=2e-2)
    assert jnp.allclose(logsigma, ls_ref, atol=2e-2, rtol=2e-2)
    print("KERNEL_OK")
</pallas_src>

<mosaic_0001>
module attributes {stable_mosaic.version = 11 : i64} {
  func.func @_matmul_bias_act_kernel(%arg0: i32, %arg1: memref<512x48xbf16, #tpu.memory_space<vmem>>, %arg2: memref<48x32xbf16, #tpu.memory_space<vmem>>, %arg3: memref<1x32xf32, #tpu.memory_space<vmem>>, %arg4: memref<512x32xbf16, #tpu.memory_space<vmem>>) attributes {dimension_semantics = [#tpu.dimension_semantics<parallel>], iteration_bounds = array<i64: 4>, scalar_prefetch = 0 : i64, scratch_operands = 0 : i64, tpu.core_type = #tpu.core_type<tc>, window_params = [{transform_indices = @transform_0, window_bounds = array<i64: 512, 48>}, {pipeline_mode = #tpu.pipeline_mode<synchronous>, transform_indices = @transform_1, window_bounds = array<i64: 48, 32>}, {pipeline_mode = #tpu.pipeline_mode<synchronous>, transform_indices = @transform_2, window_bounds = array<i64: 1, 32>}, {transform_indices = @transform_3, window_bounds = array<i64: 512, 32>}]} {
    %c0 = arith.constant 0 : index
    %c0_0 = arith.constant 0 : index
    %0 = vector.load %arg1[%c0, %c0_0] : memref<512x48xbf16, #tpu.memory_space<vmem>>, vector<512x48xbf16>
    %c0_1 = arith.constant 0 : index
    %c0_2 = arith.constant 0 : index
    %1 = vector.load %arg2[%c0_1, %c0_2] : memref<48x32xbf16, #tpu.memory_space<vmem>>, vector<48x32xbf16>
    %cst = arith.constant dense<0.000000e+00> : vector<512x32xf32>
    %2 = tpu.matmul %0, %1, %cst {dimension_numbers = #tpu.dot_dimension_numbers<[1], [0], [0], [1], [0, 0, 1, 1], [], []>} : vector<512x48xbf16>, vector<48x32xbf16>, vector<512x32xf32> -> vector<512x32xf32>
    %c0_3 = arith.constant 0 : index
    %c0_4 = arith.constant 0 : index
    %3 = vector.load %arg3[%c0_3, %c0_4] : memref<1x32xf32, #tpu.memory_space<vmem>>, vector<1x32xf32>
    %4 = vector.broadcast %3 : vector<1x32xf32> to vector<512x32xf32>
    %5 = arith.addf %2, %4 : vector<512x32xf32>
    %cst_5 = arith.constant 0.000000e+00 : f32
    %6 = vector.broadcast %cst_5 : f32 to vector<512x32xf32>
    %7 = arith.maximumf %5, %6 : vector<512x32xf32>
    %8 = arith.truncf %7 : vector<512x32xf32> to vector<512x32xbf16>
    %c0_6 = arith.constant 0 : index
    %c0_7 = arith.constant 0 : index
    %9 = vector.load %arg4[%c0_6, %c0_7] : memref<512x32xbf16, #tpu.memory_space<vmem>>, vector<512x32xbf16>
    tpu.vector_store %arg4[%c0_6, %c0_7], %8 {strides = array<i32>} : memref<512x32xbf16, #tpu.memory_space<vmem>>, vector<512x32xbf16>,
    return
  }
  func.func @transform_0(%arg0: i32) -> (i32, i32) {
    %c0_i32 = arith.constant 0 : i32
    %c0_i32_0 = arith.constant 0 : i32
    return %arg0, %c0_i32 : i32, i32
  }
  func.func @transform_1(%arg0: i32) -> (i32, i32) {
    %c0_i32 = arith.constant 0 : i32
    %c0_i32_0 = arith.constant 0 : i32
    %c0_i32_1 = arith.constant 0 : i32
    return %c0_i32, %c0_i32_0 : i32, i32
  }
  func.func @transform_2(%arg0: i32) -> (i32, i32) {
    %c0_i32 = arith.constant 0 : i32
    %c0_i32_0 = arith.constant 0 : i32
    %c0_i32_1 = arith.constant 0 : i32
    return %c0_i32, %c0_i32_0 : i32, i32
  }
  func.func @transform_3(%arg0: i32) -> (i32, i32) {
    %c0_i32 = arith.constant 0 : i32
    %c0_i32_0 = arith.constant 0 : i32
    return %arg0, %c0_i32 : i32, i32
  }
}

module attributes {stable_mosaic.version = 11 : i64} {
  func.func @_matmul_bias_act_kernel(%arg0: i32, %arg1: memref<392x512xbf16, #tpu.memory_space<vmem>>, %arg2: memref<512x64xbf16, #tpu.memory_space<vmem>>, %arg3: memref<1x64xf32, #tpu.memory_space<vmem>>, %arg4: memref<392x64xbf16, #tpu.memory_space<vmem>>) attributes {dimension_semantics = [#tpu.dimension_semantics<parallel>], iteration_bounds = array<i64: 1>, scalar_prefetch = 0 : i64, scratch_operands = 0 : i64, tpu.core_type = #tpu.core_type<tc>, window_params = [{transform_indices = @transform_0, window_bounds = array<i64: 392, 512>}, {pipeline_mode = #tpu.pipeline_mode<synchronous>, transform_indices = @transform_1, window_bounds = array<i64: 512, 64>}, {pipeline_mode = #tpu.pipeline_mode<synchronous>, transform_indices = @transform_2, window_bounds = array<i64: 1, 64>}, {transform_indices = @transform_3, window_bounds = array<i64: 392, 64>}]} {
    %c0 = arith.constant 0 : index
    %c0_0 = arith.constant 0 : index
    %0 = vector.load %arg1[%c0, %c0_0] : memref<392x512xbf16, #tpu.memory_space<vmem>>, vector<392x512xbf16>
    %c0_1 = arith.constant 0 : index
    %c0_2 = arith.constant 0 : index
    %1 = vector.load %arg2[%c0_1, %c0_2] : memref<512x64xbf16, #tpu.memory_space<vmem>>, vector<512x64xbf16>
    %cst = arith.constant dense<0.000000e+00> : vector<392x64xf32>
    %2 = tpu.matmul %0, %1, %cst {dimension_numbers = #tpu.dot_dimension_numbers<[1], [0], [0], [1], [0, 0, 1, 1], [], []>} : vector<392x512xbf16>, vector<512x64xbf16>, vector<392x64xf32> -> vector<392x64xf32>
    %c0_3 = arith.constant 0 : index
    %c0_4 = arith.constant 0 : index
    %3 = vector.load %arg3[%c0_3, %c0_4] : memref<1x64xf32, #tpu.memory_space<vmem>>, vector<1x64xf32>
    %4 = vector.broadcast %3 : vector<1x64xf32> to vector<392x64xf32>
    %5 = arith.addf %2, %4 : vector<392x64xf32>
    %cst_5 = arith.constant 0.000000e+00 : f32
    %6 = vector.broadcast %cst_5 : f32 to vector<392x64xf32>
    %7 = arith.maximumf %5, %6 : vector<392x64xf32>
    %8 = arith.truncf %7 : vector<392x64xf32> to vector<392x64xbf16>
    %c0_6 = arith.constant 0 : index
    %c0_7 = arith.constant 0 : index
    %9 = vector.load %arg4[%c0_6, %c0_7] : memref<392x64xbf16, #tpu.memory_space<vmem>>, vector<392x64xbf16>
    tpu.vector_store %arg4[%c0_6, %c0_7], %8 {strides = array<i32>} : memref<392x64xbf16, #tpu.memory_space<vmem>>, vector<392x64xbf16>,
    return
  }
  func.func @transform_0(%arg0: i32) -> (i32, i32) {
    %c0_i32 = arith.constant 0 : i32
    %c0_i32_0 = arith.constant 0 : i32
    return %arg0, %c0_i32 : i32, i32
  }
  func.func @transform_1(%arg0: i32) -> (i32, i32) {
    %c0_i32 = arith.constant 0 : i32
    %c0_i32_0 = arith.constant 0 : i32
    %c0_i32_1 = arith.constant 0 : i32
    return %c0_i32, %c0_i32_0 : i32, i32
  }
  func.func @transform_2(%arg0: i32) -> (i32, i32) {
    %c0_i32 = arith.constant 0 : i32
    %c0_i32_0 = arith.constant 0 : i32
    %c0_i32_1 = arith.constant 0 : i32
    return %c0_i32, %c0_i32_0 : i32, i32
  }
  func.func @transform_3(%arg0: i32) -> (i32, i32) {
    %c0_i32 = arith.constant 0 : i32
    %c0_i32_0 = arith.constant 0 : i32
    return %arg0, %c0_i32 : i32, i32
  }
}

module attributes {stable_mosaic.version = 11 : i64} {
  func.func @_matmul_bias_act_kernel(%arg0: i32, %arg1: memref<72x1024xbf16, #tpu.memory_space<vmem>>, %arg2: memref<1024x128xbf16, #tpu.memory_space<vmem>>, %arg3: memref<1x128xf32, #tpu.memory_space<vmem>>, %arg4: memref<72x128xbf16, #tpu.memory_space<vmem>>) attributes {dimension_semantics = [#tpu.dimension_semantics<parallel>], iteration_bounds = array<i64: 1>, scalar_prefetch = 0 : i64, scratch_operands = 0 : i64, tpu.core_type = #tpu.core_type<tc>, window_params = [{transform_indices = @transform_0, window_bounds = array<i64: 72, 1024>}, {pipeline_mode = #tpu.pipeline_mode<synchronous>, transform_indices = @transform_1, window_bounds = array<i64: 1024, 128>}, {pipeline_mode = #tpu.pipeline_mode<synchronous>, transform_indices = @transform_2, window_bounds = array<i64: 1, 128>}, {transform_indices = @transform_3, window_bounds = array<i64: 72, 128>}]} {
    %c0 = arith.constant 0 : index
    %c0_0 = arith.constant 0 : index
    %0 = vector.load %arg1[%c0, %c0_0] : memref<72x1024xbf16, #tpu.memory_space<vmem>>, vector<72x1024xbf16>
    %c0_1 = arith.constant 0 : index
    %c0_2 = arith.constant 0 : index
    %1 = vector.load %arg2[%c0_1, %c0_2] : memref<1024x128xbf16, #tpu.memory_space<vmem>>, vector<1024x128xbf16>
    %cst = arith.constant dense<0.000000e+00> : vector<72x128xf32>
    %2 = tpu.matmul %0, %1, %cst {dimension_numbers = #tpu.dot_dimension_numbers<[1], [0], [0], [1], [0, 0, 1, 1], [], []>} : vector<72x1024xbf16>, vector<1024x128xbf16>, vector<72x128xf32> -> vector<72x128xf32>
    %c0_3 = arith.constant 0 : index
    %c0_4 = arith.constant 0 : index
    %3 = vector.load %arg3[%c0_3, %c0_4] : memref<1x128xf32, #tpu.memory_space<vmem>>, vector<1x128xf32>
    %4 = vector.broadcast %3 : vector<1x128xf32> to vector<72x128xf32>
    %5 = arith.addf %2, %4 : vector<72x128xf32>
    %cst_5 = arith.constant 0.000000e+00 : f32
    %6 = vector.broadcast %cst_5 : f32 to vector<72x128xf32>
    %7 = arith.maximumf %5, %6 : vector<72x128xf32>
    %8 = arith.truncf %7 : vector<72x128xf32> to vector<72x128xbf16>
    %c0_6 = arith.constant 0 : index
    %c0_7 = arith.constant 0 : index
    %9 = vector.load %arg4[%c0_6, %c0_7] : memref<72x128xbf16, #tpu.memory_space<vmem>>, vector<72x128xbf16>
    tpu.vector_store %arg4[%c0_6, %c0_7], %8 {strides = array<i32>} : memref<72x128xbf16, #tpu.memory_space<vmem>>, vector<72x128xbf16>,
    return
  }
  func.func @transform_0(%arg0: i32) -> (i32, i32) {
    %c0_i32 = arith.constant 0 : i32
    %c0_i32_0 = arith.constant 0 : i32
    return %arg0, %c0_i32 : i32, i32
  }
  func.func @transform_1(%arg0: i32) -> (i32, i32) {
    %c0_i32 = arith.constant 0 : i32
    %c0_i32_0 = arith.constant 0 : i32
    %c0_i32_1 = arith.constant 0 : i32
    return %c0_i32, %c0_i32_0 : i32, i32
  }
  func.func @transform_2(%arg0: i32) -> (i32, i32) {
    %c0_i32 = arith.constant 0 : i32
    %c0_i32_0 = arith.constant 0 : i32
    %c0_i32_1 = arith.constant 0 : i32
    return %c0_i32, %c0_i32_0 : i32, i32
  }
  func.func @transform_3(%arg0: i32) -> (i32, i32) {
    %c0_i32 = arith.constant 0 : i32
    %c0_i32_0 = arith.constant 0 : i32
    return %arg0, %c0_i32 : i32, i32
  }
}

module attributes {stable_mosaic.version = 11 : i64} {
  func.func @_matmul_bias_act_kernel(%arg0: i32, %arg1: memref<8x2048xbf16, #tpu.memory_space<vmem>>, %arg2: memref<2048x256xbf16, #tpu.memory_space<vmem>>, %arg3: memref<1x256xf32, #tpu.memory_space<vmem>>, %arg4: memref<8x256xbf16, #tpu.memory_space<vmem>>) attributes {dimension_semantics = [#tpu.dimension_semantics<parallel>], iteration_bounds = array<i64: 1>, scalar_prefetch = 0 : i64, scratch_operands = 0 : i64, tpu.core_type = #tpu.core_type<tc>, window_params = [{transform_indices = @transform_0, window_bounds = array<i64: 8, 2048>}, {pipeline_mode = #tpu.pipeline_mode<synchronous>, transform_indices = @transform_1, window_bounds = array<i64: 2048, 256>}, {pipeline_mode = #tpu.pipeline_mode<synchronous>, transform_indices = @transform_2, window_bounds = array<i64: 1, 256>}, {transform_indices = @transform_3, window_bounds = array<i64: 8, 256>}]} {
    %c0 = arith.constant 0 : index
    %c0_0 = arith.constant 0 : index
    %0 = vector.load %arg1[%c0, %c0_0] : memref<8x2048xbf16, #tpu.memory_space<vmem>>, vector<8x2048xbf16>
    %c0_1 = arith.constant 0 : index
    %c0_2 = arith.constant 0 : index
    %1 = vector.load %arg2[%c0_1, %c0_2] : memref<2048x256xbf16, #tpu.memory_space<vmem>>, vector<2048x256xbf16>
    %cst = arith.constant dense<0.000000e+00> : vector<8x256xf32>
    %2 = tpu.matmul %0, %1, %cst {dimension_numbers = #tpu.dot_dimension_numbers<[1], [0], [0], [1], [0, 0, 1, 1], [], []>} : vector<8x2048xbf16>, vector<2048x256xbf16>, vector<8x256xf32> -> vector<8x256xf32>
    %c0_3 = arith.constant 0 : index
    %c0_4 = arith.constant 0 : index
    %3 = vector.load %arg3[%c0_3, %c0_4] : memref<1x256xf32, #tpu.memory_space<vmem>>, vector<1x256xf32>
    %4 = vector.broadcast %3 : vector<1x256xf32> to vector<8x256xf32>
    %5 = arith.addf %2, %4 : vector<8x256xf32>
    %cst_5 = arith.constant 0.000000e+00 : f32
    %6 = vector.broadcast %cst_5 : f32 to vector<8x256xf32>
    %7 = arith.maximumf %5, %6 : vector<8x256xf32>
    %8 = arith.truncf %7 : vector<8x256xf32> to vector<8x256xbf16>
    %c0_6 = arith.constant 0 : index
    %c0_7 = arith.constant 0 : index
    %9 = vector.load %arg4[%c0_6, %c0_7] : memref<8x256xbf16, #tpu.memory_space<vmem>>, vector<8x256xbf16>
    tpu.vector_store %arg4[%c0_6, %c0_7], %8 {strides = array<i32>} : memref<8x256xbf16, #tpu.memory_space<vmem>>, vector<8x256xbf16>,
    return
  }
  func.func @transform_0(%arg0: i32) -> (i32, i32) {
    %c0_i32 = arith.constant 0 : i32
    %c0_i32_0 = arith.constant 0 : i32
    return %arg0, %c0_i32 : i32, i32
  }
  func.func @transform_1(%arg0: i32) -> (i32, i32) {
    %c0_i32 = arith.constant 0 : i32
    %c0_i32_0 = arith.constant 0 : i32
    %c0_i32_1 = arith.constant 0 : i32
    return %c0_i32, %c0_i32_0 : i32, i32
  }
  func.func @transform_2(%arg0: i32) -> (i32, i32) {
    %c0_i32 = arith.constant 0 : i32
    %c0_i32_0 = arith.constant 0 : i32
    %c0_i32_1 = arith.constant 0 : i32
    return %c0_i32, %c0_i32_0 : i32, i32
  }
  func.func @transform_3(%arg0: i32) -> (i32, i32) {
    %c0_i32 = arith.constant 0 : i32
    %c0_i32_0 = arith.constant 0 : i32
    return %arg0, %c0_i32 : i32, i32
  }
}

module attributes {stable_mosaic.version = 11 : i64} {
  func.func @_matmul_bias_act_kernel(%arg0: i32, %arg1: memref<8x1024xbf16, #tpu.memory_space<vmem>>, %arg2: memref<1024x128xbf16, #tpu.memory_space<vmem>>, %arg3: memref<1x128xf32, #tpu.memory_space<vmem>>, %arg4: memref<8x128xf32, #tpu.memory_space<vmem>>) attributes {dimension_semantics = [#tpu.dimension_semantics<parallel>], iteration_bounds = array<i64: 1>, scalar_prefetch = 0 : i64, scratch_operands = 0 : i64, tpu.core_type = #tpu.core_type<tc>, window_params = [{transform_indices = @transform_0, window_bounds = array<i64: 8, 1024>}, {pipeline_mode = #tpu.pipeline_mode<synchronous>, transform_indices = @transform_1, window_bounds = array<i64: 1024, 128>}, {pipeline_mode = #tpu.pipeline_mode<synchronous>, transform_indices = @transform_2, window_bounds = array<i64: 1, 128>}, {transform_indices = @transform_3, window_bounds = array<i64: 8, 128>}]} {
    %c0 = arith.constant 0 : index
    %c0_0 = arith.constant 0 : index
    %0 = vector.load %arg1[%c0, %c0_0] : memref<8x1024xbf16, #tpu.memory_space<vmem>>, vector<8x1024xbf16>
    %c0_1 = arith.constant 0 : index
    %c0_2 = arith.constant 0 : index
    %1 = vector.load %arg2[%c0_1, %c0_2] : memref<1024x128xbf16, #tpu.memory_space<vmem>>, vector<1024x128xbf16>
    %cst = arith.constant dense<0.000000e+00> : vector<8x128xf32>
    %2 = tpu.matmul %0, %1, %cst {dimension_numbers = #tpu.dot_dimension_numbers<[1], [0], [0], [1], [0, 0, 1, 1], [], []>} : vector<8x1024xbf16>, vector<1024x128xbf16>, vector<8x128xf32> -> vector<8x128xf32>
    %c0_3 = arith.constant 0 : index
    %c0_4 = arith.constant 0 : index
    %3 = vector.load %arg3[%c0_3, %c0_4] : memref<1x128xf32, #tpu.memory_space<vmem>>, vector<1x128xf32>
    %4 = vector.broadcast %3 : vector<1x128xf32> to vector<8x128xf32>
    %5 = arith.addf %2, %4 : vector<8x128xf32>
    %c0_5 = arith.constant 0 : index
    %c0_6 = arith.constant 0 : index
    %6 = vector.load %arg4[%c0_5, %c0_6] : memref<8x128xf32, #tpu.memory_space<vmem>>, vector<8x128xf32>
    tpu.vector_store %arg4[%c0_5, %c0_6], %5 {strides = array<i32>} : memref<8x128xf32, #tpu.memory_space<vmem>>, vector<8x128xf32>,
    return
  }
  func.func @transform_0(%arg0: i32) -> (i32, i32) {
    %c0_i32 = arith.constant 0 : i32
    %c0_i32_0 = arith.constant 0 : i32
    return %arg0, %c0_i32 : i32, i32
  }
  func.func @transform_1(%arg0: i32) -> (i32, i32) {
    %c0_i32 = arith.constant 0 : i32
    %c0_i32_0 = arith.constant 0 : i32
    %c0_i32_1 = arith.constant 0 : i32
    return %c0_i32, %c0_i32_0 : i32, i32
  }
  func.func @transform_2(%arg0: i32) -> (i32, i32) {
    %c0_i32 = arith.constant 0 : i32
    %c0_i32_0 = arith.constant 0 : i32
    %c0_i32_1 = arith.constant 0 : i32
    return %c0_i32, %c0_i32_0 : i32, i32
  }
  func.func @transform_3(%arg0: i32) -> (i32, i32) {
    %c0_i32 = arith.constant 0 : i32
    %c0_i32_0 = arith.constant 0 : i32
    return %arg0, %c0_i32 : i32, i32
  }
}

</mosaic_0001>

<bundles_post_ra>
// kernel: encoder_forward.5
= control target key start
LH: loop header
LB: loop body
LE: loop exit
PB: predicated region body
PF: predicated region fallthrough
CT: control target
= control target key end

     0   :  { %s1206_s12 = smov 0   ;;  %s1504_s0 = inlined_call_operand.vmem [shape: bf16[2048,48], index: 0, kind: input, shape index: {}]   ;;  %s1505_s1 = inlined_call_operand.vmem [shape: bf16[48,32], index: 1, kind: input, shape index: {}]   ;;  %s1506_s2 = inlined_call_operand.vmem [shape: f32[1,32], index: 2, kind: input, shape index: {}]   ;;  %s1507_s3 = inlined_call_operand.vmem [shape: bf16[2048,32], index: 3, kind: output, shape index: {}]  }
   0x1 LB: > { %s942_s13 = sadd.s32 4294967295, %s1184_s12   ;;  %p946_p0 = scmp.ge.s32.totalorder %s1184_s12, 1  ;;  %s1184_s12 = sphi %s1206_s12, %s13_s12  }
   0x2   : > { %p138_p1 = scmp.lt.s32.totalorder %s1184_s12, 5 }
   0x4   : > { %p139_p2 = pnand %p946_p0, %p138_p1 }
   0x5   : > { %s947_s16 = sshll.u32 (!%p139_p2), %s942_s13, 6 }
   0x6   : > { %142 = sbr.rel (%p139_p2) target bundleno = 284 (0x11c), region = 32  ;;  %p163_p3 = scmp.lt.s32.totalorder (!%p139_p2), %s947_s16, 255 }
   0xb   : > { %v1159_v0 = vld [vmem:[%s1505_s1 + $0x10] sm:$0xff]  ;;  %v1158_v1 = vld [vmem:[%s1505_s1 + $0x8] sm:$0xff]  ;;  %s1509_s16 = smov (!%p163_p3, %s947_s16), 255  ;;  %v1157_v2 = vld [vmem:[%s1505_s1] sm:$0xff]  ;;  %vm427_vm0 = vcmask 392192   ;;  %vm821_vm1 = vcmask 257024  }
   0xc   : > { %529 = vmatpush.bf16.msra.mxu0 %v1159_v0  ;;  %1160 = vmatpush.bf16.msra.mxu1 %v1159_v0  ;;  %s948_s19 = sshll.u32 %s1509_s16, 2  ;;  %v1300_v35 = vld [vmem:[%s1506_s2] ss:$0 sm:$0xff] }
   0xd   : > { %1161 = vmatpush.bf16.msra.mxu2 %v1159_v0  ;;  %1162 = vmatpush.bf16.msra.mxu3 %v1159_v0  ;;  %s1231_s24 = scalar_lea.vmem %s1504_s0, %s948_s19  ;;  %s1309_s29 = scalar_lea.vmem %s1507_s3, %s948_s19 }
   0xe   : > { %v1125_v3 = vld [vmem:[%s1231_s24] sm:$0xff]  ;;  %v1126_v7 = vld [vmem:[%s1231_s24 + $0x8] sm:$0xff]  ;;  %v1127_v11 = vld [vmem:[%s1231_s24 + $0x10] sm:$0xff] }
   0xf   : > { %v1133_v4 = vld [vmem:[%s1231_s24 + $0x40] sm:$0xff]  ;;  %v1134_v8 = vld [vmem:[%s1231_s24 + $0x48] sm:$0xff]  ;;  %v1135_v12 = vld [vmem:[%s1231_s24 + $0x50] sm:$0xff] }
  0x10   : > { %530 = vmatpush.bf16.msra.mxu0 %v1158_v1  ;;  %1163 = vmatpush.bf16.msra.mxu1 %v1158_v1  ;;  %v1141_v5 = vld [vmem:[%s1231_s24 + $0x80] sm:$0xff]  ;;  %v1142_v9 = vld [vmem:[%s1231_s24 + $0x88] sm:$0xff]  ;;  %v1143_v13 = vld [vmem:[%s1231_s24 + $0x90] sm:$0xff] }
  0x11   : > { %1164 = vmatpush.bf16.msra.mxu2 %v1158_v1  ;;  %1165 = vmatpush.bf16.msra.mxu3 %v1158_v1  ;;  %v1149_v6 = vld [vmem:[%s1231_s24 + $0xc0] sm:$0xff]  ;;  %v1150_v10 = vld [vmem:[%s1231_s24 + $0xc8] sm:$0xff]  ;;  %v1151_v14 = vld [vmem:[%s1231_s24 + $0xd0] sm:$0xff] }
  0x12   : > { %v1128_v15 = vld [vmem:[%s1231_s24 + $0x18] sm:$0xff]  ;;  %v1129_v19 = vld [vmem:[%s1231_s24 + $0x20] sm:$0xff]  ;;  %v1130_v23 = vld [vmem:[%s1231_s24 + $0x28] sm:$0xff] }
  0x13   : > { %v1136_v16 = vld [vmem:[%s1231_s24 + $0x58] sm:$0xff]  ;;  %v1137_v20 = vld [vmem:[%s1231_s24 + $0x60] sm:$0xff]  ;;  %v1138_v24 = vld [vmem:[%s1231_s24 + $0x68] sm:$0xff] }
  0x14   : > { %531 = vmatpush.bf16.msra.mxu0 %v1157_v2  ;;  %1166 = vmatpush.bf16.msra.mxu1 %v1157_v2  ;;  %v1144_v17 = vld [vmem:[%s1231_s24 + $0x98] sm:$0xff]  ;;  %v1145_v21 = vld [vmem:[%s1231_s24 + $0xa0] sm:$0xff]  ;;  %v1146_v25 = vld [vmem:[%s1231_s24 + $0xa8] sm:$0xff] }
  0x15   : > { %1167 = vmatpush.bf16.msra.mxu2 %v1157_v2  ;;  %1168 = vmatpush.bf16.msra.mxu3 %v1157_v2  ;;  %v1152_v18 = vld [vmem:[%s1231_s24 + $0xd8] sm:$0xff]  ;;  %v1153_v22 = vld [vmem:[%s1231_s24 + $0xe0] sm:$0xff]  ;;  %v1154_v26 = vld [vmem:[%s1231_s24 + $0xe8] sm:$0xff] }
  0x16   : > { %v1131_v27 = vld [vmem:[%s1231_s24 + $0x30] sm:$0xff]  ;;  %v1132_v31 = vld [vmem:[%s1231_s24 + $0x38] sm:$0xff] }
  0x17   : > { %1091 = vmatmul.msk.bf16.vlgmr.msra.gmra.mxu0 %vm427_vm0, %v1125_v3  ;;  %1099 = vmatmul.msk.bf16.vlgmr.msra.gmra.mxu1 %vm427_vm0, %v1133_v4  ;;  %v1139_v28 = vld [vmem:[%s1231_s24 + $0x70] sm:$0xff]  ;;  %v1140_v32 = vld [vmem:[%s1231_s24 + $0x78] sm:$0xff] }
  0x18   : > { %1107 = vmatmul.msk.bf16.vlgmr.msra.gmra.mxu2 %vm427_vm0, %v1141_v5  ;;  %1115 = vmatmul.msk.bf16.vlgmr.msra.gmra.mxu3 %vm427_vm0, %v1149_v6  ;;  %v1147_v29 = vld [vmem:[%s1231_s24 + $0xb0] sm:$0xff]  ;;  %v1148_v33 = vld [vmem:[%s1231_s24 + $0xb8] sm:$0xff] }
  0x19   : > { %v1155_v30 = vld [vmem:[%s1231_s24 + $0xf0] sm:$0xff]  ;;  %v1156_v34 = vld [vmem:[%s1231_s24 + $0xf8] sm:$0xff] }
  0x27   : > { %1092 = vmatmul.msk.bf16.gmra.mxu0 %vm427_vm0, %v1126_v7  ;;  %1100 = vmatmul.msk.bf16.gmra.mxu1 %vm427_vm0, %v1134_v8 }
  0x28   : > { %1108 = vmatmul.msk.bf16.gmra.mxu2 %vm427_vm0, %v1142_v9  ;;  %1116 = vmatmul.msk.bf16.gmra.mxu3 %vm427_vm0, %v1150_v10 }
  0x37   : > { %1093 = vmatmul.msk.bf16.gmra.mxu0 %vm427_vm0, %v1127_v11  ;;  %1101 = vmatmul.msk.bf16.gmra.mxu1 %vm427_vm0, %v1135_v12 }
  0x38   : > { %1109 = vmatmul.msk.bf16.gmra.mxu2 %vm427_vm0, %v1143_v13  ;;  %1117 = vmatmul.msk.bf16.gmra.mxu3 %vm427_vm0, %v1151_v14 }
  0x47   : > { %1094 = vmatmul.msk.bf16.gmra.mxu0 %vm427_vm0, %v1128_v15  ;;  %1102 = vmatmul.msk.bf16.gmra.mxu1 %vm427_vm0, %v1136_v16 }
  0x48   : > { %1110 = vmatmul.msk.bf16.gmra.mxu2 %vm427_vm0, %v1144_v17  ;;  %1118 = vmatmul.msk.bf16.gmra.mxu3 %vm427_vm0, %v1152_v18 }
  0x57   : > { %1095 = vmatmul.msk.bf16.gmra.mxu0 %vm427_vm0, %v1129_v19  ;;  %1103 = vmatmul.msk.bf16.gmra.mxu1 %vm427_vm0, %v1137_v20 }
  0x58   : > { %1111 = vmatmul.msk.bf16.gmra.mxu2 %vm427_vm0, %v1145_v21  ;;  %1119 = vmatmul.msk.bf16.gmra.mxu3 %vm427_vm0, %v1153_v22 }
  0x67   : > { %1096 = vmatmul.msk.bf16.gmra.mxu0 %vm427_vm0, %v1130_v23  ;;  %1104 = vmatmul.msk.bf16.gmra.mxu1 %vm427_vm0, %v1138_v24 }
  0x68   : > { %1112 = vmatmul.msk.bf16.gmra.mxu2 %vm427_vm0, %v1146_v25  ;;  %1120 = vmatmul.msk.bf16.gmra.mxu3 %vm427_vm0, %v1154_v26 }
  0x77   : > { %1097 = vmatmul.msk.bf16.gmra.mxu0 %vm427_vm0, %v1131_v27  ;;  %1105 = vmatmul.msk.bf16.gmra.mxu1 %vm427_vm0, %v1139_v28 }
  0x78   : > { %1113 = vmatmul.msk.bf16.gmra.mxu2 %vm427_vm0, %v1147_v29  ;;  %1121 = vmatmul.msk.bf16.gmra.mxu3 %vm427_vm0, %v1155_v30 }
  0x87   : > { %1098 = vmatmul.msk.bf16.gmra.mxu0 %vm427_vm0, %v1132_v31  ;;  %1106 = vmatmul.msk.bf16.gmra.mxu1 %vm427_vm0, %v1140_v32 }
  0x88   : > { %1114 = vmatmul.msk.bf16.gmra.mxu2 %vm427_vm0, %v1148_v33  ;;  %1122 = vmatmul.msk.bf16.gmra.mxu3 %vm427_vm0, %v1156_v34 }
  0x94   : > { %v533_v36 = vpop.f32.mrf.mxu0  ;;  %v573_v37 = vpop.f32.mrf.mxu1 }
  0x95   : > { %v534_v38 = vadd.f32 %v1300_v35, %v533_v36  ;;  %v574_v39 = vadd.f32 %v1300_v35, %v573_v37 }
  0x97   : > { %v693_v40 = vmax.f32 %v534_v38, 0.0  ;;  %v709_v41 = vmax.f32 %v574_v39, 0.0 }
  0x99   : > { %v757_v42 = vpack.c.bf16 %v693_v40, %v693_v40  ;;  %v773_v43 = vpack.c.bf16 %v709_v41, %v709_v41 }
  0x9b   : > { %822 = vst.msk [vmem:[%s1309_s29] sm:$0xf] %vm821_vm1, %v757_v42  ;;  %v613_v44 = vpop.f32.mrf.mxu2  ;;  %v653_v45 = vpop.f32.mrf.mxu3 }
  0x9c   : > { %838 = vst.msk [vmem:[%s1309_s29 + $0x40] sm:$0xf] %vm821_vm1, %v773_v43  ;;  %v614_v46 = vadd.f32 %v1300_v35, %v613_v44  ;;  %v654_v47 = vadd.f32 %v1300_v35, %v653_v45  ;;  %v535_v48 = vpop.f32.mrf.mxu0  ;;  %v575_v49 = vpop.f32.mrf.mxu1 }
  0x9d   : > { %v536_v50 = vadd.f32 %v1300_v35, %v535_v48  ;;  %v576_v51 = vadd.f32 %v1300_v35, %v575_v49 }
  0x9e   : > { %v725_v52 = vmax.f32 %v614_v46, 0.0  ;;  %v741_v53 = vmax.f32 %v654_v47, 0.0 }
  0x9f   : > { %v694_v54 = vmax.f32 %v536_v50, 0.0  ;;  %v710_v55 = vmax.f32 %v576_v51, 0.0 }
  0xa0   : > { %v789_v56 = vpack.c.bf16 %v725_v52, %v725_v52  ;;  %v805_v57 = vpack.c.bf16 %v741_v53, %v741_v53 }
  0xa1   : > { %v758_v58 = vpack.c.bf16 %v694_v54, %v694_v54  ;;  %v774_v59 = vpack.c.bf16 %v710_v55, %v710_v55 }
  0xa2   : > { %854 = vst.msk [vmem:[%s1309_s29 + $0x80] sm:$0xf] %vm821_vm1, %v789_v56 }
  0xa3   : > { %870 = vst.msk [vmem:[%s1309_s29 + $0xc0] sm:$0xf] %vm821_vm1, %v805_v57  ;;  %v615_v60 = vpop.f32.mrf.mxu2  ;;  %v655_v61 = vpop.f32.mrf.mxu3 }
  0xa4   : > { %823 = vst.msk [vmem:[%s1309_s29 + $0x4] sm:$0xf] %vm821_vm1, %v758_v58  ;;  %v616_v62 = vadd.f32 %v1300_v35, %v615_v60  ;;  %v656_v63 = vadd.f32 %v1300_v35, %v655_v61  ;;  %v538_v0 = vpop.f32.mrf.mxu0  ;;  %v578_v1 = vpop.f32.mrf.mxu1 }
  0xa5   : > { %839 = vst.msk [vmem:[%s1309_s29 + $0x44] sm:$0xf] %vm821_vm1, %v774_v59  ;;  %v539_v2 = vadd.f32 %v1300_v35, %v538_v0  ;;  %v579_v3 = vadd.f32 %v1300_v35, %v578_v1 }
  0xa6   : > { %v726_v4 = vmax.f32 %v616_v62, 0.0  ;;  %v742_v5 = vmax.f32 %v656_v63, 0.0 }
  0xa7   : > { %v695_v6 = vmax.f32 %v539_v2, 0.0  ;;  %v711_v7 = vmax.f32 %v579_v3, 0.0 }
  0xa8   : > { %v790_v8 = vpack.c.bf16 %v726_v4, %v726_v4  ;;  %v806_v9 = vpack.c.bf16 %v742_v5, %v742_v5 }
  0xa9   : > { %v759_v10 = vpack.c.bf16 %v695_v6, %v695_v6  ;;  %v775_v11 = vpack.c.bf16 %v711_v7, %v711_v7 }
  0xaa   : > { %855 = vst.msk [vmem:[%s1309_s29 + $0x84] sm:$0xf] %vm821_vm1, %v790_v8 }
  0xab   : > { %871 = vst.msk [vmem:[%s1309_s29 + $0xc4] sm:$0xf] %vm821_vm1, %v806_v9  ;;  %v618_v12 = vpop.f32.mrf.mxu2  ;;  %v658_v13 = vpop.f32.mrf.mxu3 }
  0xac   : > { %824 = vst.msk [vmem:[%s1309_s29 + $0x8] sm:$0xf] %vm821_vm1, %v759_v10  ;;  %v619_v14 = vadd.f32 %v1300_v35, %v618_v12  ;;  %v659_v15 = vadd.f32 %v1300_v35, %v658_v13  ;;  %v540_v16 = vpop.f32.mrf.mxu0  ;;  %v580_v17 = vpop.f32.mrf.mxu1 }
  0xad   : > { %840 = vst.msk [vmem:[%s1309_s29 + $0x48] sm:$0xf] %vm821_vm1, %v775_v11  ;;  %v541_v18 = vadd.f32 %v1300_v35, %v540_v16  ;;  %v581_v19 = vadd.f32 %v1300_v35, %v580_v17 }
  0xae   : > { %v727_v20 = vmax.f32 %v619_v14, 0.0  ;;  %v743_v21 = vmax.f32 %v659_v15, 0.0 }
  0xaf   : > { %v696_v22 = vmax.f32 %v541_v18, 0.0  ;;  %v712_v23 = vmax.f32 %v581_v19, 0.0 }
  0xb0   : > { %v791_v24 = vpack.c.bf16 %v727_v20, %v727_v20  ;;  %v807_v25 = vpack.c.bf16 %v743_v21, %v743_v21 }
  0xb1   : > { %v760_v26 = vpack.c.bf16 %v696_v22, %v696_v22  ;;  %v776_v27 = vpack.c.bf16 %v712_v23, %v712_v23 }
  0xb2   : > { %856 = vst.msk [vmem:[%s1309_s29 + $0x88] sm:$0xf] %vm821_vm1, %v791_v24 }
  0xb3   : > { %872 = vst.msk [vmem:[%s1309_s29 + $0xc8] sm:$0xf] %vm821_vm1, %v807_v25  ;;  %v620_v28 = vpop.f32.mrf.mxu2  ;;  %v660_v29 = vpop.f32.mrf.mxu3 }
  0xb4   : > { %825 = vst.msk [vmem:[%s1309_s29 + $0xc] sm:$0xf] %vm821_vm1, %v760_v26  ;;  %v621_v30 = vadd.f32 %v1300_v35, %v620_v28  ;;  %v661_v31 = vadd.f32 %v1300_v35, %v660_v29  ;;  %v543_v32 = vpop.f32.mrf.mxu0  ;;  %v583_v33 = vpop.f32.mrf.mxu1 }
  0xb5   : > { %841 = vst.msk [vmem:[%s1309_s29 + $0x4c] sm:$0xf] %vm821_vm1, %v776_v27  ;;  %v544_v34 = vadd.f32 %v1300_v35, %v543_v32  ;;  %v584_v36 = vadd.f32 %v1300_v35, %v583_v33 }
  0xb6   : > { %v728_v37 = vmax.f32 %v621_v30, 0.0  ;;  %v744_v38 = vmax.f32 %v661_v31, 0.0 }
  0xb7   : > { %v697_v39 = vmax.f32 %v544_v34, 0.0  ;;  %v713_v40 = vmax.f32 %v584_v36, 0.0 }
  0xb8   : > { %v792_v41 = vpack.c.bf16 %v728_v37, %v728_v37  ;;  %v808_v42 = vpack.c.bf16 %v744_v38, %v744_v38 }
  0xb9   : > { %v761_v43 = vpack.c.bf16 %v697_v39, %v697_v39  ;;  %v777_v44 = vpack.c.bf16 %v713_v40, %v713_v40 }
  0xba   : > { %857 = vst.msk [vmem:[%s1309_s29 + $0x8c] sm:$0xf] %vm821_vm1, %v792_v41 }
  0xbb   : > { %873 = vst.msk [vmem:[%s1309_s29 + $0xcc] sm:$0xf] %vm821_vm1, %v808_v42  ;;  %v623_v45 = vpop.f32.mrf.mxu2  ;;  %v663_v46 = vpop.f32.mrf.mxu3 }
  0xbc   : > { %826 = vst.msk [vmem:[%s1309_s29 + $0x10] sm:$0xf] %vm821_vm1, %v761_v43  ;;  %v624_v47 = vadd.f32 %v1300_v35, %v623_v45  ;;  %v664_v48 = vadd.f32 %v1300_v35, %v663_v46  ;;  %v545_v49 = vpop.f32.mrf.mxu0  ;;  %v585_v50 = vpop.f32.mrf.mxu1 }
  0xbd   : > { %842 = vst.msk [vmem:[%s1309_s29 + $0x50] sm:$0xf] %vm821_vm1, %v777_v44  ;;  %v546_v51 = vadd.f32 %v1300_v35, %v545_v49  ;;  %v586_v52 = vadd.f32 %v1300_v35, %v585_v50 }
  0xbe   : > { %v729_v53 = vmax.f32 %v624_v47, 0.0  ;;  %v745_v54 = vmax.f32 %v664_v48, 0.0 }
  0xbf   : > { %v698_v55 = vmax.f32 %v546_v51, 0.0  ;;  %v714_v56 = vmax.f32 %v586_v52, 0.0 }
  0xc0   : > { %v793_v57 = vpack.c.bf16 %v729_v53, %v729_v53  ;;  %v809_v58 = vpack.c.bf16 %v745_v54, %v745_v54 }
  0xc1   : > { %v762_v59 = vpack.c.bf16 %v698_v55, %v698_v55  ;;  %v778_v60 = vpack.c.bf16 %v714_v56, %v714_v56 }
  0xc2   : > { %858 = vst.msk [vmem:[%s1309_s29 + $0x90] sm:$0xf] %vm821_vm1, %v793_v57 }
  0xc3   : > { %874 = vst.msk [vmem:[%s1309_s29 + $0xd0] sm:$0xf] %vm821_vm1, %v809_v58  ;;  %v625_v61 = vpop.f32.mrf.mxu2  ;;  %v665_v62 = vpop.f32.mrf.mxu3 }
  0xc4   : > { %827 = vst.msk [vmem:[%s1309_s29 + $0x14] sm:$0xf] %vm821_vm1, %v762_v59  ;;  %v626_v63 = vadd.f32 %v1300_v35, %v625_v61  ;;  %v666_v0 = vadd.f32 %v1300_v35, %v665_v62  ;;  %v548_v1 = vpop.f32.mrf.mxu0  ;;  %v588_v2 = vpop.f32.mrf.mxu1 }
  0xc5   : > { %843 = vst.msk [vmem:[%s1309_s29 + $0x54] sm:$0xf] %vm821_vm1, %v778_v60  ;;  %v549_v3 = vadd.f32 %v1300_v35, %v548_v1  ;;  %v589_v4 = vadd.f32 %v1300_v35, %v588_v2 }
  0xc6   : > { %v730_v5 = vmax.f32 %v626_v63, 0.0  ;;  %v746_v6 = vmax.f32 %v666_v0, 0.0 }
  0xc7   : > { %v699_v7 = vmax.f32 %v549_v3, 0.0  ;;  %v715_v8 = vmax.f32 %v589_v4, 0.0 }
  0xc8   : > { %v794_v9 = vpack.c.bf16 %v730_v5, %v730_v5  ;;  %v810_v10 = vpack.c.bf16 %v746_v6, %v746_v6 }
  0xc9   : > { %v763_v11 = vpack.c.bf16 %v699_v7, %v699_v7  ;;  %v779_v12 = vpack.c.bf16 %v715_v8, %v715_v8 }
  0xca   : > { %859 = vst.msk [vmem:[%s1309_s29 + $0x94] sm:$0xf] %vm821_vm1, %v794_v9 }
  0xcb   : > { %875 = vst.msk [vmem:[%s1309_s29 + $0xd4] sm:$0xf] %vm821_vm1, %v810_v10  ;;  %v628_v13 = vpop.f32.mrf.mxu2  ;;  %v668_v14 = vpop.f32.mrf.mxu3 }
  0xcc   : > { %828 = vst.msk [vmem:[%s1309_s29 + $0x18] sm:$0xf] %vm821_vm1, %v763_v11  ;;  %v629_v15 = vadd.f32 %v1300_v35, %v628_v13  ;;  %v669_v16 = vadd.f32 %v1300_v35, %v668_v14  ;;  %v550_v17 = vpop.f32.mrf.mxu0  ;;  %v590_v18 = vpop.f32.mrf.mxu1 }
  0xcd   : > { %844 = vst.msk [vmem:[%s1309_s29 + $0x58] sm:$0xf] %vm821_vm1, %v779_v12  ;;  %v551_v19 = vadd.f32 %v1300_v35, %v550_v17  ;;  %v591_v20 = vadd.f32 %v1300_v35, %v590_v18 }
  0xce   : > { %v731_v21 = vmax.f32 %v629_v15, 0.0  ;;  %v747_v22 = vmax.f32 %v669_v16, 0.0 }
  0xcf   : > { %v700_v23 = vmax.f32 %v551_v19, 0.0  ;;  %v716_v24 = vmax.f32 %v591_v20, 0.0 }
  0xd0   : > { %v795_v25 = vpack.c.bf16 %v731_v21, %v731_v21  ;;  %v811_v26 = vpack.c.bf16 %v747_v22, %v747_v22 }
  0xd1   : > { %v764_v27 = vpack.c.bf16 %v700_v23, %v700_v23  ;;  %v780_v28 = vpack.c.bf16 %v716_v24, %v716_v24 }
  0xd2   : > { %860 = vst.msk [vmem:[%s1309_s29 + $0x98] sm:$0xf] %vm821_vm1, %v795_v25 }
  0xd3   : > { %876 = vst.msk [vmem:[%s1309_s29 + $0xd8] sm:$0xf] %vm821_vm1, %v811_v26  ;;  %v630_v29 = vpop.f32.mrf.mxu2  ;;  %v670_v30 = vpop.f32.mrf.mxu3 }
  0xd4   : > { %829 = vst.msk [vmem:[%s1309_s29 + $0x1c] sm:$0xf] %vm821_vm1, %v764_v27  ;;  %v631_v31 = vadd.f32 %v1300_v35, %v630_v29  ;;  %v671_v32 = vadd.f32 %v1300_v35, %v670_v30  ;;  %v553_v33 = vpop.f32.mrf.mxu0  ;;  %v593_v34 = vpop.f32.mrf.mxu1 }
  0xd5   : > { %845 = vst.msk [vmem:[%s1309_s29 + $0x5c] sm:$0xf] %vm821_vm1, %v780_v28  ;;  %v554_v36 = vadd.f32 %v1300_v35, %v553_v33  ;;  %v594_v37 = vadd.f32 %v1300_v35, %v593_v34 }
  0xd6   : > { %v732_v38 = vmax.f32 %v631_v31, 0.0  ;;  %v748_v39 = vmax.f32 %v671_v32, 0.0 }
  0xd7   : > { %v701_v40 = vmax.f32 %v554_v36, 0.0  ;;  %v717_v41 = vmax.f32 %v594_v37, 0.0 }
  0xd8   : > { %v796_v42 = vpack.c.bf16 %v732_v38, %v732_v38  ;;  %v812_v43 = vpack.c.bf16 %v748_v39, %v748_v39 }
  0xd9   : > { %v765_v44 = vpack.c.bf16 %v701_v40, %v701_v40  ;;  %v781_v45 = vpack.c.bf16 %v717_v41, %v717_v41 }
  0xda   : > { %861 = vst.msk [vmem:[%s1309_s29 + $0x9c] sm:$0xf] %vm821_vm1, %v796_v42 }
  0xdb   : > { %877 = vst.msk [vmem:[%s1309_s29 + $0xdc] sm:$0xf] %vm821_vm1, %v812_v43  ;;  %v633_v46 = vpop.f32.mrf.mxu2  ;;  %v673_v47 = vpop.f32.mrf.mxu3 }
  0xdc   : > { %830 = vst.msk [vmem:[%s1309_s29 + $0x20] sm:$0xf] %vm821_vm1, %v765_v44  ;;  %v634_v48 = vadd.f32 %v1300_v35, %v633_v46  ;;  %v674_v49 = vadd.f32 %v1300_v35, %v673_v47  ;;  %v555_v50 = vpop.f32.mrf.mxu0  ;;  %v595_v51 = vpop.f32.mrf.mxu1 }
  0xdd   : > { %846 = vst.msk [vmem:[%s1309_s29 + $0x60] sm:$0xf] %vm821_vm1, %v781_v45  ;;  %v556_v52 = vadd.f32 %v1300_v35, %v555_v50  ;;  %v596_v53 = vadd.f32 %v1300_v35, %v595_v51 }
  0xde   : > { %v733_v54 = vmax.f32 %v634_v48, 0.0  ;;  %v749_v55 = vmax.f32 %v674_v49, 0.0 }
  0xdf   : > { %v702_v56 = vmax.f32 %v556_v52, 0.0  ;;  %v718_v57 = vmax.f32 %v596_v53, 0.0 }
  0xe0   : > { %v797_v58 = vpack.c.bf16 %v733_v54, %v733_v54  ;;  %v813_v59 = vpack.c.bf16 %v749_v55, %v749_v55 }
  0xe1   : > { %v766_v60 = vpack.c.bf16 %v702_v56, %v702_v56  ;;  %v782_v61 = vpack.c.bf16 %v718_v57, %v718_v57 }
  0xe2   : > { %862 = vst.msk [vmem:[%s1309_s29 + $0xa0] sm:$0xf] %vm821_vm1, %v797_v58 }
  0xe3   : > { %878 = vst.msk [vmem:[%s1309_s29 + $0xe0] sm:$0xf] %vm821_vm1, %v813_v59  ;;  %v635_v62 = vpop.f32.mrf.mxu2  ;;  %v675_v63 = vpop.f32.mrf.mxu3 }
  0xe4   : > { %831 = vst.msk [vmem:[%s1309_s29 + $0x24] sm:$0xf] %vm821_vm1, %v766_v60  ;;  %v636_v0 = vadd.f32 %v1300_v35, %v635_v62  ;;  %v676_v1 = vadd.f32 %v1300_v35, %v675_v63  ;;  %v558_v2 = vpop.f32.mrf.mxu0  ;;  %v598_v3 = vpop.f32.mrf.mxu1 }
  0xe5   : > { %847 = vst.msk [vmem:[%s1309_s29 + $0x64] sm:$0xf] %vm821_vm1, %v782_v61  ;;  %v559_v4 = vadd.f32 %v1300_v35, %v558_v2  ;;  %v599_v5 = vadd.f32 %v1300_v35, %v598_v3 }
  0xe6   : > { %v734_v6 = vmax.f32 %v636_v0, 0.0  ;;  %v750_v7 = vmax.f32 %v676_v1, 0.0 }
  0xe7   : > { %v703_v8 = vmax.f32 %v559_v4, 0.0  ;;  %v719_v9 = vmax.f32 %v599_v5, 0.0 }
  0xe8   : > { %v798_v10 = vpack.c.bf16 %v734_v6, %v734_v6  ;;  %v814_v11 = vpack.c.bf16 %v750_v7, %v750_v7 }
  0xe9   : > { %v767_v12 = vpack.c.bf16 %v703_v8, %v703_v8  ;;  %v783_v13 = vpack.c.bf16 %v719_v9, %v719_v9 }
  0xea   : > { %863 = vst.msk [vmem:[%s1309_s29 + $0xa4] sm:$0xf] %vm821_vm1, %v798_v10 }
  0xeb   : > { %879 = vst.msk [vmem:[%s1309_s29 + $0xe4] sm:$0xf] %vm821_vm1, %v814_v11  ;;  %v638_v14 = vpop.f32.mrf.mxu2  ;;  %v678_v15 = vpop.f32.mrf.mxu3 }
  0xec   : > { %832 = vst.msk [vmem:[%s1309_s29 + $0x28] sm:$0xf] %vm821_vm1, %v767_v12  ;;  %v639_v16 = vadd.f32 %v1300_v35, %v638_v14  ;;  %v679_v17 = vadd.f32 %v1300_v35, %v678_v15  ;;  %v560_v18 = vpop.f32.mrf.mxu0  ;;  %v600_v19 = vpop.f32.mrf.mxu1 }
  0xed   : > { %848 = vst.msk [vmem:[%s1309_s29 + $0x68] sm:$0xf] %vm821_vm1, %v783_v13  ;;  %v561_v20 = vadd.f32 %v1300_v35, %v560_v18  ;;  %v601_v21 = vadd.f32 %v1300_v35, %v600_v19 }
  0xee   : > { %v735_v22 = vmax.f32 %v639_v16, 0.0  ;;  %v751_v23 = vmax.f32 %v679_v17, 0.0 }
  0xef   : > { %v704_v24 = vmax.f32 %v561_v20, 0.0  ;;  %v720_v25 = vmax.f32 %v601_v21, 0.0 }
  0xf0   : > { %v799_v26 = vpack.c.bf16 %v735_v22, %v735_v22  ;;  %v815_v27 = vpack.c.bf16 %v751_v23, %v751_v23 }
  0xf1   : > { %v768_v28 = vpack.c.bf16 %v704_v24, %v704_v24  ;;  %v784_v29 = vpack.c.bf16 %v720_v25, %v720_v25 }
  0xf2   : > { %864 = vst.msk [vmem:[%s1309_s29 + $0xa8] sm:$0xf] %vm821_vm1, %v799_v26 }
  0xf3   : > { %880 = vst.msk [vmem:[%s1309_s29 + $0xe8] sm:$0xf] %vm821_vm1, %v815_v27  ;;  %v640_v30 = vpop.f32.mrf.mxu2  ;;  %v680_v31 = vpop.f32.mrf.mxu3 }
  0xf4   : > { %833 = vst.msk [vmem:[%s1309_s29 + $0x2c] sm:$0xf] %vm821_vm1, %v768_v28  ;;  %v641_v32 = vadd.f32 %v1300_v35, %v640_v30  ;;  %v681_v33 = vadd.f32 %v1300_v35, %v680_v31  ;;  %v563_v34 = vpop.f32.mrf.mxu0  ;;  %v603_v36 = vpop.f32.mrf.mxu1 }
  0xf5   : > { %849 = vst.msk [vmem:[%s1309_s29 + $0x6c] sm:$0xf] %vm821_vm1, %v784_v29  ;;  %v564_v37 = vadd.f32 %v1300_v35, %v563_v34  ;;  %v604_v38 = vadd.f32 %v1300_v35, %v603_v36 }
  0xf6   : > { %v736_v39 = vmax.f32 %v641_v32, 0.0  ;;  %v752_v40 = vmax.f32 %v681_v33, 0.0 }
  0xf7   : > { %v705_v41 = vmax.f32 %v564_v37, 0.0  ;;  %v721_v42 = vmax.f32 %v604_v38, 0.0 }
  0xf8   : > { %v800_v43 = vpack.c.bf16 %v736_v39, %v736_v39  ;;  %v816_v44 = vpack.c.bf16 %v752_v40, %v752_v40 }
  0xf9   : > { %v769_v45 = vpack.c.bf16 %v705_v41, %v705_v41  ;;  %v785_v46 = vpack.c.bf16 %v721_v42, %v721_v42 }
  0xfa   : > { %865 = vst.msk [vmem:[%s1309_s29 + $0xac] sm:$0xf] %vm821_vm1, %v800_v43 }
  0xfb   : > { %881 = vst.msk [vmem:[%s1309_s29 + $0xec] sm:$0xf] %vm821_vm1, %v816_v44  ;;  %v643_v47 = vpop.f32.mrf.mxu2  ;;  %v683_v48 = vpop.f32.mrf.mxu3 }
  0xfc   : > { %834 = vst.msk [vmem:[%s1309_s29 + $0x30] sm:$0xf] %vm821_vm1, %v769_v45  ;;  %v644_v49 = vadd.f32 %v1300_v35, %v643_v47  ;;  %v684_v50 = vadd.f32 %v1300_v35, %v683_v48  ;;  %v565_v51 = vpop.f32.mrf.mxu0  ;;  %v605_v52 = vpop.f32.mrf.mxu1 }
  0xfd   : > { %850 = vst.msk [vmem:[%s1309_s29 + $0x70] sm:$0xf] %vm821_vm1, %v785_v46  ;;  %v566_v53 = vadd.f32 %v1300_v35, %v565_v51  ;;  %v606_v54 = vadd.f32 %v1300_v35, %v605_v52 }
  0xfe   : > { %v737_v55 = vmax.f32 %v644_v49, 0.0  ;;  %v753_v56 = vmax.f32 %v684_v50, 0.0 }
  0xff   : > { %v706_v57 = vmax.f32 %v566_v53, 0.0  ;;  %v722_v58 = vmax.f32 %v606_v54, 0.0 }
 0x100   : > { %v801_v59 = vpack.c.bf16 %v737_v55, %v737_v55  ;;  %v817_v60 = vpack.c.bf16 %v753_v56, %v753_v56 }
 0x101   : > { %v770_v61 = vpack.c.bf16 %v706_v57, %v706_v57  ;;  %v786_v62 = vpack.c.bf16 %v722_v58, %v722_v58 }
 0x102   : > { %866 = vst.msk [vmem:[%s1309_s29 + $0xb0] sm:$0xf] %vm821_vm1, %v801_v59 }
 0x103   : > { %882 = vst.msk [vmem:[%s1309_s29 + $0xf0] sm:$0xf] %vm821_vm1, %v817_v60  ;;  %v645_v63 = vpop.f32.mrf.mxu2  ;;  %v685_v0 = vpop.f32.mrf.mxu3 }
 0x104   : > { %835 = vst.msk [vmem:[%s1309_s29 + $0x34] sm:$0xf] %vm821_vm1, %v770_v61  ;;  %v646_v1 = vadd.f32 %v1300_v35, %v645_v63  ;;  %v686_v2 = vadd.f32 %v1300_v35, %v685_v0  ;;  %v568_v3 = vpop.f32.mrf.mxu0  ;;  %v608_v4 = vpop.f32.mrf.mxu1 }
 0x105   : > { %851 = vst.msk [vmem:[%s1309_s29 + $0x74] sm:$0xf] %vm821_vm1, %v786_v62  ;;  %v569_v5 = vadd.f32 %v1300_v35, %v568_v3  ;;  %v609_v6 = vadd.f32 %v1300_v35, %v608_v4 }
 0x106   : > { %v738_v7 = vmax.f32 %v646_v1, 0.0  ;;  %v754_v8 = vmax.f32 %v686_v2, 0.0 }
 0x107   : > { %v707_v9 = vmax.f32 %v569_v5, 0.0  ;;  %v723_v10 = vmax.f32 %v609_v6, 0.0 }
 0x108   : > { %v802_v11 = vpack.c.bf16 %v738_v7, %v738_v7  ;;  %v818_v12 = vpack.c.bf16 %v754_v8, %v754_v8 }
 0x109   : > { %v771_v13 = vpack.c.bf16 %v707_v9, %v707_v9  ;;  %v787_v14 = vpack.c.bf16 %v723_v10, %v723_v10 }
 0x10a   : > { %867 = vst.msk [vmem:[%s1309_s29 + $0xb4] sm:$0xf] %vm821_vm1, %v802_v11 }
 0x10b   : > { %883 = vst.msk [vmem:[%s1309_s29 + $0xf4] sm:$0xf] %vm821_vm1, %v818_v12  ;;  %v648_v15 = vpop.f32.mrf.mxu2  ;;  %v688_v16 = vpop.f32.mrf.mxu3 }
 0x10c   : > { %836 = vst.msk [vmem:[%s1309_s29 + $0x38] sm:$0xf] %vm821_vm1, %v771_v13  ;;  %v649_v17 = vadd.f32 %v1300_v35, %v648_v15  ;;  %v689_v18 = vadd.f32 %v1300_v35, %v688_v16  ;;  %v570_v19 = vpop.f32.mrf.mxu0  ;;  %v610_v20 = vpop.f32.mrf.mxu1 }
 0x10d   : > { %852 = vst.msk [vmem:[%s1309_s29 + $0x78] sm:$0xf] %vm821_vm1, %v787_v14  ;;  %v571_v21 = vadd.f32 %v1300_v35, %v570_v19  ;;  %v611_v22 = vadd.f32 %v1300_v35, %v610_v20 }
 0x10e   : > { %v739_v23 = vmax.f32 %v649_v17, 0.0  ;;  %v755_v24 = vmax.f32 %v689_v18, 0.0 }
 0x10f   : > { %v708_v25 = vmax.f32 %v571_v21, 0.0  ;;  %v724_v26 = vmax.f32 %v611_v22, 0.0 }
 0x110   : > { %v803_v27 = vpack.c.bf16 %v739_v23, %v739_v23  ;;  %v819_v28 = vpack.c.bf16 %v755_v24, %v755_v24 }
 0x111   : > { %v772_v29 = vpack.c.bf16 %v708_v25, %v708_v25  ;;  %v788_v30 = vpack.c.bf16 %v724_v26, %v724_v26 }
 0x112   : > { %868 = vst.msk [vmem:[%s1309_s29 + $0xb8] sm:$0xf] %vm821_vm1, %v803_v27 }
 0x113   : > { %884 = vst.msk [vmem:[%s1309_s29 + $0xf8] sm:$0xf] %vm821_vm1, %v819_v28  ;;  %v650_v31 = vpop.f32.mrf.mxu2  ;;  %v690_v32 = vpop.f32.mrf.mxu3 }
 0x114   : > { %837 = vst.msk [vmem:[%s1309_s29 + $0x3c] sm:$0xf] %vm821_vm1, %v772_v29  ;;  %v651_v33 = vadd.f32 %v1300_v35, %v650_v31  ;;  %v691_v34 = vadd.f32 %v1300_v35, %v690_v32 }
 0x115   : > { %853 = vst.msk [vmem:[%s1309_s29 + $0x7c] sm:$0xf] %vm821_vm1, %v788_v30 }
 0x116   : > { %v740_v36 = vmax.f32 %v651_v33, 0.0  ;;  %v756_v37 = vmax.f32 %v691_v34, 0.0 }
 0x118   : > { %v804_v38 = vpack.c.bf16 %v740_v36, %v740_v36  ;;  %v820_v39 = vpack.c.bf16 %v756_v37, %v756_v37 }
 0x11a   : > { %869 = vst.msk [vmem:[%s1309_s29 + $0xbc] sm:$0xf] %vm821_vm1, %v804_v38 }
 0x11b   : > { %885 = vst.msk [vmem:[%s1309_s29 + $0xfc] sm:$0xf] %vm821_vm1, %v820_v39 }
 0x11c PF: > { %s13_s12 = sadd.s32 1, %s1184_s12  }
 0x11d   : > { %p10_p4 = scmp.ge.s32.totalorder %s13_s12, 6  }
 0x11f   :  { %12 = sbr.rel (!%p10_p4) target bundleno = 1 (0x1), region = 62 }

// kernel: encoder_forward.6
= control target key start
LH: loop header
LB: loop body
LE: loop exit
PB: predicated region body
PF: predicated region fallthrough
CT: control target
= control target key end

     0   :  { %vm1496_vm0 = vcmask 519168   ;;  %s3145_s1 = inlined_call_operand.vmem [shape: bf16[512,64], index: 1, kind: input, shape index: {}]   ;;  %s3146_s2 = inlined_call_operand.vmem [shape: f32[1,64], index: 2, kind: input, shape index: {}]   ;;  %s3147_s0 = inlined_call_operand.vmem [shape: bf16[392,512], index: 0, kind: input, shape index: {}]   ;;  %s3148_s3 = inlined_call_operand.vmem [shape: bf16[392,64], index: 3, kind: output, shape index: {}]  }
   0x1   :  { %v2165_v0 = vld [vmem:[%s3145_s1 + $0x38] sm:$0xff]  ;;  %v2164_v4 = vld [vmem:[%s3145_s1 + $0x30] sm:$0xff]  ;;  %v2163_v8 = vld [vmem:[%s3145_s1 + $0x28] sm:$0xff] }
   0x2   :  { %v2173_v1 = vld [vmem:[%s3145_s1 + $0x78] sm:$0xff]  ;;  %866 = vmatpush.bf16.msra.mxu0 %v2165_v0  ;;  %v2172_v5 = vld [vmem:[%s3145_s1 + $0x70] sm:$0xff]  ;;  %v2171_v9 = vld [vmem:[%s3145_s1 + $0x68] sm:$0xff] }
   0x3   :  { %v2181_v2 = vld [vmem:[%s3145_s1 + $0xb8] sm:$0xff]  ;;  %999 = vmatpush.bf16.msra.mxu1 %v2173_v1  ;;  %v2180_v6 = vld [vmem:[%s3145_s1 + $0xb0] sm:$0xff]  ;;  %v2179_v10 = vld [vmem:[%s3145_s1 + $0xa8] sm:$0xff] }
   0x4   :  { %v2189_v3 = vld [vmem:[%s3145_s1 + $0xf8] sm:$0xff]  ;;  %1132 = vmatpush.bf16.msra.mxu2 %v2181_v2  ;;  %v2188_v7 = vld [vmem:[%s3145_s1 + $0xf0] sm:$0xff]  ;;  %v2187_v11 = vld [vmem:[%s3145_s1 + $0xe8] sm:$0xff] }
   0x5   :  { %1265 = vmatpush.bf16.msra.mxu3 %v2189_v3  ;;  %v2162_v12 = vld [vmem:[%s3145_s1 + $0x20] sm:$0xff]  ;;  %v2161_v16 = vld [vmem:[%s3145_s1 + $0x18] sm:$0xff]  ;;  %v2160_v20 = vld [vmem:[%s3145_s1 + $0x10] sm:$0xff] }
   0x6   :  { %867 = vmatpush.bf16.msra.mxu0 %v2164_v4  ;;  %v2170_v13 = vld [vmem:[%s3145_s1 + $0x60] sm:$0xff]  ;;  %v2169_v17 = vld [vmem:[%s3145_s1 + $0x58] sm:$0xff]  ;;  %v2168_v21 = vld [vmem:[%s3145_s1 + $0x50] sm:$0xff] }
   0x7   :  { %1000 = vmatpush.bf16.msra.mxu1 %v2172_v5  ;;  %v2178_v14 = vld [vmem:[%s3145_s1 + $0xa0] sm:$0xff]  ;;  %v2177_v18 = vld [vmem:[%s3145_s1 + $0x98] sm:$0xff]  ;;  %v2176_v22 = vld [vmem:[%s3145_s1 + $0x90] sm:$0xff] }
   0x8   :  { %1133 = vmatpush.bf16.msra.mxu2 %v2180_v6  ;;  %v2186_v15 = vld [vmem:[%s3145_s1 + $0xe0] sm:$0xff]  ;;  %v2185_v19 = vld [vmem:[%s3145_s1 + $0xd8] sm:$0xff]  ;;  %v2184_v23 = vld [vmem:[%s3145_s1 + $0xd0] sm:$0xff] }
   0x9   :  { %1266 = vmatpush.bf16.msra.mxu3 %v2188_v7  ;;  %v2159_v24 = vld [vmem:[%s3145_s1 + $0x8] sm:$0xff]  ;;  %v2158_v28 = vld [vmem:[%s3145_s1] sm:$0xff]  ;;  %v2064_v33 = vld [vmem:[%s3147_s0 + $0xc] sm:$0xf0] }
   0xa   :  { %868 = vmatpush.bf16.msra.mxu0 %v2163_v8  ;;  %v2167_v25 = vld [vmem:[%s3145_s1 + $0x48] sm:$0xff]  ;;  %v2166_v29 = vld [vmem:[%s3145_s1 + $0x40] sm:$0xff]  ;;  %v1554_v35 = vld [vmem:[%s3147_s0 + $0x10] sm:$0xf0] }
   0xb   :  { %1001 = vmatpush.bf16.msra.mxu1 %v2171_v9  ;;  %v2175_v26 = vld [vmem:[%s3145_s1 + $0x88] sm:$0xff]  ;;  %v2174_v30 = vld [vmem:[%s3145_s1 + $0x80] sm:$0xff]  ;;  %v2065_v37 = vld [vmem:[%s3147_s0 + $0x14] sm:$0xf0] }
   0xc   :  { %1134 = vmatpush.bf16.msra.mxu2 %v2179_v10  ;;  %v2183_v27 = vld [vmem:[%s3145_s1 + $0xc8] sm:$0xff]  ;;  %v2182_v31 = vld [vmem:[%s3145_s1 + $0xc0] sm:$0xff]  ;;  %v1562_v39 = vld [vmem:[%s3147_s0 + $0x18] sm:$0xf0] }
   0xd   :  { %1267 = vmatpush.bf16.msra.mxu3 %v2187_v11  ;;  %v1552_v32 = vld [vmem:[%s3147_s0] sm:$0xf]  ;;  %v2062_v34 = vld [vmem:[%s3147_s0 + $0x4] sm:$0xf]  ;;  %v1560_v36 = vld [vmem:[%s3147_s0 + $0x8] sm:$0xf] }
   0xe   :  { %869 = vmatpush.bf16.msra.mxu0 %v2162_v12  ;;  %v2063_v38 = vld [vmem:[%s3147_s0 + $0xc] sm:$0xf]  ;;  %v1553_v40 = vor.u32 %v2064_v33, %v1552_v32  ;;  %v1557_v41 = vor.u32 %v2062_v34, %v1554_v35  ;;  %v1561_v42 = vor.u32 %v2065_v37, %v1560_v36  ;;  %v1568_v44 = vld [vmem:[%s3147_s0 + $0x20] sm:$0xf]  ;;  %v2068_v45 = vld [vmem:[%s3147_s0 + $0x2c] sm:$0xf0] }
   0xf   :  { %1002 = vmatpush.bf16.msra.mxu1 %v2170_v13  ;;  %v1565_v43 = vor.u32 %v2063_v38, %v1562_v39  ;;  %v2066_v46 = vld [vmem:[%s3147_s0 + $0x24] sm:$0xf]  ;;  %v1570_v47 = vld [vmem:[%s3147_s0 + $0x30] sm:$0xf0]  ;;  %v1576_v48 = vld [vmem:[%s3147_s0 + $0x28] sm:$0xf]  ;;  %v1569_v52 = vor.u32 %v2068_v45, %v1568_v44 }
  0x10   :  { %1135 = vmatpush.bf16.msra.mxu2 %v2178_v14  ;;  %v2069_v49 = vld [vmem:[%s3147_s0 + $0x34] sm:$0xf0]  ;;  %v2067_v50 = vld [vmem:[%s3147_s0 + $0x2c] sm:$0xf]  ;;  %v1578_v51 = vld [vmem:[%s3147_s0 + $0x38] sm:$0xf0]  ;;  %v1573_v53 = vor.u32 %v2066_v46, %v1570_v47 }
  0x11   :  { %1268 = vmatpush.bf16.msra.mxu3 %v2186_v15  ;;  %v1577_v54 = vor.u32 %v2069_v49, %v1576_v48  ;;  %v1581_v55 = vor.u32 %v2067_v50, %v1578_v51  ;;  %v1584_v56 = vld [vmem:[%s3147_s0 + $0x40] sm:$0xf]  ;;  %v2072_v57 = vld [vmem:[%s3147_s0 + $0x4c] sm:$0xf0]  ;;  %v2070_v58 = vld [vmem:[%s3147_s0 + $0x44] sm:$0xf] }
  0x12   :  { %870 = vmatpush.bf16.msra.mxu0 %v2161_v16  ;;  %v1586_v59 = vld [vmem:[%s3147_s0 + $0x50] sm:$0xf0]  ;;  %v1592_v60 = vld [vmem:[%s3147_s0 + $0x48] sm:$0xf]  ;;  %v2073_v61 = vld [vmem:[%s3147_s0 + $0x54] sm:$0xf0]  ;;  %v1585_v0 = vor.u32 %v2072_v57, %v1584_v56 }
  0x13   :  { %1003 = vmatpush.bf16.msra.mxu1 %v2169_v17  ;;  %v2071_v62 = vld [vmem:[%s3147_s0 + $0x4c] sm:$0xf]  ;;  %v1594_v63 = vld [vmem:[%s3147_s0 + $0x58] sm:$0xf0]  ;;  %v1589_v1 = vor.u32 %v2070_v58, %v1586_v59  ;;  %v1593_v2 = vor.u32 %v2073_v61, %v1592_v60  ;;  %v1600_v4 = vld [vmem:[%s3147_s0 + $0x60] sm:$0xf] }
  0x14   :  { %1136 = vmatpush.bf16.msra.mxu2 %v2177_v18  ;;  %v1597_v3 = vor.u32 %v2071_v62, %v1594_v63  ;;  %v2076_v5 = vld [vmem:[%s3147_s0 + $0x6c] sm:$0xf0]  ;;  %v2074_v6 = vld [vmem:[%s3147_s0 + $0x64] sm:$0xf]  ;;  %v1602_v7 = vld [vmem:[%s3147_s0 + $0x70] sm:$0xf0] }
  0x15   :  { %1269 = vmatpush.bf16.msra.mxu3 %v2185_v19  ;;  %v1608_v8 = vld [vmem:[%s3147_s0 + $0x68] sm:$0xf]  ;;  %v2077_v9 = vld [vmem:[%s3147_s0 + $0x74] sm:$0xf0]  ;;  %v2075_v10 = vld [vmem:[%s3147_s0 + $0x6c] sm:$0xf]  ;;  %v1601_v12 = vor.u32 %v2076_v5, %v1600_v4  ;;  %v1605_v13 = vor.u32 %v2074_v6, %v1602_v7 }
  0x16   :  { %871 = vmatpush.bf16.msra.mxu0 %v2160_v20  ;;  %v1610_v11 = vld [vmem:[%s3147_s0 + $0x78] sm:$0xf0]  ;;  %v1609_v14 = vor.u32 %v2077_v9, %v1608_v8  ;;  %v1616_v16 = vld [vmem:[%s3147_s0 + $0x80] sm:$0xf]  ;;  %v2080_v17 = vld [vmem:[%s3147_s0 + $0x8c] sm:$0xf0] }
  0x17   :  { %1004 = vmatpush.bf16.msra.mxu1 %v2168_v21  ;;  %v1613_v15 = vor.u32 %v2075_v10, %v1610_v11  ;;  %v2078_v18 = vld [vmem:[%s3147_s0 + $0x84] sm:$0xf]  ;;  %v1618_v19 = vld [vmem:[%s3147_s0 + $0x90] sm:$0xf0]  ;;  %v1624_v20 = vld [vmem:[%s3147_s0 + $0x88] sm:$0xf] }
  0x18   :  { %1137 = vmatpush.bf16.msra.mxu2 %v2176_v22  ;;  %v2081_v21 = vld [vmem:[%s3147_s0 + $0x94] sm:$0xf0]  ;;  %v2079_v22 = vld [vmem:[%s3147_s0 + $0x8c] sm:$0xf]  ;;  %v1640_v32 = vld [vmem:[%s3147_s0 + $0xa8] sm:$0xf] }
  0x19   :  { %1270 = vmatpush.bf16.msra.mxu3 %v2184_v23  ;;  %v1626_v23 = vld [vmem:[%s3147_s0 + $0x98] sm:$0xf0]  ;;  %v2085_v33 = vld [vmem:[%s3147_s0 + $0xb4] sm:$0xf0]  ;;  %v2083_v34 = vld [vmem:[%s3147_s0 + $0xac] sm:$0xf] }
  0x1a   :  { %872 = vmatpush.bf16.msra.mxu0 %v2159_v24  ;;  %v1617_v24 = vor.u32 %v2080_v17, %v1616_v16  ;;  %v1642_v35 = vld [vmem:[%s3147_s0 + $0xb8] sm:$0xf0]  ;;  %v1641_v38 = vor.u32 %v2085_v33, %v1640_v32  ;;  %v1656_v44 = vld [vmem:[%s3147_s0 + $0xc8] sm:$0xf]  ;;  %v2089_v45 = vld [vmem:[%s3147_s0 + $0xd4] sm:$0xf0] }
  0x1b   :  { %1005 = vmatpush.bf16.msra.mxu1 %v2167_v25  ;;  %v1621_v25 = vor.u32 %v2078_v18, %v1618_v19  ;;  %v1645_v39 = vor.u32 %v2083_v34, %v1642_v35  ;;  %v2087_v46 = vld [vmem:[%s3147_s0 + $0xcc] sm:$0xf]  ;;  %v1658_v47 = vld [vmem:[%s3147_s0 + $0xd8] sm:$0xf0]  ;;  %v1657_v50 = vor.u32 %v2089_v45, %v1656_v44  ;;  %v1672_v56 = vld [vmem:[%s3147_s0 + $0xe8] sm:$0xf] }
  0x1c   :  { %1138 = vmatpush.bf16.msra.mxu2 %v2175_v26  ;;  %v1625_v26 = vor.u32 %v2081_v21, %v1624_v20  ;;  %v1661_v51 = vor.u32 %v2087_v46, %v1658_v47  ;;  %v2093_v57 = vld [vmem:[%s3147_s0 + $0xf4] sm:$0xf0]  ;;  %v2091_v58 = vld [vmem:[%s3147_s0 + $0xec] sm:$0xf]  ;;  %v1674_v59 = vld [vmem:[%s3147_s0 + $0xf8] sm:$0xf0] }
  0x1d   :  { %1271 = vmatpush.bf16.msra.mxu3 %v2183_v27  ;;  %v1629_v27 = vor.u32 %v2079_v22, %v1626_v23  ;;  %v1673_v62 = vor.u32 %v2093_v57, %v1672_v56  ;;  %v1677_v63 = vor.u32 %v2091_v58, %v1674_v59  ;;  %v1682_v4 = vld [vmem:[%s3147_s0 + $0x110] sm:$0xf0]  ;;  %v1688_v5 = vld [vmem:[%s3147_s0 + $0x108] sm:$0xf]  ;;  %v2097_v6 = vld [vmem:[%s3147_s0 + $0x114] sm:$0xf0] }
  0x1e   :  { %873 = vmatpush.bf16.msra.mxu0 %v2158_v28  ;;  %v1632_v28 = vld [vmem:[%s3147_s0 + $0xa0] sm:$0xf]  ;;  %v2095_v7 = vld [vmem:[%s3147_s0 + $0x10c] sm:$0xf]  ;;  %v1690_v8 = vld [vmem:[%s3147_s0 + $0x118] sm:$0xf0] }
  0x1f   :  { %1006 = vmatpush.bf16.msra.mxu1 %v2166_v29  ;;  %v2084_v29 = vld [vmem:[%s3147_s0 + $0xac] sm:$0xf0]  ;;  %v1706_v32 = vld [vmem:[%s3147_s0 + $0x138] sm:$0xf0]  ;;  %v1712_v56 = vld [vmem:[%s3147_s0 + $0x140] sm:$0xf] }
  0x20   :  { %1139 = vmatpush.bf16.msra.mxu2 %v2174_v30  ;;  %v2082_v30 = vld [vmem:[%s3147_s0 + $0xa4] sm:$0xf]  ;;  %v1633_v36 = vor.u32 %v2084_v29, %v1632_v28  ;;  %v1698_v28 = vld [vmem:[%s3147_s0 + $0x130] sm:$0xf0]  ;;  %v1704_v29 = vld [vmem:[%s3147_s0 + $0x128] sm:$0xf] }
  0x21   :  { %1272 = vmatpush.bf16.msra.mxu3 %v2182_v31  ;;  %874 = vmatmul.bf16.vlgmr.msra.gmra.mxu0 %v1553_v40  ;;  %v1634_v31 = vld [vmem:[%s3147_s0 + $0xb0] sm:$0xf0]  ;;  %v1648_v40 = vld [vmem:[%s3147_s0 + $0xc0] sm:$0xf]  ;;  %v2104_v57 = vld [vmem:[%s3147_s0 + $0x14c] sm:$0xf0] }
  0x22   :  { %1007 = vmatmul.bf16.vlgmr.msra.gmra.mxu1 %v1557_v41  ;;  %v1637_v37 = vor.u32 %v2082_v30, %v1634_v31  ;;  %v2088_v41 = vld [vmem:[%s3147_s0 + $0xcc] sm:$0xf0]  ;;  %v2101_v30 = vld [vmem:[%s3147_s0 + $0x134] sm:$0xf0]  ;;  %v2099_v31 = vld [vmem:[%s3147_s0 + $0x12c] sm:$0xf] }
  0x23   :  { %1140 = vmatmul.bf16.vlgmr.msra.gmra.mxu2 %v1561_v42  ;;  %v2086_v42 = vld [vmem:[%s3147_s0 + $0xc4] sm:$0xf]  ;;  %v1649_v48 = vor.u32 %v2088_v41, %v1648_v40 }
  0x24   :  { %1273 = vmatmul.bf16.vlgmr.msra.gmra.mxu3 %v1565_v43  ;;  %v1650_v43 = vld [vmem:[%s3147_s0 + $0xd0] sm:$0xf0]  ;;  %v2102_v58 = vld [vmem:[%s3147_s0 + $0x144] sm:$0xf] }
  0x25   :  { %v1653_v49 = vor.u32 %v2086_v42, %v1650_v43  ;;  %v1705_v42 = vor.u32 %v2101_v30, %v1704_v29  ;;  %v1709_v43 = vor.u32 %v2099_v31, %v1706_v32  ;;  %v1730_v29 = vld [vmem:[%s3147_s0 + $0x170] sm:$0xf0]  ;;  %v1736_v30 = vld [vmem:[%s3147_s0 + $0x168] sm:$0xf]  ;;  %v2109_v31 = vld [vmem:[%s3147_s0 + $0x174] sm:$0xf0] }
  0x26   :  { %v2107_v32 = vld [vmem:[%s3147_s0 + $0x16c] sm:$0xf] }
  0x31   :  { %879 = vmatmul.bf16.gmra.mxu0 %v1569_v52  ;;  %v1664_v52 = vld [vmem:[%s3147_s0 + $0xe0] sm:$0xf] }
  0x32   :  { %1012 = vmatmul.bf16.gmra.mxu1 %v1573_v53  ;;  %v2092_v53 = vld [vmem:[%s3147_s0 + $0xec] sm:$0xf0] }
  0x33   :  { %1145 = vmatmul.bf16.gmra.mxu2 %v1577_v54  ;;  %v2090_v54 = vld [vmem:[%s3147_s0 + $0xe4] sm:$0xf]  ;;  %v1665_v60 = vor.u32 %v2092_v53, %v1664_v52 }
  0x34   :  { %1278 = vmatmul.bf16.gmra.mxu3 %v1581_v55  ;;  %v1666_v55 = vld [vmem:[%s3147_s0 + $0xf0] sm:$0xf0] }
  0x35   :  { %v1669_v61 = vor.u32 %v2090_v54, %v1666_v55 }
  0x41   :  { %884 = vmatmul.bf16.gmra.mxu0 %v1585_v0  ;;  %v2503_v0 = vld [vmem:[%s3146_s2] ss:$0 sm:$0xff] }
  0x42   :  { %1017 = vmatmul.bf16.gmra.mxu1 %v1589_v1  ;;  %v1680_v1 = vld [vmem:[%s3147_s0 + $0x100] sm:$0xf] }
  0x43   :  { %1150 = vmatmul.bf16.gmra.mxu2 %v1593_v2  ;;  %v2096_v2 = vld [vmem:[%s3147_s0 + $0x10c] sm:$0xf0] }
  0x44   :  { %1283 = vmatmul.bf16.gmra.mxu3 %v1597_v3  ;;  %v2094_v3 = vld [vmem:[%s3147_s0 + $0x104] sm:$0xf]  ;;  %v1681_v9 = vor.u32 %v2096_v2, %v1680_v1  ;;  %v1722_v1 = vld [vmem:[%s3147_s0 + $0x158] sm:$0xf0] }
  0x45   :  { %v1685_v10 = vor.u32 %v2094_v3, %v1682_v4 }
  0x51   :  { %889 = vmatmul.bf16.gmra.mxu0 %v1601_v12 }
  0x52   :  { %1022 = vmatmul.bf16.gmra.mxu1 %v1605_v13  ;;  %v1689_v13 = vor.u32 %v2097_v6, %v1688_v5  ;;  %v1713_v6 = vor.u32 %v2104_v57, %v1712_v56  ;;  %v1744_v57 = vld [vmem:[%s3147_s0 + $0x180] sm:$0xf] }
  0x53   :  { %1155 = vmatmul.bf16.gmra.mxu2 %v1609_v14  ;;  %v1693_v14 = vor.u32 %v2095_v7, %v1690_v8 }
  0x54   :  { %1288 = vmatmul.bf16.gmra.mxu3 %v1613_v15 }
  0x61   :  { %894 = vmatmul.bf16.gmra.mxu0 %v1617_v24  ;;  %v1696_v24 = vld [vmem:[%s3147_s0 + $0x120] sm:$0xf] }
  0x62   :  { %1027 = vmatmul.bf16.gmra.mxu1 %v1621_v25  ;;  %v2100_v25 = vld [vmem:[%s3147_s0 + $0x12c] sm:$0xf0] }
  0x63   :  { %1160 = vmatmul.bf16.gmra.mxu2 %v1625_v26  ;;  %v2098_v26 = vld [vmem:[%s3147_s0 + $0x124] sm:$0xf] }
  0x64   :  { %1293 = vmatmul.bf16.gmra.mxu3 %v1629_v27 }
  0x71   :  { %899 = vmatmul.bf16.gmra.mxu0 %v1633_v36 }
  0x72   :  { %1032 = vmatmul.bf16.gmra.mxu1 %v1637_v37  ;;  %v1697_v37 = vor.u32 %v2100_v25, %v1696_v24  ;;  %v1728_v25 = vld [vmem:[%s3147_s0 + $0x160] sm:$0xf] }
  0x73   :  { %1165 = vmatmul.bf16.gmra.mxu2 %v1641_v38  ;;  %v1701_v38 = vor.u32 %v2098_v26, %v1698_v28  ;;  %v2108_v26 = vld [vmem:[%s3147_s0 + $0x16c] sm:$0xf0] }
  0x74   :  { %1298 = vmatmul.bf16.gmra.mxu3 %v1645_v39 }
  0x81   :  { %904 = vmatmul.bf16.gmra.mxu0 %v1649_v48 }
  0x82   :  { %1037 = vmatmul.bf16.gmra.mxu1 %v1653_v49 }
  0x83   :  { %1170 = vmatmul.bf16.gmra.mxu2 %v1657_v50 }
  0x84   :  { %1303 = vmatmul.bf16.gmra.mxu3 %v1661_v51 }
  0x91   :  { %909 = vmatmul.bf16.gmra.mxu0 %v1665_v60  ;;  %v1714_v60 = vld [vmem:[%s3147_s0 + $0x150] sm:$0xf0] }
  0x92   :  { %1042 = vmatmul.bf16.gmra.mxu1 %v1669_v61  ;;  %v1720_v61 = vld [vmem:[%s3147_s0 + $0x148] sm:$0xf]  ;;  %v1717_v7 = vor.u32 %v2102_v58, %v1714_v60  ;;  %v2112_v58 = vld [vmem:[%s3147_s0 + $0x18c] sm:$0xf0] }
  0x93   :  { %1175 = vmatmul.bf16.gmra.mxu2 %v1673_v62  ;;  %v2105_v62 = vld [vmem:[%s3147_s0 + $0x154] sm:$0xf0] }
  0x94   :  { %1308 = vmatmul.bf16.gmra.mxu3 %v1677_v63  ;;  %v2103_v63 = vld [vmem:[%s3147_s0 + $0x14c] sm:$0xf] }
  0x9e   :  { %v875_v11 = vpop.f32.mrf.mxu0 }
  0x9f   :  { %v1008_v12 = vpop.f32.mrf.mxu1  ;;  %v876_v15 = vadd.f32 %v2503_v0, %v875_v11  ;;  %v1721_v11 = vor.u32 %v2105_v62, %v1720_v61  ;;  %v1746_v61 = vld [vmem:[%s3147_s0 + $0x190] sm:$0xf0]  ;;  %v1752_v62 = vld [vmem:[%s3147_s0 + $0x188] sm:$0xf] }
  0xa1   :  { %914 = vmatmul.bf16.gmra.mxu0 %v1681_v9  ;;  %v1009_v16 = vadd.f32 %v1008_v12, %v876_v15  ;;  %v1725_v12 = vor.u32 %v2103_v63, %v1722_v1  ;;  %v2113_v63 = vld [vmem:[%s3147_s0 + $0x194] sm:$0xf0]  ;;  %v2111_v1 = vld [vmem:[%s3147_s0 + $0x18c] sm:$0xf] }
  0xa2   :  { %1047 = vmatmul.bf16.gmra.mxu1 %v1685_v10 }
  0xa3   :  { %1180 = vmatmul.bf16.gmra.mxu2 %v1689_v13 }
  0xa4   :  { %1313 = vmatmul.bf16.gmra.mxu3 %v1693_v14 }
  0xa6   :  { %v1141_v17 = vpop.f32.mrf.mxu2  ;;  %v877_v20 = vpop.f32.mrf.mxu0 }
  0xa7   :  { %v1274_v18 = vpop.f32.mrf.mxu3  ;;  %v1142_v19 = vadd.f32 %v1141_v17, %v1009_v16  ;;  %v1010_v21 = vpop.f32.mrf.mxu1  ;;  %v878_v23 = vadd.f32 %v2503_v0, %v877_v20 }
  0xa9   :  { %v1275_v22 = vadd.f32 %v1274_v18, %v1142_v19  ;;  %v1011_v34 = vadd.f32 %v1010_v21, %v878_v23 }
  0xab   :  { %v1398_v27 = vmax.f32 %v1275_v22, 0.0 }
  0xad   :  { %v1447_v33 = vpack.c.bf16 %v1398_v27, %v1398_v27  ;;  %v2106_v27 = vld [vmem:[%s3147_s0 + $0x164] sm:$0xf] }
  0xae   :  { %v1143_v35 = vpop.f32.mrf.mxu2  ;;  %v880_v40 = vpop.f32.mrf.mxu0 }
  0xaf   :  { %v1276_v36 = vpop.f32.mrf.mxu3  ;;  %1497 = vst.msk [vmem:[%s3148_s3] sm:$0xf] %vm1496_vm0, %v1447_v33  ;;  %v1144_v39 = vadd.f32 %v1143_v35, %v1011_v34  ;;  %v1013_v41 = vpop.f32.mrf.mxu1  ;;  %v881_v44 = vadd.f32 %v2503_v0, %v880_v40  ;;  %v1738_v33 = vld [vmem:[%s3147_s0 + $0x178] sm:$0xf0] }
  0xb1   :  { %v1277_v45 = vadd.f32 %v1276_v36, %v1144_v39  ;;  %919 = vmatmul.bf16.gmra.mxu0 %v1697_v37  ;;  %v1014_v47 = vadd.f32 %v1013_v41, %v881_v44  ;;  %v1733_v39 = vor.u32 %v2106_v27, %v1730_v29  ;;  %v1741_v44 = vor.u32 %v2107_v32, %v1738_v33  ;;  %v2116_v27 = vld [vmem:[%s3147_s0 + $0x1ac] sm:$0xf0]  ;;  %v2117_v32 = vld [vmem:[%s3147_s0 + $0x1b4] sm:$0xf0]  ;;  %v2115_v33 = vld [vmem:[%s3147_s0 + $0x1ac] sm:$0xf] }
  0xb2   :  { %1052 = vmatmul.bf16.gmra.mxu1 %v1701_v38  ;;  %v1729_v38 = vor.u32 %v2108_v26, %v1728_v25  ;;  %v1760_v26 = vld [vmem:[%s3147_s0 + $0x1a0] sm:$0xf] }
  0xb3   :  { %v1399_v46 = vmax.f32 %v1277_v45, 0.0  ;;  %1185 = vmatmul.bf16.gmra.mxu2 %v1705_v42 }
  0xb4   :  { %1318 = vmatmul.bf16.gmra.mxu3 %v1709_v43  ;;  %v1737_v43 = vor.u32 %v2109_v31, %v1736_v30  ;;  %v1762_v30 = vld [vmem:[%s3147_s0 + $0x1b0] sm:$0xf0]  ;;  %v1768_v31 = vld [vmem:[%s3147_s0 + $0x1a8] sm:$0xf] }
  0xb5   :  { %v1448_v48 = vpack.c.bf16 %v1399_v46, %v1399_v46 }
  0xb6   :  { %v1146_v49 = vpop.f32.mrf.mxu2  ;;  %v882_v52 = vpop.f32.mrf.mxu0 }
  0xb7   :  { %v1279_v50 = vpop.f32.mrf.mxu3  ;;  %1498 = vst.msk [vmem:[%s3148_s3 + $0x4] sm:$0xf] %vm1496_vm0, %v1448_v48  ;;  %v1147_v51 = vadd.f32 %v1146_v49, %v1014_v47  ;;  %v1015_v53 = vpop.f32.mrf.mxu1  ;;  %v883_v55 = vadd.f32 %v2503_v0, %v882_v52 }
  0xb9   :  { %v1280_v54 = vadd.f32 %v1279_v50, %v1147_v51  ;;  %v1016_v3 = vadd.f32 %v1015_v53, %v883_v55 }
  0xbb   :  { %v1400_v59 = vmax.f32 %v1280_v54, 0.0 }
  0xbd   :  { %v1449_v2 = vpack.c.bf16 %v1400_v59, %v1400_v59  ;;  %v2110_v59 = vld [vmem:[%s3147_s0 + $0x184] sm:$0xf] }
  0xbe   :  { %v1148_v4 = vpop.f32.mrf.mxu2  ;;  %v885_v9 = vpop.f32.mrf.mxu0 }
  0xbf   :  { %v1281_v5 = vpop.f32.mrf.mxu3  ;;  %1499 = vst.msk [vmem:[%s3148_s3 + $0x8] sm:$0xf] %vm1496_vm0, %v1449_v2  ;;  %v1149_v8 = vadd.f32 %v1148_v4, %v1016_v3  ;;  %v1018_v10 = vpop.f32.mrf.mxu1  ;;  %v886_v13 = vadd.f32 %v2503_v0, %v885_v9  ;;  %v1754_v2 = vld [vmem:[%s3147_s0 + $0x198] sm:$0xf0] }
  0xc1   :  { %v1282_v14 = vadd.f32 %v1281_v5, %v1149_v8  ;;  %924 = vmatmul.bf16.gmra.mxu0 %v1713_v6  ;;  %v1019_v16 = vadd.f32 %v1018_v10, %v886_v13  ;;  %v1749_v8 = vor.u32 %v2110_v59, %v1746_v61  ;;  %v1757_v13 = vor.u32 %v2111_v1, %v1754_v2  ;;  %v2120_v59 = vld [vmem:[%s3147_s0 + $0x1cc] sm:$0xf0]  ;;  %v2121_v1 = vld [vmem:[%s3147_s0 + $0x1d4] sm:$0xf0]  ;;  %v2119_v2 = vld [vmem:[%s3147_s0 + $0x1cc] sm:$0xf] }
  0xc2   :  { %1057 = vmatmul.bf16.gmra.mxu1 %v1717_v7  ;;  %v1745_v7 = vor.u32 %v2112_v58, %v1744_v57  ;;  %v1776_v58 = vld [vmem:[%s3147_s0 + $0x1c0] sm:$0xf] }
  0xc3   :  { %v1401_v15 = vmax.f32 %v1282_v14, 0.0  ;;  %1190 = vmatmul.bf16.gmra.mxu2 %v1721_v11 }
  0xc4   :  { %1323 = vmatmul.bf16.gmra.mxu3 %v1725_v12  ;;  %v1753_v12 = vor.u32 %v2113_v63, %v1752_v62  ;;  %v1778_v62 = vld [vmem:[%s3147_s0 + $0x1d0] sm:$0xf0]  ;;  %v1784_v63 = vld [vmem:[%s3147_s0 + $0x1c8] sm:$0xf] }
  0xc5   :  { %v1450_v17 = vpack.c.bf16 %v1401_v15, %v1401_v15 }
  0xc6   :  { %v1151_v18 = vpop.f32.mrf.mxu2  ;;  %v887_v21 = vpop.f32.mrf.mxu0 }
  0xc7   :  { %v1284_v19 = vpop.f32.mrf.mxu3  ;;  %1500 = vst.msk [vmem:[%s3148_s3 + $0xc] sm:$0xf] %vm1496_vm0, %v1450_v17  ;;  %v1152_v20 = vadd.f32 %v1151_v18, %v1019_v16  ;;  %v1020_v22 = vpop.f32.mrf.mxu1  ;;  %v888_v24 = vadd.f32 %v2503_v0, %v887_v21 }
  0xc9   :  { %v1285_v23 = vadd.f32 %v1284_v19, %v1152_v20  ;;  %v1021_v35 = vadd.f32 %v1020_v22, %v888_v24 }
  0xcb   :  { %v1402_v28 = vmax.f32 %v1285_v23, 0.0 }
  0xcd   :  { %v1451_v34 = vpack.c.bf16 %v1402_v28, %v1402_v28  ;;  %v2114_v28 = vld [vmem:[%s3147_s0 + $0x1a4] sm:$0xf] }
  0xce   :  { %v1153_v36 = vpop.f32.mrf.mxu2  ;;  %v890_v41 = vpop.f32.mrf.mxu0 }
  0xcf   :  { %v1286_v37 = vpop.f32.mrf.mxu3  ;;  %1501 = vst.msk [vmem:[%s3148_s3 + $0x10] sm:$0xf] %vm1496_vm0, %v1451_v34  ;;  %v1154_v40 = vadd.f32 %v1153_v36, %v1021_v35  ;;  %v1023_v42 = vpop.f32.mrf.mxu1  ;;  %v891_v45 = vadd.f32 %v2503_v0, %v890_v41  ;;  %v1770_v34 = vld [vmem:[%s3147_s0 + $0x1b8] sm:$0xf0] }
  0xd1   :  { %v1287_v46 = vadd.f32 %v1286_v37, %v1154_v40  ;;  %929 = vmatmul.bf16.gmra.mxu0 %v1729_v38  ;;  %v1024_v48 = vadd.f32 %v1023_v42, %v891_v45  ;;  %v1765_v40 = vor.u32 %v2114_v28, %v1762_v30  ;;  %v1773_v45 = vor.u32 %v2115_v33, %v1770_v34  ;;  %v2124_v28 = vld [vmem:[%s3147_s0 + $0x1ec] sm:$0xf0]  ;;  %v2125_v33 = vld [vmem:[%s3147_s0 + $0x1f4] sm:$0xf0]  ;;  %v2123_v34 = vld [vmem:[%s3147_s0 + $0x1ec] sm:$0xf] }
  0xd2   :  { %1062 = vmatmul.bf16.gmra.mxu1 %v1733_v39  ;;  %v1761_v39 = vor.u32 %v2116_v27, %v1760_v26  ;;  %v1792_v27 = vld [vmem:[%s3147_s0 + $0x1e0] sm:$0xf] }
  0xd3   :  { %v1403_v47 = vmax.f32 %v1287_v46, 0.0  ;;  %1195 = vmatmul.bf16.gmra.mxu2 %v1737_v43 }
  0xd4   :  { %1328 = vmatmul.bf16.gmra.mxu3 %v1741_v44  ;;  %v1769_v44 = vor.u32 %v2117_v32, %v1768_v31  ;;  %v1794_v31 = vld [vmem:[%s3147_s0 + $0x1f0] sm:$0xf0]  ;;  %v1800_v32 = vld [vmem:[%s3147_s0 + $0x1e8] sm:$0xf] }
  0xd5   :  { %v1452_v49 = vpack.c.bf16 %v1403_v47, %v1403_v47 }
  0xd6   :  { %v1156_v50 = vpop.f32.mrf.mxu2  ;;  %v892_v53 = vpop.f32.mrf.mxu0 }
  0xd7   :  { %v1289_v51 = vpop.f32.mrf.mxu3  ;;  %1502 = vst.msk [vmem:[%s3148_s3 + $0x14] sm:$0xf] %vm1496_vm0, %v1452_v49  ;;  %v1157_v52 = vadd.f32 %v1156_v50, %v1024_v48  ;;  %v1025_v54 = vpop.f32.mrf.mxu1  ;;  %v893_v56 = vadd.f32 %v2503_v0, %v892_v53 }
  0xd9   :  { %v1290_v55 = vadd.f32 %v1289_v51, %v1157_v52  ;;  %v1026_v4 = vadd.f32 %v1025_v54, %v893_v56 }
  0xdb   :  { %v1404_v60 = vmax.f32 %v1290_v55, 0.0 }
  0xdd   :  { %v1453_v3 = vpack.c.bf16 %v1404_v60, %v1404_v60  ;;  %v2118_v60 = vld [vmem:[%s3147_s0 + $0x1c4] sm:$0xf] }
  0xde   :  { %v1158_v5 = vpop.f32.mrf.mxu2  ;;  %v895_v10 = vpop.f32.mrf.mxu0 }
  0xdf   :  { %v1291_v6 = vpop.f32.mrf.mxu3  ;;  %1503 = vst.msk [vmem:[%s3148_s3 + $0x18] sm:$0xf] %vm1496_vm0, %v1453_v3  ;;  %v1159_v9 = vadd.f32 %v1158_v5, %v1026_v4  ;;  %v1028_v11 = vpop.f32.mrf.mxu1  ;;  %v896_v14 = vadd.f32 %v2503_v0, %v895_v10  ;;  %v1786_v3 = vld [vmem:[%s3147_s0 + $0x1d8] sm:$0xf0] }
  0xe1   :  { %v1292_v15 = vadd.f32 %v1291_v6, %v1159_v9  ;;  %934 = vmatmul.bf16.gmra.mxu0 %v1745_v7  ;;  %v1029_v17 = vadd.f32 %v1028_v11, %v896_v14  ;;  %v1781_v9 = vor.u32 %v2118_v60, %v1778_v62  ;;  %v1789_v14 = vor.u32 %v2119_v2, %v1786_v3  ;;  %v2128_v60 = vld [vmem:[%s3147_s0 + $0x20c] sm:$0xf0]  ;;  %v2129_v2 = vld [vmem:[%s3147_s0 + $0x214] sm:$0xf0]  ;;  %v2127_v3 = vld [vmem:[%s3147_s0 + $0x20c] sm:$0xf] }
  0xe2   :  { %1067 = vmatmul.bf16.gmra.mxu1 %v1749_v8  ;;  %v1777_v8 = vor.u32 %v2120_v59, %v1776_v58  ;;  %v1808_v59 = vld [vmem:[%s3147_s0 + $0x200] sm:$0xf] }
  0xe3   :  { %v1405_v16 = vmax.f32 %v1292_v15, 0.0  ;;  %1200 = vmatmul.bf16.gmra.mxu2 %v1753_v12 }
  0xe4   :  { %1333 = vmatmul.bf16.gmra.mxu3 %v1757_v13  ;;  %v1785_v13 = vor.u32 %v2121_v1, %v1784_v63  ;;  %v1810_v63 = vld [vmem:[%s3147_s0 + $0x210] sm:$0xf0]  ;;  %v1816_v1 = vld [vmem:[%s3147_s0 + $0x208] sm:$0xf] }
  0xe5   :  { %v1454_v18 = vpack.c.bf16 %v1405_v16, %v1405_v16 }
  0xe6   :  { %v1161_v19 = vpop.f32.mrf.mxu2  ;;  %v897_v22 = vpop.f32.mrf.mxu0 }
  0xe7   :  { %v1294_v20 = vpop.f32.mrf.mxu3  ;;  %1504 = vst.msk [vmem:[%s3148_s3 + $0x1c] sm:$0xf] %vm1496_vm0, %v1454_v18  ;;  %v1162_v21 = vadd.f32 %v1161_v19, %v1029_v17  ;;  %v1030_v23 = vpop.f32.mrf.mxu1  ;;  %v898_v25 = vadd.f32 %v2503_v0, %v897_v22 }
  0xe9   :  { %v1295_v24 = vadd.f32 %v1294_v20, %v1162_v21  ;;  %v1031_v36 = vadd.f32 %v1030_v23, %v898_v25 }
  0xeb   :  { %v1406_v29 = vmax.f32 %v1295_v24, 0.0 }
  0xed   :  { %v1455_v35 = vpack.c.bf16 %v1406_v29, %v1406_v29  ;;  %v2122_v29 = vld [vmem:[%s3147_s0 + $0x1e4] sm:$0xf] }
  0xee   :  { %v1163_v37 = vpop.f32.mrf.mxu2  ;;  %v900_v42 = vpop.f32.mrf.mxu0 }
  0xef   :  { %v1296_v38 = vpop.f32.mrf.mxu3  ;;  %1505 = vst.msk [vmem:[%s3148_s3 + $0x20] sm:$0xf] %vm1496_vm0, %v1455_v35  ;;  %v1164_v41 = vadd.f32 %v1163_v37, %v1031_v36  ;;  %v1033_v43 = vpop.f32.mrf.mxu1  ;;  %v901_v46 = vadd.f32 %v2503_v0, %v900_v42  ;;  %v1802_v35 = vld [vmem:[%s3147_s0 + $0x1f8] sm:$0xf0] }
  0xf1   :  { %v1297_v47 = vadd.f32 %v1296_v38, %v1164_v41  ;;  %939 = vmatmul.bf16.gmra.mxu0 %v1761_v39  ;;  %v1034_v49 = vadd.f32 %v1033_v43, %v901_v46  ;;  %v1797_v41 = vor.u32 %v2122_v29, %v1794_v31  ;;  %v1805_v46 = vor.u32 %v2123_v34, %v1802_v35  ;;  %v2132_v29 = vld [vmem:[%s3147_s0 + $0x22c] sm:$0xf0]  ;;  %v2133_v34 = vld [vmem:[%s3147_s0 + $0x234] sm:$0xf0]  ;;  %v2131_v35 = vld [vmem:[%s3147_s0 + $0x22c] sm:$0xf] }
  0xf2   :  { %1072 = vmatmul.bf16.gmra.mxu1 %v1765_v40  ;;  %v1793_v40 = vor.u32 %v2124_v28, %v1792_v27  ;;  %v1824_v28 = vld [vmem:[%s3147_s0 + $0x220] sm:$0xf] }
  0xf3   :  { %v1407_v48 = vmax.f32 %v1297_v47, 0.0  ;;  %1205 = vmatmul.bf16.gmra.mxu2 %v1769_v44 }
  0xf4   :  { %1338 = vmatmul.bf16.gmra.mxu3 %v1773_v45  ;;  %v1801_v45 = vor.u32 %v2125_v33, %v1800_v32  ;;  %v1826_v32 = vld [vmem:[%s3147_s0 + $0x230] sm:$0xf0]  ;;  %v1832_v33 = vld [vmem:[%s3147_s0 + $0x228] sm:$0xf] }
  0xf5   :  { %v1456_v50 = vpack.c.bf16 %v1407_v48, %v1407_v48 }
  0xf6   :  { %v1166_v51 = vpop.f32.mrf.mxu2  ;;  %v902_v54 = vpop.f32.mrf.mxu0 }
  0xf7   :  { %v1299_v52 = vpop.f32.mrf.mxu3  ;;  %1506 = vst.msk [vmem:[%s3148_s3 + $0x24] sm:$0xf] %vm1496_vm0, %v1456_v50  ;;  %v1167_v53 = vadd.f32 %v1166_v51, %v1034_v49  ;;  %v1035_v55 = vpop.f32.mrf.mxu1  ;;  %v903_v57 = vadd.f32 %v2503_v0, %v902_v54 }
  0xf9   :  { %v1300_v56 = vadd.f32 %v1299_v52, %v1167_v53  ;;  %v1036_v5 = vadd.f32 %v1035_v55, %v903_v57 }
  0xfb   :  { %v1408_v61 = vmax.f32 %v1300_v56, 0.0 }
  0xfd   :  { %v1457_v4 = vpack.c.bf16 %v1408_v61, %v1408_v61  ;;  %v2126_v61 = vld [vmem:[%s3147_s0 + $0x204] sm:$0xf] }
  0xfe   :  { %v1168_v6 = vpop.f32.mrf.mxu2  ;;  %v905_v11 = vpop.f32.mrf.mxu0 }
  0xff   :  { %v1301_v7 = vpop.f32.mrf.mxu3  ;;  %1507 = vst.msk [vmem:[%s3148_s3 + $0x28] sm:$0xf] %vm1496_vm0, %v1457_v4  ;;  %v1169_v10 = vadd.f32 %v1168_v6, %v1036_v5  ;;  %v1038_v12 = vpop.f32.mrf.mxu1  ;;  %v906_v15 = vadd.f32 %v2503_v0, %v905_v11  ;;  %v1818_v4 = vld [vmem:[%s3147_s0 + $0x218] sm:$0xf0] }
 0x101   :  { %v1302_v16 = vadd.f32 %v1301_v7, %v1169_v10  ;;  %944 = vmatmul.bf16.gmra.mxu0 %v1777_v8  ;;  %v1039_v18 = vadd.f32 %v1038_v12, %v906_v15  ;;  %v1813_v10 = vor.u32 %v2126_v61, %v1810_v63  ;;  %v1821_v15 = vor.u32 %v2127_v3, %v1818_v4  ;;  %v2136_v61 = vld [vmem:[%s3147_s0 + $0x24c] sm:$0xf0]  ;;  %v2137_v3 = vld [vmem:[%s3147_s0 + $0x254] sm:$0xf0]  ;;  %v2135_v4 = vld [vmem:[%s3147_s0 + $0x24c] sm:$0xf] }
 0x102   :  { %1077 = vmatmul.bf16.gmra.mxu1 %v1781_v9  ;;  %v1809_v9 = vor.u32 %v2128_v60, %v1808_v59  ;;  %v1840_v60 = vld [vmem:[%s3147_s0 + $0x240] sm:$0xf] }
 0x103   :  { %v1409_v17 = vmax.f32 %v1302_v16, 0.0  ;;  %1210 = vmatmul.bf16.gmra.mxu2 %v1785_v13 }
 0x104   :  { %1343 = vmatmul.bf16.gmra.mxu3 %v1789_v14  ;;  %v1817_v14 = vor.u32 %v2129_v2, %v1816_v1  ;;  %v1842_v1 = vld [vmem:[%s3147_s0 + $0x250] sm:$0xf0]  ;;  %v1848_v2 = vld [vmem:[%s3147_s0 + $0x248] sm:$0xf] }
 0x105   :  { %v1458_v19 = vpack.c.bf16 %v1409_v17, %v1409_v17 }
 0x106   :  { %v1171_v20 = vpop.f32.mrf.mxu2  ;;  %v907_v23 = vpop.f32.mrf.mxu0 }
 0x107   :  { %v1304_v21 = vpop.f32.mrf.mxu3  ;;  %1508 = vst.msk [vmem:[%s3148_s3 + $0x2c] sm:$0xf] %vm1496_vm0, %v1458_v19  ;;  %v1172_v22 = vadd.f32 %v1171_v20, %v1039_v18  ;;  %v1040_v24 = vpop.f32.mrf.mxu1  ;;  %v908_v26 = vadd.f32 %v2503_v0, %v907_v23 }
 0x109   :  { %v1305_v25 = vadd.f32 %v1304_v21, %v1172_v22  ;;  %v1041_v37 = vadd.f32 %v1040_v24, %v908_v26 }
 0x10b   :  { %v1410_v30 = vmax.f32 %v1305_v25, 0.0 }
 0x10d   :  { %v1459_v36 = vpack.c.bf16 %v1410_v30, %v1410_v30  ;;  %v2130_v30 = vld [vmem:[%s3147_s0 + $0x224] sm:$0xf] }
 0x10e   :  { %v1173_v38 = vpop.f32.mrf.mxu2  ;;  %v910_v43 = vpop.f32.mrf.mxu0 }
 0x10f   :  { %v1306_v39 = vpop.f32.mrf.mxu3  ;;  %1509 = vst.msk [vmem:[%s3148_s3 + $0x30] sm:$0xf] %vm1496_vm0, %v1459_v36  ;;  %v1174_v42 = vadd.f32 %v1173_v38, %v1041_v37  ;;  %v1043_v44 = vpop.f32.mrf.mxu1  ;;  %v911_v47 = vadd.f32 %v2503_v0, %v910_v43  ;;  %v1834_v36 = vld [vmem:[%s3147_s0 + $0x238] sm:$0xf0] }
 0x111   :  { %v1307_v48 = vadd.f32 %v1306_v39, %v1174_v42  ;;  %949 = vmatmul.bf16.gmra.mxu0 %v1793_v40  ;;  %v1044_v50 = vadd.f32 %v1043_v44, %v911_v47  ;;  %v1829_v42 = vor.u32 %v2130_v30, %v1826_v32  ;;  %v1837_v47 = vor.u32 %v2131_v35, %v1834_v36  ;;  %v2140_v30 = vld [vmem:[%s3147_s0 + $0x26c] sm:$0xf0]  ;;  %v2141_v35 = vld [vmem:[%s3147_s0 + $0x274] sm:$0xf0]  ;;  %v2139_v36 = vld [vmem:[%s3147_s0 + $0x26c] sm:$0xf] }
 0x112   :  { %1082 = vmatmul.bf16.gmra.mxu1 %v1797_v41  ;;  %v1825_v41 = vor.u32 %v2132_v29, %v1824_v28  ;;  %v1856_v29 = vld [vmem:[%s3147_s0 + $0x260] sm:$0xf] }
 0x113   :  { %v1411_v49 = vmax.f32 %v1307_v48, 0.0  ;;  %1215 = vmatmul.bf16.gmra.mxu2 %v1801_v45 }
 0x114   :  { %1348 = vmatmul.bf16.gmra.mxu3 %v1805_v46  ;;  %v1833_v46 = vor.u32 %v2133_v34, %v1832_v33  ;;  %v1858_v33 = vld [vmem:[%s3147_s0 + $0x270] sm:$0xf0]  ;;  %v1864_v34 = vld [vmem:[%s3147_s0 + $0x268] sm:$0xf] }
 0x115   :  { %v1460_v51 = vpack.c.bf16 %v1411_v49, %v1411_v49 }
 0x116   :  { %v1176_v52 = vpop.f32.mrf.mxu2  ;;  %v912_v55 = vpop.f32.mrf.mxu0 }
 0x117   :  { %v1309_v53 = vpop.f32.mrf.mxu3  ;;  %1510 = vst.msk [vmem:[%s3148_s3 + $0x34] sm:$0xf] %vm1496_vm0, %v1460_v51  ;;  %v1177_v54 = vadd.f32 %v1176_v52, %v1044_v50  ;;  %v1045_v56 = vpop.f32.mrf.mxu1  ;;  %v913_v58 = vadd.f32 %v2503_v0, %v912_v55 }
 0x119   :  { %v1310_v57 = vadd.f32 %v1309_v53, %v1177_v54  ;;  %v1046_v6 = vadd.f32 %v1045_v56, %v913_v58 }
 0x11b   :  { %v1412_v62 = vmax.f32 %v1310_v57, 0.0 }
 0x11d   :  { %v1461_v5 = vpack.c.bf16 %v1412_v62, %v1412_v62  ;;  %v2134_v62 = vld [vmem:[%s3147_s0 + $0x244] sm:$0xf] }
 0x11e   :  { %v1178_v7 = vpop.f32.mrf.mxu2  ;;  %v915_v12 = vpop.f32.mrf.mxu0 }
 0x11f   :  { %v1311_v8 = vpop.f32.mrf.mxu3  ;;  %1511 = vst.msk [vmem:[%s3148_s3 + $0x38] sm:$0xf] %vm1496_vm0, %v1461_v5  ;;  %v1179_v11 = vadd.f32 %v1178_v7, %v1046_v6  ;;  %v1048_v13 = vpop.f32.mrf.mxu1  ;;  %v916_v16 = vadd.f32 %v2503_v0, %v915_v12  ;;  %v1850_v5 = vld [vmem:[%s3147_s0 + $0x258] sm:$0xf0] }
 0x121   :  { %v1312_v17 = vadd.f32 %v1311_v8, %v1179_v11  ;;  %954 = vmatmul.bf16.gmra.mxu0 %v1809_v9  ;;  %v1049_v19 = vadd.f32 %v1048_v13, %v916_v16  ;;  %v1845_v11 = vor.u32 %v2134_v62, %v1842_v1  ;;  %v1853_v16 = vor.u32 %v2135_v4, %v1850_v5  ;;  %v2144_v62 = vld [vmem:[%s3147_s0 + $0x28c] sm:$0xf0]  ;;  %v2145_v4 = vld [vmem:[%s3147_s0 + $0x294] sm:$0xf0]  ;;  %v2143_v5 = vld [vmem:[%s3147_s0 + $0x28c] sm:$0xf] }
 0x122   :  { %1087 = vmatmul.bf16.gmra.mxu1 %v1813_v10  ;;  %v1841_v10 = vor.u32 %v2136_v61, %v1840_v60  ;;  %v1872_v61 = vld [vmem:[%s3147_s0 + $0x280] sm:$0xf] }
 0x123   :  { %v1413_v18 = vmax.f32 %v1312_v17, 0.0  ;;  %1220 = vmatmul.bf16.gmra.mxu2 %v1817_v14 }
 0x124   :  { %1353 = vmatmul.bf16.gmra.mxu3 %v1821_v15  ;;  %v1849_v15 = vor.u32 %v2137_v3, %v1848_v2  ;;  %v1874_v2 = vld [vmem:[%s3147_s0 + $0x290] sm:$0xf0]  ;;  %v1880_v3 = vld [vmem:[%s3147_s0 + $0x288] sm:$0xf] }
 0x125   :  { %v1462_v20 = vpack.c.bf16 %v1413_v18, %v1413_v18 }
 0x126   :  { %v1181_v21 = vpop.f32.mrf.mxu2  ;;  %v917_v24 = vpop.f32.mrf.mxu0 }
 0x127   :  { %v1314_v22 = vpop.f32.mrf.mxu3  ;;  %1512 = vst.msk [vmem:[%s3148_s3 + $0x3c] sm:$0xf] %vm1496_vm0, %v1462_v20  ;;  %v1182_v23 = vadd.f32 %v1181_v21, %v1049_v19  ;;  %v1050_v25 = vpop.f32.mrf.mxu1  ;;  %v918_v27 = vadd.f32 %v2503_v0, %v917_v24 }
 0x129   :  { %v1315_v26 = vadd.f32 %v1314_v22, %v1182_v23  ;;  %v1051_v38 = vadd.f32 %v1050_v25, %v918_v27 }
 0x12b   :  { %v1414_v31 = vmax.f32 %v1315_v26, 0.0 }
 0x12d   :  { %v1463_v37 = vpack.c.bf16 %v1414_v31, %v1414_v31  ;;  %v2138_v31 = vld [vmem:[%s3147_s0 + $0x264] sm:$0xf] }
 0x12e   :  { %v1183_v39 = vpop.f32.mrf.mxu2  ;;  %v920_v44 = vpop.f32.mrf.mxu0 }
 0x12f   :  { %v1316_v40 = vpop.f32.mrf.mxu3  ;;  %1513 = vst.msk [vmem:[%s3148_s3 + $0x40] sm:$0xf] %vm1496_vm0, %v1463_v37  ;;  %v1184_v43 = vadd.f32 %v1183_v39, %v1051_v38  ;;  %v1053_v45 = vpop.f32.mrf.mxu1  ;;  %v921_v48 = vadd.f32 %v2503_v0, %v920_v44  ;;  %v1866_v37 = vld [vmem:[%s3147_s0 + $0x278] sm:$0xf0] }
 0x131   :  { %v1317_v49 = vadd.f32 %v1316_v40, %v1184_v43  ;;  %959 = vmatmul.bf16.gmra.mxu0 %v1825_v41  ;;  %v1054_v51 = vadd.f32 %v1053_v45, %v921_v48  ;;  %v1861_v43 = vor.u32 %v2138_v31, %v1858_v33  ;;  %v1869_v48 = vor.u32 %v2139_v36, %v1866_v37  ;;  %v2148_v31 = vld [vmem:[%s3147_s0 + $0x2ac] sm:$0xf0]  ;;  %v2149_v36 = vld [vmem:[%s3147_s0 + $0x2b4] sm:$0xf0]  ;;  %v2147_v37 = vld [vmem:[%s3147_s0 + $0x2ac] sm:$0xf] }
 0x132   :  { %1092 = vmatmul.bf16.gmra.mxu1 %v1829_v42  ;;  %v1857_v42 = vor.u32 %v2140_v30, %v1856_v29  ;;  %v1888_v30 = vld [vmem:[%s3147_s0 + $0x2a0] sm:$0xf] }
 0x133   :  { %v1415_v50 = vmax.f32 %v1317_v49, 0.0  ;;  %1225 = vmatmul.bf16.gmra.mxu2 %v1833_v46 }
 0x134   :  { %1358 = vmatmul.bf16.gmra.mxu3 %v1837_v47  ;;  %v1865_v47 = vor.u32 %v2141_v35, %v1864_v34  ;;  %v1890_v34 = vld [vmem:[%s3147_s0 + $0x2b0] sm:$0xf0]  ;;  %v1896_v35 = vld [vmem:[%s3147_s0 + $0x2a8] sm:$0xf] }
 0x135   :  { %v1464_v52 = vpack.c.bf16 %v1415_v50, %v1415_v50 }
 0x136   :  { %v1186_v53 = vpop.f32.mrf.mxu2  ;;  %v922_v56 = vpop.f32.mrf.mxu0 }
 0x137   :  { %v1319_v54 = vpop.f32.mrf.mxu3  ;;  %1514 = vst.msk [vmem:[%s3148_s3 + $0x44] sm:$0xf] %vm1496_vm0, %v1464_v52  ;;  %v1187_v55 = vadd.f32 %v1186_v53, %v1054_v51  ;;  %v1055_v57 = vpop.f32.mrf.mxu1  ;;  %v923_v59 = vadd.f32 %v2503_v0, %v922_v56 }
 0x139   :  { %v1320_v58 = vadd.f32 %v1319_v54, %v1187_v55  ;;  %v1056_v7 = vadd.f32 %v1055_v57, %v923_v59 }
 0x13b   :  { %v1416_v63 = vmax.f32 %v1320_v58, 0.0 }
 0x13d   :  { %v1465_v6 = vpack.c.bf16 %v1416_v63, %v1416_v63  ;;  %v2142_v63 = vld [vmem:[%s3147_s0 + $0x284] sm:$0xf] }
 0x13e   :  { %v1188_v8 = vpop.f32.mrf.mxu2  ;;  %v925_v13 = vpop.f32.mrf.mxu0 }
 0x13f   :  { %v1321_v9 = vpop.f32.mrf.mxu3  ;;  %1515 = vst.msk [vmem:[%s3148_s3 + $0x48] sm:$0xf] %vm1496_vm0, %v1465_v6  ;;  %v1189_v12 = vadd.f32 %v1188_v8, %v1056_v7  ;;  %v1058_v14 = vpop.f32.mrf.mxu1  ;;  %v926_v17 = vadd.f32 %v2503_v0, %v925_v13  ;;  %v1882_v6 = vld [vmem:[%s3147_s0 + $0x298] sm:$0xf0] }
 0x141   :  { %v1322_v18 = vadd.f32 %v1321_v9, %v1189_v12  ;;  %964 = vmatmul.bf16.gmra.mxu0 %v1841_v10  ;;  %v1059_v20 = vadd.f32 %v1058_v14, %v926_v17  ;;  %v1877_v12 = vor.u32 %v2142_v63, %v1874_v2  ;;  %v1885_v17 = vor.u32 %v2143_v5, %v1882_v6  ;;  %v2152_v63 = vld [vmem:[%s3147_s0 + $0x2cc] sm:$0xf0]  ;;  %v2153_v5 = vld [vmem:[%s3147_s0 + $0x2d4] sm:$0xf0]  ;;  %v2151_v6 = vld [vmem:[%s3147_s0 + $0x2cc] sm:$0xf] }
 0x142   :  { %1097 = vmatmul.bf16.gmra.mxu1 %v1845_v11  ;;  %v1873_v11 = vor.u32 %v2144_v62, %v1872_v61  ;;  %v1904_v62 = vld [vmem:[%s3147_s0 + $0x2c0] sm:$0xf] }
 0x143   :  { %v1417_v19 = vmax.f32 %v1322_v18, 0.0  ;;  %1230 = vmatmul.bf16.gmra.mxu2 %v1849_v15 }
 0x144   :  { %1363 = vmatmul.bf16.gmra.mxu3 %v1853_v16  ;;  %v1881_v16 = vor.u32 %v2145_v4, %v1880_v3  ;;  %v1906_v3 = vld [vmem:[%s3147_s0 + $0x2d0] sm:$0xf0]  ;;  %v1912_v4 = vld [vmem:[%s3147_s0 + $0x2c8] sm:$0xf] }
 0x145   :  { %v1466_v21 = vpack.c.bf16 %v1417_v19, %v1417_v19 }
 0x146   :  { %v1191_v22 = vpop.f32.mrf.mxu2  ;;  %v927_v25 = vpop.f32.mrf.mxu0 }
 0x147   :  { %v1324_v23 = vpop.f32.mrf.mxu3  ;;  %1516 = vst.msk [vmem:[%s3148_s3 + $0x4c] sm:$0xf] %vm1496_vm0, %v1466_v21  ;;  %v1192_v24 = vadd.f32 %v1191_v22, %v1059_v20  ;;  %v1060_v26 = vpop.f32.mrf.mxu1  ;;  %v928_v28 = vadd.f32 %v2503_v0, %v927_v25 }
 0x149   :  { %v1325_v27 = vadd.f32 %v1324_v23, %v1192_v24  ;;  %v1061_v39 = vadd.f32 %v1060_v26, %v928_v28 }
 0x14b   :  { %v1418_v32 = vmax.f32 %v1325_v27, 0.0 }
 0x14d   :  { %v1467_v38 = vpack.c.bf16 %v1418_v32, %v1418_v32  ;;  %v2146_v32 = vld [vmem:[%s3147_s0 + $0x2a4] sm:$0xf] }
 0x14e   :  { %v1193_v40 = vpop.f32.mrf.mxu2  ;;  %v930_v45 = vpop.f32.mrf.mxu0 }
 0x14f   :  { %v1326_v41 = vpop.f32.mrf.mxu3  ;;  %1517 = vst.msk [vmem:[%s3148_s3 + $0x50] sm:$0xf] %vm1496_vm0, %v1467_v38  ;;  %v1194_v44 = vadd.f32 %v1193_v40, %v1061_v39  ;;  %v1063_v46 = vpop.f32.mrf.mxu1  ;;  %v931_v49 = vadd.f32 %v2503_v0, %v930_v45  ;;  %v1898_v38 = vld [vmem:[%s3147_s0 + $0x2b8] sm:$0xf0] }
 0x151   :  { %v1327_v50 = vadd.f32 %v1326_v41, %v1194_v44  ;;  %969 = vmatmul.bf16.gmra.mxu0 %v1857_v42  ;;  %v1064_v52 = vadd.f32 %v1063_v46, %v931_v49  ;;  %v1893_v44 = vor.u32 %v2146_v32, %v1890_v34  ;;  %v1901_v49 = vor.u32 %v2147_v37, %v1898_v38  ;;  %v2156_v32 = vld [vmem:[%s3147_s0 + $0x2ec] sm:$0xf0]  ;;  %v2157_v37 = vld [vmem:[%s3147_s0 + $0x2f4] sm:$0xf0]  ;;  %v2155_v38 = vld [vmem:[%s3147_s0 + $0x2ec] sm:$0xf] }
 0x152   :  { %1102 = vmatmul.bf16.gmra.mxu1 %v1861_v43  ;;  %v1889_v43 = vor.u32 %v2148_v31, %v1888_v30  ;;  %v1920_v31 = vld [vmem:[%s3147_s0 + $0x2e0] sm:$0xf] }
 0x153   :  { %v1419_v51 = vmax.f32 %v1327_v50, 0.0  ;;  %1235 = vmatmul.bf16.gmra.mxu2 %v1865_v47 }
 0x154   :  { %1368 = vmatmul.bf16.gmra.mxu3 %v1869_v48  ;;  %v1897_v48 = vor.u32 %v2149_v36, %v1896_v35  ;;  %v1922_v35 = vld [vmem:[%s3147_s0 + $0x2f0] sm:$0xf0]  ;;  %v1928_v36 = vld [vmem:[%s3147_s0 + $0x2e8] sm:$0xf] }
 0x155   :  { %v1468_v53 = vpack.c.bf16 %v1419_v51, %v1419_v51 }
 0x156   :  { %v1196_v54 = vpop.f32.mrf.mxu2  ;;  %v932_v57 = vpop.f32.mrf.mxu0 }
 0x157   :  { %v1329_v55 = vpop.f32.mrf.mxu3  ;;  %1518 = vst.msk [vmem:[%s3148_s3 + $0x54] sm:$0xf] %vm1496_vm0, %v1468_v53  ;;  %v1197_v56 = vadd.f32 %v1196_v54, %v1064_v52  ;;  %v1065_v58 = vpop.f32.mrf.mxu1  ;;  %v933_v60 = vadd.f32 %v2503_v0, %v932_v57 }
 0x159   :  { %v1330_v59 = vadd.f32 %v1329_v55, %v1197_v56  ;;  %v1066_v8 = vadd.f32 %v1065_v58, %v933_v60 }
 0x15b   :  { %v1420_v1 = vmax.f32 %v1330_v59, 0.0 }
 0x15d   :  { %v1469_v7 = vpack.c.bf16 %v1420_v1, %v1420_v1  ;;  %v2150_v1 = vld [vmem:[%s3147_s0 + $0x2c4] sm:$0xf] }
 0x15e   :  { %v1198_v9 = vpop.f32.mrf.mxu2  ;;  %v935_v14 = vpop.f32.mrf.mxu0 }
 0x15f   :  { %v1331_v10 = vpop.f32.mrf.mxu3  ;;  %1519 = vst.msk [vmem:[%s3148_s3 + $0x58] sm:$0xf] %vm1496_vm0, %v1469_v7  ;;  %v1199_v13 = vadd.f32 %v1198_v9, %v1066_v8  ;;  %v1068_v15 = vpop.f32.mrf.mxu1  ;;  %v936_v18 = vadd.f32 %v2503_v0, %v935_v14  ;;  %v1914_v7 = vld [vmem:[%s3147_s0 + $0x2d8] sm:$0xf0] }
 0x161   :  { %v1332_v19 = vadd.f32 %v1331_v10, %v1199_v13  ;;  %974 = vmatmul.bf16.gmra.mxu0 %v1873_v11  ;;  %v1069_v21 = vadd.f32 %v1068_v15, %v936_v18  ;;  %v1909_v13 = vor.u32 %v2150_v1, %v1906_v3  ;;  %v1917_v18 = vor.u32 %v2151_v6, %v1914_v7 }
 0x162   :  { %1107 = vmatmul.bf16.gmra.mxu1 %v1877_v12  ;;  %v1905_v12 = vor.u32 %v2152_v63, %v1904_v62  ;;  %v111_v62 = vld [vmem:[%s3147_s0 + $0x308] sm:$0xff] }
 0x163   :  { %v1421_v20 = vmax.f32 %v1332_v19, 0.0  ;;  %1240 = vmatmul.bf16.gmra.mxu2 %v1881_v16  ;;  %v473_v6 = vunpack.c.h.b16 %v111_v62 }
 0x164   :  { %1373 = vmatmul.bf16.gmra.mxu3 %v1885_v17  ;;  %v1913_v17 = vor.u32 %v2153_v5, %v1912_v4  ;;  %v472_v5 = vunpack.c.l.b16 %v111_v62 }
 0x165   :  { %v1470_v22 = vpack.c.bf16 %v1421_v20, %v1421_v20 }
 0x166   :  { %v1201_v23 = vpop.f32.mrf.mxu2  ;;  %v937_v26 = vpop.f32.mrf.mxu0 }
 0x167   :  { %v1334_v24 = vpop.f32.mrf.mxu3  ;;  %1520 = vst.msk [vmem:[%s3148_s3 + $0x5c] sm:$0xf] %vm1496_vm0, %v1470_v22  ;;  %v1202_v25 = vadd.f32 %v1201_v23, %v1069_v21  ;;  %v1070_v27 = vpop.f32.mrf.mxu1  ;;  %v938_v29 = vadd.f32 %v2503_v0, %v937_v26 }
 0x169   :  { %v1335_v28 = vadd.f32 %v1334_v24, %v1202_v25  ;;  %v1071_v40 = vadd.f32 %v1070_v27, %v938_v29 }
 0x16b   :  { %v1422_v33 = vmax.f32 %v1335_v28, 0.0 }
 0x16d   :  { %v1471_v39 = vpack.c.bf16 %v1422_v33, %v1422_v33  ;;  %v2154_v33 = vld [vmem:[%s3147_s0 + $0x2e4] sm:$0xf] }
 0x16e   :  { %v1203_v41 = vpop.f32.mrf.mxu2  ;;  %v940_v46 = vpop.f32.mrf.mxu0 }
 0x16f   :  { %v1336_v42 = vpop.f32.mrf.mxu3  ;;  %1521 = vst.msk [vmem:[%s3148_s3 + $0x60] sm:$0xf] %vm1496_vm0, %v1471_v39  ;;  %v1204_v45 = vadd.f32 %v1203_v41, %v1071_v40  ;;  %v1073_v47 = vpop.f32.mrf.mxu1  ;;  %v941_v50 = vadd.f32 %v2503_v0, %v940_v46  ;;  %v2975_v0 = vld [vmem:[%s3146_s2] ss:$0 sm:$0xff]  ;;  %v1930_v39 = vld [vmem:[%s3147_s0 + $0x2f8] sm:$0xf0] }
 0x171   :  { %v1337_v51 = vadd.f32 %v1336_v42, %v1204_v45  ;;  %979 = vmatmul.bf16.gmra.mxu0 %v1889_v43  ;;  %v1074_v53 = vadd.f32 %v1073_v47, %v941_v50  ;;  %v1925_v45 = vor.u32 %v2154_v33, %v1922_v35  ;;  %v1933_v50 = vor.u32 %v2155_v38, %v1930_v39 }
 0x172   :  { %1112 = vmatmul.bf16.gmra.mxu1 %v1893_v44  ;;  %v1921_v44 = vor.u32 %v2156_v32, %v1920_v31 }
 0x173   :  { %v1423_v52 = vmax.f32 %v1337_v51, 0.0  ;;  %1245 = vmatmul.bf16.gmra.mxu2 %v1897_v48 }
 0x174   :  { %1378 = vmatmul.bf16.gmra.mxu3 %v1901_v49  ;;  %v1929_v49 = vor.u32 %v2157_v37, %v1928_v36 }
 0x175   :  { %v1472_v54 = vpack.c.bf16 %v1423_v52, %v1423_v52 }
 0x176   :  { %v1206_v55 = vpop.f32.mrf.mxu2  ;;  %v942_v58 = vpop.f32.mrf.mxu0 }
 0x177   :  { %v1339_v56 = vpop.f32.mrf.mxu3  ;;  %1522 = vst.msk [vmem:[%s3148_s3 + $0x64] sm:$0xf] %vm1496_vm0, %v1472_v54  ;;  %v1207_v57 = vadd.f32 %v1206_v55, %v1074_v53  ;;  %v1075_v59 = vpop.f32.mrf.mxu1  ;;  %v943_v61 = vadd.f32 %v2975_v0, %v942_v58 }
 0x179   :  { %v1340_v60 = vadd.f32 %v1339_v56, %v1207_v57  ;;  %v1076_v9 = vadd.f32 %v1075_v59, %v943_v61  ;;  %v110_v61 = vld [vmem:[%s3147_s0 + $0x300] sm:$0xff] }
 0x17a   :  { %v471_v3 = vunpack.c.h.b16 %v110_v61 }
 0x17b   :  { %v1424_v2 = vmax.f32 %v1340_v60, 0.0 }
 0x17d   :  { %v1473_v8 = vpack.c.bf16 %v1424_v2, %v1424_v2  ;;  %v470_v2 = vunpack.c.l.b16 %v110_v61 }
 0x17e   :  { %v1208_v10 = vpop.f32.mrf.mxu2  ;;  %v945_v15 = vpop.f32.mrf.mxu0 }
 0x17f   :  { %v1341_v11 = vpop.f32.mrf.mxu3  ;;  %1523 = vst.msk [vmem:[%s3148_s3 + $0x68] sm:$0xf] %vm1496_vm0, %v1473_v8  ;;  %v1209_v14 = vadd.f32 %v1208_v10, %v1076_v9  ;;  %v1078_v16 = vpop.f32.mrf.mxu1  ;;  %v946_v19 = vadd.f32 %v2975_v0, %v945_v15 }
 0x181   :  { %v1342_v20 = vadd.f32 %v1341_v11, %v1209_v14  ;;  %984 = vmatmul.bf16.gmra.mxu0 %v1905_v12  ;;  %v1079_v22 = vadd.f32 %v1078_v16, %v946_v19  ;;  %v570_v11 = vpack.c.b16 %v470_v2, %v470_v2  ;;  %v571_v12 = vpack.c.b16 %v471_v3, %v471_v3 }
 0x182   :  { %1117 = vmatmul.bf16.gmra.mxu1 %v1909_v13  ;;  %v572_v16 = vpack.c.b16 %v472_v5, %v472_v5 }
 0x183   :  { %v1425_v21 = vmax.f32 %v1342_v20, 0.0  ;;  %1250 = vmatmul.bf16.gmra.mxu2 %v1913_v17  ;;  %v573_v17 = vpack.c.b16 %v473_v6, %v473_v6 }
 0x184   :  { %1383 = vmatmul.bf16.gmra.mxu3 %v1917_v18 }
 0x185   :  { %v1474_v23 = vpack.c.bf16 %v1425_v21, %v1425_v21 }
 0x186   :  { %v1211_v24 = vpop.f32.mrf.mxu2  ;;  %v947_v27 = vpop.f32.mrf.mxu0 }
 0x187   :  { %v1344_v25 = vpop.f32.mrf.mxu3  ;;  %1524 = vst.msk [vmem:[%s3148_s3 + $0x6c] sm:$0xf] %vm1496_vm0, %v1474_v23  ;;  %v1212_v26 = vadd.f32 %v1211_v24, %v1079_v22  ;;  %v1080_v28 = vpop.f32.mrf.mxu1  ;;  %v948_v30 = vadd.f32 %v2975_v0, %v947_v27 }
 0x189   :  { %v1345_v29 = vadd.f32 %v1344_v25, %v1212_v26  ;;  %v1081_v41 = vadd.f32 %v1080_v28, %v948_v30 }
 0x18b   :  { %v1426_v34 = vmax.f32 %v1345_v29, 0.0 }
 0x18d   :  { %v1475_v40 = vpack.c.bf16 %v1426_v34, %v1426_v34 }
 0x18e   :  { %v1213_v42 = vpop.f32.mrf.mxu2  ;;  %v950_v47 = vpop.f32.mrf.mxu0 }
 0x18f   :  { %v1346_v43 = vpop.f32.mrf.mxu3  ;;  %1525 = vst.msk [vmem:[%s3148_s3 + $0x70] sm:$0xf] %vm1496_vm0, %v1475_v40  ;;  %v1214_v46 = vadd.f32 %v1213_v42, %v1081_v41  ;;  %v1083_v48 = vpop.f32.mrf.mxu1  ;;  %v951_v51 = vadd.f32 %v2975_v0, %v950_v47 }
 0x191   :  { %v1347_v52 = vadd.f32 %v1346_v43, %v1214_v46  ;;  %989 = vmatmul.bf16.gmra.mxu0 %v1921_v44  ;;  %v1084_v54 = vadd.f32 %v1083_v48, %v951_v51 }
 0x192   :  { %1122 = vmatmul.bf16.gmra.mxu1 %v1925_v45 }
 0x193   :  { %v1427_v53 = vmax.f32 %v1347_v52, 0.0  ;;  %1255 = vmatmul.bf16.gmra.mxu2 %v1929_v49 }
 0x194   :  { %1388 = vmatmul.bf16.gmra.mxu3 %v1933_v50 }
 0x195   :  { %v1476_v55 = vpack.c.bf16 %v1427_v53, %v1427_v53 }
 0x196   :  { %v1216_v56 = vpop.f32.mrf.mxu2  ;;  %v952_v59 = vpop.f32.mrf.mxu0 }
 0x197   :  { %v1349_v57 = vpop.f32.mrf.mxu3  ;;  %1526 = vst.msk [vmem:[%s3148_s3 + $0x74] sm:$0xf] %vm1496_vm0, %v1476_v55  ;;  %v1217_v58 = vadd.f32 %v1216_v56, %v1084_v54  ;;  %v1085_v60 = vpop.f32.mrf.mxu1  ;;  %v953_v1 = vadd.f32 %v2975_v0, %v952_v59 }
 0x199   :  { %v1350_v63 = vadd.f32 %v1349_v57, %v1217_v58  ;;  %v1086_v8 = vadd.f32 %v1085_v60, %v953_v1 }
 0x19b   :  { %v1428_v4 = vmax.f32 %v1350_v63, 0.0 }
 0x19d   :  { %v1477_v7 = vpack.c.bf16 %v1428_v4, %v1428_v4 }
 0x19e   :  { %v1218_v9 = vpop.f32.mrf.mxu2  ;;  %v955_v14 = vpop.f32.mrf.mxu0 }
 0x19f   :  { %v1351_v10 = vpop.f32.mrf.mxu3  ;;  %1527 = vst.msk [vmem:[%s3148_s3 + $0x78] sm:$0xf] %vm1496_vm0, %v1477_v7  ;;  %v1219_v13 = vadd.f32 %v1218_v9, %v1086_v8  ;;  %v1088_v15 = vpop.f32.mrf.mxu1  ;;  %v956_v18 = vadd.f32 %v2975_v0, %v955_v14 }
 0x1a1   :  { %v1352_v19 = vadd.f32 %v1351_v10, %v1219_v13  ;;  %994 = vmatmul.bf16.gmra.mxu0 %v570_v11  ;;  %v1089_v21 = vadd.f32 %v1088_v15, %v956_v18 }
 0x1a2   :  { %1127 = vmatmul.bf16.gmra.mxu1 %v571_v12 }
 0x1a3   :  { %v1429_v20 = vmax.f32 %v1352_v19, 0.0  ;;  %1260 = vmatmul.bf16.gmra.mxu2 %v572_v16 }
 0x1a4   :  { %1393 = vmatmul.bf16.gmra.mxu3 %v573_v17 }
 0x1a5   :  { %v1478_v22 = vpack.c.bf16 %v1429_v20, %v1429_v20 }
 0x1a6   :  { %v1221_v23 = vpop.f32.mrf.mxu2  ;;  %v957_v26 = vpop.f32.mrf.mxu0 }
 0x1a7   :  { %v1354_v24 = vpop.f32.mrf.mxu3  ;;  %1528 = vst.msk [vmem:[%s3148_s3 + $0x7c] sm:$0xf] %vm1496_vm0, %v1478_v22  ;;  %v1222_v25 = vadd.f32 %v1221_v23, %v1089_v21  ;;  %v1090_v27 = vpop.f32.mrf.mxu1  ;;  %v958_v29 = vadd.f32 %v2975_v0, %v957_v26 }
 0x1a9   :  { %v1355_v28 = vadd.f32 %v1354_v24, %v1222_v25  ;;  %v1091_v32 = vadd.f32 %v1090_v27, %v958_v29 }
 0x1ab   :  { %v1430_v30 = vmax.f32 %v1355_v28, 0.0 }
 0x1ad   :  { %v1479_v31 = vpack.c.bf16 %v1430_v30, %v1430_v30 }
 0x1ae   :  { %v1223_v33 = vpop.f32.mrf.mxu2  ;;  %v960_v36 = vpop.f32.mrf.mxu0 }
 0x1af   :  { %v1356_v34 = vpop.f32.mrf.mxu3  ;;  %1529 = vst.msk [vmem:[%s3148_s3 + $0x80] sm:$0xf] %vm1496_vm0, %v1479_v31  ;;  %v1224_v35 = vadd.f32 %v1223_v33, %v1091_v32  ;;  %v1093_v37 = vpop.f32.mrf.mxu1  ;;  %v961_v38 = vadd.f32 %v2975_v0, %v960_v36 }
 0x1b1   :  { %v1357_v39 = vadd.f32 %v1356_v34, %v1224_v35  ;;  %v1094_v41 = vadd.f32 %v1093_v37, %v961_v38 }
 0x1b3   :  { %v1431_v40 = vmax.f32 %v1357_v39, 0.0 }
 0x1b5   :  { %v1480_v42 = vpack.c.bf16 %v1431_v40, %v1431_v40 }
 0x1b6   :  { %v1226_v43 = vpop.f32.mrf.mxu2  ;;  %v962_v46 = vpop.f32.mrf.mxu0 }
 0x1b7   :  { %v1359_v44 = vpop.f32.mrf.mxu3  ;;  %1530 = vst.msk [vmem:[%s3148_s3 + $0x84] sm:$0xf] %vm1496_vm0, %v1480_v42  ;;  %v1227_v45 = vadd.f32 %v1226_v43, %v1094_v41  ;;  %v1095_v47 = vpop.f32.mrf.mxu1  ;;  %v963_v49 = vadd.f32 %v2975_v0, %v962_v46 }
 0x1b9   :  { %v1360_v48 = vadd.f32 %v1359_v44, %v1227_v45  ;;  %v1096_v52 = vadd.f32 %v1095_v47, %v963_v49 }
 0x1bb   :  { %v1432_v50 = vmax.f32 %v1360_v48, 0.0 }
 0x1bd   :  { %v1481_v51 = vpack.c.bf16 %v1432_v50, %v1432_v50 }
 0x1be   :  { %v1228_v53 = vpop.f32.mrf.mxu2  ;;  %v965_v56 = vpop.f32.mrf.mxu0 }
 0x1bf   :  { %v1361_v54 = vpop.f32.mrf.mxu3  ;;  %1531 = vst.msk [vmem:[%s3148_s3 + $0x88] sm:$0xf] %vm1496_vm0, %v1481_v51  ;;  %v1229_v55 = vadd.f32 %v1228_v53, %v1096_v52  ;;  %v1098_v57 = vpop.f32.mrf.mxu1  ;;  %v966_v58 = vadd.f32 %v2975_v0, %v965_v56 }
 0x1c1   :  { %v1362_v59 = vadd.f32 %v1361_v54, %v1229_v55  ;;  %v1099_v61 = vadd.f32 %v1098_v57, %v966_v58 }
 0x1c3   :  { %v1433_v60 = vmax.f32 %v1362_v59, 0.0 }
 0x1c5   :  { %v1482_v62 = vpack.c.bf16 %v1433_v60, %v1433_v60 }
 0x1c6   :  { %v1231_v63 = vpop.f32.mrf.mxu2  ;;  %v967_v3 = vpop.f32.mrf.mxu0 }
 0x1c7   :  { %v1364_v1 = vpop.f32.mrf.mxu3  ;;  %1532 = vst.msk [vmem:[%s3148_s3 + $0x8c] sm:$0xf] %vm1496_vm0, %v1482_v62  ;;  %v1232_v2 = vadd.f32 %v1231_v63, %v1099_v61  ;;  %v1100_v4 = vpop.f32.mrf.mxu1  ;;  %v968_v6 = vadd.f32 %v2975_v0, %v967_v3 }
 0x1c9   :  { %v1365_v5 = vadd.f32 %v1364_v1, %v1232_v2  ;;  %v1101_v9 = vadd.f32 %v1100_v4, %v968_v6 }
 0x1cb   :  { %v1434_v7 = vmax.f32 %v1365_v5, 0.0 }
 0x1cd   :  { %v1483_v8 = vpack.c.bf16 %v1434_v7, %v1434_v7 }
 0x1ce   :  { %v1233_v10 = vpop.f32.mrf.mxu2  ;;  %v970_v13 = vpop.f32.mrf.mxu0 }
 0x1cf   :  { %v1366_v11 = vpop.f32.mrf.mxu3  ;;  %1533 = vst.msk [vmem:[%s3148_s3 + $0x90] sm:$0xf] %vm1496_vm0, %v1483_v8  ;;  %v1234_v12 = vadd.f32 %v1233_v10, %v1101_v9  ;;  %v1103_v14 = vpop.f32.mrf.mxu1  ;;  %v971_v15 = vadd.f32 %v2975_v0, %v970_v13 }
 0x1d1   :  { %v1367_v16 = vadd.f32 %v1366_v11, %v1234_v12  ;;  %v1104_v18 = vadd.f32 %v1103_v14, %v971_v15 }
 0x1d3   :  { %v1435_v17 = vmax.f32 %v1367_v16, 0.0 }
 0x1d5   :  { %v1484_v19 = vpack.c.bf16 %v1435_v17, %v1435_v17 }
 0x1d6   :  { %v1236_v20 = vpop.f32.mrf.mxu2  ;;  %v972_v23 = vpop.f32.mrf.mxu0 }
 0x1d7   :  { %v1369_v21 = vpop.f32.mrf.mxu3  ;;  %1534 = vst.msk [vmem:[%s3148_s3 + $0x94] sm:$0xf] %vm1496_vm0, %v1484_v19  ;;  %v1237_v22 = vadd.f32 %v1236_v20, %v1104_v18  ;;  %v1105_v24 = vpop.f32.mrf.mxu1  ;;  %v973_v26 = vadd.f32 %v2975_v0, %v972_v23 }
 0x1d9   :  { %v1370_v25 = vadd.f32 %v1369_v21, %v1237_v22  ;;  %v1106_v29 = vadd.f32 %v1105_v24, %v973_v26 }
 0x1db   :  { %v1436_v27 = vmax.f32 %v1370_v25, 0.0 }
 0x1dd   :  { %v1485_v28 = vpack.c.bf16 %v1436_v27, %v1436_v27 }
 0x1de   :  { %v1238_v30 = vpop.f32.mrf.mxu2  ;;  %v975_v33 = vpop.f32.mrf.mxu0 }
 0x1df   :  { %v1371_v31 = vpop.f32.mrf.mxu3  ;;  %1535 = vst.msk [vmem:[%s3148_s3 + $0x98] sm:$0xf] %vm1496_vm0, %v1485_v28  ;;  %v1239_v32 = vadd.f32 %v1238_v30, %v1106_v29  ;;  %v1108_v34 = vpop.f32.mrf.mxu1  ;;  %v976_v35 = vadd.f32 %v2975_v0, %v975_v33 }
 0x1e1   :  { %v1372_v36 = vadd.f32 %v1371_v31, %v1239_v32  ;;  %v1109_v38 = vadd.f32 %v1108_v34, %v976_v35 }
 0x1e3   :  { %v1437_v37 = vmax.f32 %v1372_v36, 0.0 }
 0x1e5   :  { %v1486_v39 = vpack.c.bf16 %v1437_v37, %v1437_v37 }
 0x1e6   :  { %v1241_v40 = vpop.f32.mrf.mxu2  ;;  %v977_v43 = vpop.f32.mrf.mxu0 }
 0x1e7   :  { %v1374_v41 = vpop.f32.mrf.mxu3  ;;  %1536 = vst.msk [vmem:[%s3148_s3 + $0x9c] sm:$0xf] %vm1496_vm0, %v1486_v39  ;;  %v1242_v42 = vadd.f32 %v1241_v40, %v1109_v38  ;;  %v1110_v44 = vpop.f32.mrf.mxu1  ;;  %v978_v46 = vadd.f32 %v2975_v0, %v977_v43 }
 0x1e9   :  { %v1375_v45 = vadd.f32 %v1374_v41, %v1242_v42  ;;  %v1111_v49 = vadd.f32 %v1110_v44, %v978_v46 }
 0x1eb   :  { %v1438_v47 = vmax.f32 %v1375_v45, 0.0 }
 0x1ed   :  { %v1487_v48 = vpack.c.bf16 %v1438_v47, %v1438_v47 }
 0x1ee   :  { %v1243_v50 = vpop.f32.mrf.mxu2  ;;  %v980_v53 = vpop.f32.mrf.mxu0 }
 0x1ef   :  { %v1376_v51 = vpop.f32.mrf.mxu3  ;;  %1537 = vst.msk [vmem:[%s3148_s3 + $0xa0] sm:$0xf] %vm1496_vm0, %v1487_v48  ;;  %v1244_v52 = vadd.f32 %v1243_v50, %v1111_v49  ;;  %v1113_v54 = vpop.f32.mrf.mxu1  ;;  %v981_v55 = vadd.f32 %v2975_v0, %v980_v53 }
 0x1f1   :  { %v1377_v56 = vadd.f32 %v1376_v51, %v1244_v52  ;;  %v1114_v58 = vadd.f32 %v1113_v54, %v981_v55 }
 0x1f3   :  { %v1439_v57 = vmax.f32 %v1377_v56, 0.0 }
 0x1f5   :  { %v1488_v59 = vpack.c.bf16 %v1439_v57, %v1439_v57 }
 0x1f6   :  { %v1246_v60 = vpop.f32.mrf.mxu2  ;;  %v982_v63 = vpop.f32.mrf.mxu0 }
 0x1f7   :  { %v1379_v61 = vpop.f32.mrf.mxu3  ;;  %1538 = vst.msk [vmem:[%s3148_s3 + $0xa4] sm:$0xf] %vm1496_vm0, %v1488_v59  ;;  %v1247_v62 = vadd.f32 %v1246_v60, %v1114_v58  ;;  %v1115_v1 = vpop.f32.mrf.mxu1  ;;  %v983_v3 = vadd.f32 %v2975_v0, %v982_v63 }
 0x1f9   :  { %v1380_v2 = vadd.f32 %v1379_v61, %v1247_v62  ;;  %v1116_v6 = vadd.f32 %v1115_v1, %v983_v3 }
 0x1fb   :  { %v1440_v4 = vmax.f32 %v1380_v2, 0.0 }
 0x1fd   :  { %v1489_v5 = vpack.c.bf16 %v1440_v4, %v1440_v4 }
 0x1fe   :  { %v1248_v7 = vpop.f32.mrf.mxu2  ;;  %v985_v10 = vpop.f32.mrf.mxu0 }
 0x1ff   :  { %v1381_v8 = vpop.f32.mrf.mxu3  ;;  %1539 = vst.msk [vmem:[%s3148_s3 + $0xa8] sm:$0xf] %vm1496_vm0, %v1489_v5  ;;  %v1249_v9 = vadd.f32 %v1248_v7, %v1116_v6  ;;  %v1118_v11 = vpop.f32.mrf.mxu1  ;;  %v986_v12 = vadd.f32 %v2975_v0, %v985_v10 }
 0x201   :  { %v1382_v13 = vadd.f32 %v1381_v8, %v1249_v9  ;;  %v1119_v15 = vadd.f32 %v1118_v11, %v986_v12 }
 0x203   :  { %v1441_v14 = vmax.f32 %v1382_v13, 0.0 }
 0x205   :  { %v1490_v16 = vpack.c.bf16 %v1441_v14, %v1441_v14 }
 0x206   :  { %v1251_v17 = vpop.f32.mrf.mxu2  ;;  %v987_v20 = vpop.f32.mrf.mxu0 }
 0x207   :  { %v1384_v18 = vpop.f32.mrf.mxu3  ;;  %1540 = vst.msk [vmem:[%s3148_s3 + $0xac] sm:$0xf] %vm1496_vm0, %v1490_v16  ;;  %v1252_v19 = vadd.f32 %v1251_v17, %v1119_v15  ;;  %v1120_v21 = vpop.f32.mrf.mxu1  ;;  %v988_v23 = vadd.f32 %v2975_v0, %v987_v20 }
 0x209   :  { %v1385_v22 = vadd.f32 %v1384_v18, %v1252_v19  ;;  %v1121_v26 = vadd.f32 %v1120_v21, %v988_v23 }
 0x20b   :  { %v1442_v24 = vmax.f32 %v1385_v22, 0.0 }
 0x20d   :  { %v1491_v25 = vpack.c.bf16 %v1442_v24, %v1442_v24 }
 0x20e   :  { %v1253_v27 = vpop.f32.mrf.mxu2  ;;  %v990_v30 = vpop.f32.mrf.mxu0 }
 0x20f   :  { %v1386_v28 = vpop.f32.mrf.mxu3  ;;  %1541 = vst.msk [vmem:[%s3148_s3 + $0xb0] sm:$0xf] %vm1496_vm0, %v1491_v25  ;;  %v1254_v29 = vadd.f32 %v1253_v27, %v1121_v26  ;;  %v1123_v31 = vpop.f32.mrf.mxu1  ;;  %v991_v32 = vadd.f32 %v2975_v0, %v990_v30 }
 0x211   :  { %v1387_v33 = vadd.f32 %v1386_v28, %v1254_v29  ;;  %v1124_v35 = vadd.f32 %v1123_v31, %v991_v32 }
 0x213   :  { %v1443_v34 = vmax.f32 %v1387_v33, 0.0 }
 0x215   :  { %v1492_v36 = vpack.c.bf16 %v1443_v34, %v1443_v34 }
 0x216   :  { %v1256_v37 = vpop.f32.mrf.mxu2  ;;  %v992_v40 = vpop.f32.mrf.mxu0 }
 0x217   :  { %v1389_v38 = vpop.f32.mrf.mxu3  ;;  %1542 = vst.msk [vmem:[%s3148_s3 + $0xb4] sm:$0xf] %vm1496_vm0, %v1492_v36  ;;  %v1257_v39 = vadd.f32 %v1256_v37, %v1124_v35  ;;  %v1125_v41 = vpop.f32.mrf.mxu1  ;;  %v993_v43 = vadd.f32 %v2975_v0, %v992_v40 }
 0x219   :  { %v1390_v42 = vadd.f32 %v1389_v38, %v1257_v39  ;;  %v1126_v46 = vadd.f32 %v1125_v41, %v993_v43 }
 0x21b   :  { %v1444_v44 = vmax.f32 %v1390_v42, 0.0 }
 0x21d   :  { %v1493_v45 = vpack.c.bf16 %v1444_v44, %v1444_v44 }
 0x21e   :  { %v1258_v47 = vpop.f32.mrf.mxu2  ;;  %v995_v50 = vpop.f32.mrf.mxu0 }
 0x21f   :  { %v1391_v48 = vpop.f32.mrf.mxu3  ;;  %1543 = vst.msk [vmem:[%s3148_s3 + $0xb8] sm:$0xf] %vm1496_vm0, %v1493_v45  ;;  %v1259_v49 = vadd.f32 %v1258_v47, %v1126_v46  ;;  %v1128_v51 = vpop.f32.mrf.mxu1  ;;  %v996_v52 = vadd.f32 %v2975_v0, %v995_v50 }
 0x221   :  { %v1392_v53 = vadd.f32 %v1391_v48, %v1259_v49  ;;  %v1129_v55 = vadd.f32 %v1128_v51, %v996_v52 }
 0x223   :  { %v1445_v54 = vmax.f32 %v1392_v53, 0.0 }
 0x225   :  { %v1494_v56 = vpack.c.bf16 %v1445_v54, %v1445_v54 }
 0x226   :  { %v1261_v57 = vpop.f32.mrf.mxu2  ;;  %v997_v60 = vpop.f32.mrf.mxu0 }
 0x227   :  { %v1394_v58 = vpop.f32.mrf.mxu3  ;;  %1544 = vst.msk [vmem:[%s3148_s3 + $0xbc] sm:$0xf] %vm1496_vm0, %v1494_v56  ;;  %v1262_v59 = vadd.f32 %v1261_v57, %v1129_v55  ;;  %v1130_v61 = vpop.f32.mrf.mxu1 }
 0x229   :  { %v1395_v62 = vadd.f32 %v1394_v58, %v1262_v59 }
 0x22b   :  { %v1446_v63 = vmax.f32 %v1395_v62, 0.0 }
 0x22d   :  { %v1495_v1 = vpack.c.bf16 %v1446_v63, %v1446_v63 }
 0x22e   :  { %v1263_v2 = vpop.f32.mrf.mxu2 }
 0x22f   :  { %v1396_v3 = vpop.f32.mrf.mxu3  ;;  %1545 = vst.msk [vmem:[%s3148_s3 + $0xc0] sm:$0xf] %vm1496_vm0, %v1495_v1 }

// kernel: encoder_forward.7
= control target key start
LH: loop header
LB: loop body
LE: loop exit
PB: predicated region body
PF: predicated region fallthrough
CT: control target
= control target key end

     0   :  { %s2025_s1 = inlined_call_operand.vmem [shape: bf16[1024,128], index: 1, kind: input, shape index: {}]   ;;  %s2026_s2 = inlined_call_operand.vmem [shape: f32[1,128], index: 2, kind: input, shape index: {}]   ;;  %s2027_s0 = inlined_call_operand.vmem [shape: bf16[72,1024], index: 0, kind: input, shape index: {}]   ;;  %s2028_s3 = inlined_call_operand.vmem [shape: bf16[72,128], index: 3, kind: output, shape index: {}]  }
   0x1   :  { %v1472_v0 = vld [vmem:[%s2025_s1 + $0x38] sm:$0xff]  ;;  %v1471_v4 = vld [vmem:[%s2025_s1 + $0x30] sm:$0xff]  ;;  %v1470_v8 = vld [vmem:[%s2025_s1 + $0x28] sm:$0xff] }
   0x2   :  { %v1480_v1 = vld [vmem:[%s2025_s1 + $0x78] sm:$0xff]  ;;  %754 = vmatpush.bf16.msra.mxu0 %v1472_v0  ;;  %v1479_v5 = vld [vmem:[%s2025_s1 + $0x70] sm:$0xff]  ;;  %v1478_v9 = vld [vmem:[%s2025_s1 + $0x68] sm:$0xff] }
   0x3   :  { %v1488_v2 = vld [vmem:[%s2025_s1 + $0xb8] sm:$0xff]  ;;  %787 = vmatpush.bf16.msra.mxu1 %v1480_v1  ;;  %v1487_v6 = vld [vmem:[%s2025_s1 + $0xb0] sm:$0xff]  ;;  %v1486_v10 = vld [vmem:[%s2025_s1 + $0xa8] sm:$0xff] }
   0x4   :  { %v1496_v3 = vld [vmem:[%s2025_s1 + $0xf8] sm:$0xff]  ;;  %820 = vmatpush.bf16.msra.mxu2 %v1488_v2  ;;  %v1495_v7 = vld [vmem:[%s2025_s1 + $0xf0] sm:$0xff]  ;;  %v1494_v11 = vld [vmem:[%s2025_s1 + $0xe8] sm:$0xff] }
   0x5   :  { %853 = vmatpush.bf16.msra.mxu3 %v1496_v3  ;;  %v1469_v12 = vld [vmem:[%s2025_s1 + $0x20] sm:$0xff]  ;;  %v1468_v16 = vld [vmem:[%s2025_s1 + $0x18] sm:$0xff]  ;;  %v1467_v20 = vld [vmem:[%s2025_s1 + $0x10] sm:$0xff] }
   0x6   :  { %755 = vmatpush.bf16.msra.mxu0 %v1471_v4  ;;  %v1477_v13 = vld [vmem:[%s2025_s1 + $0x60] sm:$0xff]  ;;  %v1476_v17 = vld [vmem:[%s2025_s1 + $0x58] sm:$0xff]  ;;  %v1475_v21 = vld [vmem:[%s2025_s1 + $0x50] sm:$0xff] }
   0x7   :  { %788 = vmatpush.bf16.msra.mxu1 %v1479_v5  ;;  %v1485_v14 = vld [vmem:[%s2025_s1 + $0xa0] sm:$0xff]  ;;  %v1484_v18 = vld [vmem:[%s2025_s1 + $0x98] sm:$0xff]  ;;  %v1483_v22 = vld [vmem:[%s2025_s1 + $0x90] sm:$0xff] }
   0x8   :  { %821 = vmatpush.bf16.msra.mxu2 %v1487_v6  ;;  %v1493_v15 = vld [vmem:[%s2025_s1 + $0xe0] sm:$0xff]  ;;  %v1492_v19 = vld [vmem:[%s2025_s1 + $0xd8] sm:$0xff]  ;;  %v1491_v23 = vld [vmem:[%s2025_s1 + $0xd0] sm:$0xff] }
   0x9   :  { %854 = vmatpush.bf16.msra.mxu3 %v1495_v7  ;;  %v1466_v24 = vld [vmem:[%s2025_s1 + $0x8] sm:$0xff]  ;;  %v1465_v28 = vld [vmem:[%s2025_s1] sm:$0xff]  ;;  %v1520_v40 = vld [vmem:[%s2025_s1 + $0x1b8] sm:$0xff] }
   0xa   :  { %756 = vmatpush.bf16.msra.mxu0 %v1470_v8  ;;  %v1474_v25 = vld [vmem:[%s2025_s1 + $0x48] sm:$0xff]  ;;  %v1473_v29 = vld [vmem:[%s2025_s1 + $0x40] sm:$0xff]  ;;  %v1528_v41 = vld [vmem:[%s2025_s1 + $0x1f8] sm:$0xff] }
   0xb   :  { %789 = vmatpush.bf16.msra.mxu1 %v1478_v9  ;;  %v1482_v26 = vld [vmem:[%s2025_s1 + $0x88] sm:$0xff]  ;;  %v1481_v30 = vld [vmem:[%s2025_s1 + $0x80] sm:$0xff]  ;;  %v1504_v46 = vld [vmem:[%s2025_s1 + $0x138] sm:$0xff] }
   0xc   :  { %822 = vmatpush.bf16.msra.mxu2 %v1486_v10  ;;  %v1490_v27 = vld [vmem:[%s2025_s1 + $0xc8] sm:$0xff]  ;;  %v1489_v31 = vld [vmem:[%s2025_s1 + $0xc0] sm:$0xff]  ;;  %v1512_v47 = vld [vmem:[%s2025_s1 + $0x178] sm:$0xff] }
   0xd   :  { %855 = vmatpush.bf16.msra.mxu3 %v1494_v11  ;;  %v1051_v32 = vld [vmem:[%s2027_s0] sm:$0xf]  ;;  %v1433_v34 = vld [vmem:[%s2027_s0 + $0x4] sm:$0xf]  ;;  %v1059_v36 = vld [vmem:[%s2027_s0 + $0x8] sm:$0xf] }
   0xe   :  { %757 = vmatpush.bf16.msra.mxu0 %v1469_v12  ;;  %v1437_v33 = vld [vmem:[%s2027_s0 + $0x1c] sm:$0xf0]  ;;  %v1053_v35 = vld [vmem:[%s2027_s0 + $0x20] sm:$0xf0]  ;;  %v1438_v37 = vld [vmem:[%s2027_s0 + $0x24] sm:$0xf0] }
   0xf   :  { %790 = vmatpush.bf16.msra.mxu1 %v1477_v13  ;;  %v1434_v38 = vld [vmem:[%s2027_s0 + $0xc] sm:$0xf]  ;;  %v1052_v42 = vor.u32 %v1437_v33, %v1051_v32  ;;  %v1056_v43 = vor.u32 %v1433_v34, %v1053_v35  ;;  %v1060_v44 = vor.u32 %v1438_v37, %v1059_v36  ;;  %v1519_v48 = vld [vmem:[%s2025_s1 + $0x1b0] sm:$0xff]  ;;  %v1083_v56 = vld [vmem:[%s2027_s0 + $0x40] sm:$0xf] }
  0x10   :  { %823 = vmatpush.bf16.msra.mxu2 %v1485_v14  ;;  %v1061_v39 = vld [vmem:[%s2027_s0 + $0x28] sm:$0xf0]  ;;  %v1527_v49 = vld [vmem:[%s2025_s1 + $0x1f0] sm:$0xff]  ;;  %v1517_v57 = vld [vmem:[%s2025_s1 + $0x1a0] sm:$0xff] }
  0x11   :  { %856 = vmatpush.bf16.msra.mxu3 %v1493_v15  ;;  %v1064_v45 = vor.u32 %v1434_v38, %v1061_v39  ;;  %v1503_v50 = vld [vmem:[%s2025_s1 + $0x130] sm:$0xff]  ;;  %v1518_v52 = vld [vmem:[%s2025_s1 + $0x1a8] sm:$0xff]  ;;  %v1525_v58 = vld [vmem:[%s2025_s1 + $0x1e0] sm:$0xff] }
  0x12   :  { %758 = vmatpush.bf16.msra.mxu0 %v1468_v16  ;;  %v1511_v51 = vld [vmem:[%s2025_s1 + $0x170] sm:$0xff]  ;;  %v1526_v53 = vld [vmem:[%s2025_s1 + $0x1e8] sm:$0xff]  ;;  %v1445_v59 = vld [vmem:[%s2027_s0 + $0x5c] sm:$0xf0] }
  0x13   :  { %791 = vmatpush.bf16.msra.mxu1 %v1476_v17  ;;  %v1502_v54 = vld [vmem:[%s2025_s1 + $0x128] sm:$0xff]  ;;  %v1441_v60 = vld [vmem:[%s2027_s0 + $0x44] sm:$0xf]  ;;  %v1516_v4 = vld [vmem:[%s2025_s1 + $0x198] sm:$0xff]  ;;  %v1084_v6 = vor.u32 %v1445_v59, %v1083_v56 }
  0x14   :  { %824 = vmatpush.bf16.msra.mxu2 %v1484_v18  ;;  %v1510_v55 = vld [vmem:[%s2025_s1 + $0x168] sm:$0xff]  ;;  %v1085_v61 = vld [vmem:[%s2027_s0 + $0x60] sm:$0xf0]  ;;  %v1524_v5 = vld [vmem:[%s2025_s1 + $0x1d8] sm:$0xff] }
  0x15   :  { %857 = vmatpush.bf16.msra.mxu3 %v1492_v19  ;;  %v1091_v62 = vld [vmem:[%s2027_s0 + $0x48] sm:$0xf]  ;;  %v1442_v0 = vld [vmem:[%s2027_s0 + $0x4c] sm:$0xf]  ;;  %v1501_v2 = vld [vmem:[%s2025_s1 + $0x120] sm:$0xff]  ;;  %v1088_v7 = vor.u32 %v1441_v60, %v1085_v61 }
  0x16   :  { %759 = vmatpush.bf16.msra.mxu0 %v1467_v20  ;;  %v1446_v63 = vld [vmem:[%s2027_s0 + $0x64] sm:$0xf0]  ;;  %v1093_v1 = vld [vmem:[%s2027_s0 + $0x68] sm:$0xf0]  ;;  %v1509_v3 = vld [vmem:[%s2025_s1 + $0x160] sm:$0xff] }
  0x17   :  { %792 = vmatpush.bf16.msra.mxu1 %v1475_v21  ;;  %v1092_v8 = vor.u32 %v1446_v63, %v1091_v62  ;;  %v1096_v9 = vor.u32 %v1442_v0, %v1093_v1  ;;  %v1500_v10 = vld [vmem:[%s2025_s1 + $0x118] sm:$0xff]  ;;  %v1515_v12 = vld [vmem:[%s2025_s1 + $0x190] sm:$0xff]  ;;  %v1514_v16 = vld [vmem:[%s2025_s1 + $0x188] sm:$0xff] }
  0x18   :  { %825 = vmatpush.bf16.msra.mxu2 %v1483_v22  ;;  %v1508_v11 = vld [vmem:[%s2025_s1 + $0x158] sm:$0xff]  ;;  %v1523_v13 = vld [vmem:[%s2025_s1 + $0x1d0] sm:$0xff]  ;;  %v1522_v17 = vld [vmem:[%s2025_s1 + $0x1c8] sm:$0xff] }
  0x19   :  { %858 = vmatpush.bf16.msra.mxu3 %v1491_v23  ;;  %v1499_v14 = vld [vmem:[%s2025_s1 + $0x110] sm:$0xff]  ;;  %v1498_v18 = vld [vmem:[%s2025_s1 + $0x108] sm:$0xff]  ;;  %v1115_v19 = vld [vmem:[%s2027_s0 + $0x80] sm:$0xf] }
  0x1a   :  { %760 = vmatpush.bf16.msra.mxu0 %v1466_v24  ;;  %v1507_v15 = vld [vmem:[%s2025_s1 + $0x150] sm:$0xff]  ;;  %v1453_v20 = vld [vmem:[%s2027_s0 + $0x9c] sm:$0xf0]  ;;  %v1449_v21 = vld [vmem:[%s2027_s0 + $0x84] sm:$0xf] }
  0x1b   :  { %793 = vmatpush.bf16.msra.mxu1 %v1474_v25  ;;  %v1117_v22 = vld [vmem:[%s2027_s0 + $0xa0] sm:$0xf0]  ;;  %v1123_v23 = vld [vmem:[%s2027_s0 + $0x88] sm:$0xf]  ;;  %v1450_v25 = vld [vmem:[%s2027_s0 + $0x8c] sm:$0xf] }
  0x1c   :  { %826 = vmatpush.bf16.msra.mxu2 %v1482_v26  ;;  %v1454_v24 = vld [vmem:[%s2027_s0 + $0xa4] sm:$0xf0]  ;;  %v1125_v26 = vld [vmem:[%s2027_s0 + $0xa8] sm:$0xf0]  ;;  %v1513_v32 = vld [vmem:[%s2025_s1 + $0x180] sm:$0xff] }
  0x1d   :  { %859 = vmatpush.bf16.msra.mxu3 %v1490_v27  ;;  %v1116_v27 = vor.u32 %v1453_v20, %v1115_v19  ;;  %v1521_v33 = vld [vmem:[%s2025_s1 + $0x1c0] sm:$0xff]  ;;  %v1439_v59 = vld [vmem:[%s2027_s0 + $0x2c] sm:$0xf0]  ;;  %v1435_v60 = vld [vmem:[%s2027_s0 + $0x14] sm:$0xf] }
  0x1e   :  { %761 = vmatpush.bf16.msra.mxu0 %v1465_v28  ;;  %v1120_v28 = vor.u32 %v1449_v21, %v1117_v22  ;;  %v1497_v34 = vld [vmem:[%s2025_s1 + $0x100] sm:$0xff]  ;;  %v1069_v61 = vld [vmem:[%s2027_s0 + $0x30] sm:$0xf0]  ;;  %v1075_v62 = vld [vmem:[%s2027_s0 + $0x18] sm:$0xf] }
  0x1f   :  { %794 = vmatpush.bf16.msra.mxu1 %v1473_v29  ;;  %v1124_v29 = vor.u32 %v1454_v24, %v1123_v23  ;;  %v1505_v35 = vld [vmem:[%s2025_s1 + $0x140] sm:$0xff]  ;;  %v1440_v63 = vld [vmem:[%s2027_s0 + $0x34] sm:$0xf0]  ;;  %v1436_v0 = vld [vmem:[%s2027_s0 + $0x1c] sm:$0xf] }
  0x20   :  { %827 = vmatpush.bf16.msra.mxu2 %v1481_v30  ;;  %v1128_v30 = vor.u32 %v1450_v25, %v1125_v26  ;;  %v1147_v36 = vld [vmem:[%s2027_s0 + $0xc0] sm:$0xf]  ;;  %v1457_v38 = vld [vmem:[%s2027_s0 + $0xc4] sm:$0xf]  ;;  %v1077_v1 = vld [vmem:[%s2027_s0 + $0x38] sm:$0xf0] }
  0x21   :  { %860 = vmatpush.bf16.msra.mxu3 %v1489_v31  ;;  %762 = vmatmul.bf16.vlgmr.msra.gmra.mxu0 %v1052_v42  ;;  %v1506_v31 = vld [vmem:[%s2025_s1 + $0x148] sm:$0xff]  ;;  %v1461_v37 = vld [vmem:[%s2027_s0 + $0xdc] sm:$0xf0]  ;;  %v1149_v39 = vld [vmem:[%s2027_s0 + $0xe0] sm:$0xf0] }
  0x22   :  { %795 = vmatmul.bf16.vlgmr.msra.gmra.mxu1 %v1056_v43  ;;  %886 = vmatpush.bf16.msrb.mxu0 %v1504_v46  ;;  %v1458_v42 = vld [vmem:[%s2027_s0 + $0xcc] sm:$0xf]  ;;  %v1455_v19 = vld [vmem:[%s2027_s0 + $0xac] sm:$0xf0]  ;;  %v1451_v20 = vld [vmem:[%s2027_s0 + $0x94] sm:$0xf] }
  0x23   :  { %828 = vmatmul.bf16.vlgmr.msra.gmra.mxu2 %v1060_v44  ;;  %919 = vmatpush.bf16.msrb.mxu1 %v1512_v47  ;;  %v1157_v43 = vld [vmem:[%s2027_s0 + $0xe8] sm:$0xf0]  ;;  %v1148_v44 = vor.u32 %v1461_v37, %v1147_v36  ;;  %v1133_v21 = vld [vmem:[%s2027_s0 + $0xb0] sm:$0xf0]  ;;  %v1139_v22 = vld [vmem:[%s2027_s0 + $0x98] sm:$0xf] }
  0x24   :  { %952 = vmatpush.bf16.msrb.mxu2 %v1520_v40  ;;  %861 = vmatmul.bf16.vlgmr.msra.gmra.mxu3 %v1064_v45  ;;  %v1155_v40 = vld [vmem:[%s2027_s0 + $0xc8] sm:$0xf]  ;;  %v1152_v45 = vor.u32 %v1457_v38, %v1149_v39  ;;  %v1160_v47 = vor.u32 %v1458_v42, %v1157_v43  ;;  %v1456_v23 = vld [vmem:[%s2027_s0 + $0xb4] sm:$0xf0]  ;;  %v1452_v24 = vld [vmem:[%s2027_s0 + $0x9c] sm:$0xf] }
  0x25   :  { %985 = vmatpush.bf16.msrb.mxu3 %v1528_v41  ;;  %v1462_v41 = vld [vmem:[%s2027_s0 + $0xe4] sm:$0xf0]  ;;  %v1141_v25 = vld [vmem:[%s2027_s0 + $0xb8] sm:$0xf0]  ;;  %v1464_v36 = vld [vmem:[%s2027_s0 + $0xf4] sm:$0xf0] }
  0x26   :  { %887 = vmatpush.bf16.msrb.mxu0 %v1503_v50  ;;  %v1156_v46 = vor.u32 %v1462_v41, %v1155_v40  ;;  %v1460_v37 = vld [vmem:[%s2027_s0 + $0xdc] sm:$0xf] }
  0x27   :  { %920 = vmatpush.bf16.msrb.mxu1 %v1511_v51  ;;  %v1173_v38 = vld [vmem:[%s2027_s0 + $0xf8] sm:$0xf0] }
  0x28   :  { %953 = vmatpush.bf16.msrb.mxu2 %v1519_v48  ;;  %v46_v48 = vld [vmem:[%s2027_s0 + $0x100] sm:$0xff] }
  0x29   :  { %986 = vmatpush.bf16.msrb.mxu3 %v1527_v49  ;;  %v47_v49 = vld [vmem:[%s2027_s0 + $0x108] sm:$0xff]  ;;  %v282_v50 = vunpack.c.l.b16 %v46_v48  ;;  %v283_v51 = vunpack.c.h.b16 %v46_v48 }
  0x2a   :  { %888 = vmatpush.bf16.msrb.mxu0 %v1502_v54 }
  0x2b   :  { %921 = vmatpush.bf16.msrb.mxu1 %v1510_v55  ;;  %v322_v54 = vpack.c.b16 %v282_v50, %v282_v50  ;;  %v323_v55 = vpack.c.b16 %v283_v51, %v283_v51 }
  0x2c   :  { %954 = vmatpush.bf16.msrb.mxu2 %v1518_v52  ;;  %v284_v52 = vunpack.c.l.b16 %v47_v49 }
  0x2d   :  { %987 = vmatpush.bf16.msrb.mxu3 %v1526_v53  ;;  %v285_v53 = vunpack.c.h.b16 %v47_v49 }
  0x2e   :  { %889 = vmatpush.bf16.msrb.mxu0 %v1501_v2  ;;  %v324_v56 = vpack.c.b16 %v284_v52, %v284_v52  ;;  %v48_v52 = vld [vmem:[%s2027_s0 + $0x110] sm:$0xff] }
  0x2f   :  { %922 = vmatpush.bf16.msrb.mxu1 %v1509_v3  ;;  %v1072_v3 = vor.u32 %v1435_v60, %v1069_v61 }
  0x30   :  { %955 = vmatpush.bf16.msrb.mxu2 %v1517_v57  ;;  %v325_v57 = vpack.c.b16 %v285_v53, %v285_v53 }
  0x31   :  { %988 = vmatpush.bf16.msrb.mxu3 %v1525_v58  ;;  %767 = vmatmul.bf16.gmra.mxu0 %v1084_v6  ;;  %v1067_v58 = vld [vmem:[%s2027_s0 + $0x10] sm:$0xf] }
  0x32   :  { %800 = vmatmul.bf16.gmra.mxu1 %v1088_v7  ;;  %890 = vmatpush.bf16.msrb.mxu0 %v1500_v10  ;;  %v1068_v2 = vor.u32 %v1439_v59, %v1067_v58  ;;  %v1099_v6 = vld [vmem:[%s2027_s0 + $0x50] sm:$0xf]  ;;  %v1107_v10 = vld [vmem:[%s2027_s0 + $0x58] sm:$0xf]  ;;  %v287_v58 = vunpack.c.h.b16 %v48_v52 }
  0x33   :  { %833 = vmatmul.bf16.gmra.mxu2 %v1092_v8  ;;  %923 = vmatpush.bf16.msrb.mxu1 %v1508_v11  ;;  %v1447_v7 = vld [vmem:[%s2027_s0 + $0x6c] sm:$0xf0]  ;;  %v1443_v8 = vld [vmem:[%s2027_s0 + $0x54] sm:$0xf]  ;;  %v1448_v11 = vld [vmem:[%s2027_s0 + $0x74] sm:$0xf0] }
  0x34   :  { %956 = vmatpush.bf16.msrb.mxu2 %v1516_v4  ;;  %866 = vmatmul.bf16.gmra.mxu3 %v1096_v9  ;;  %v1076_v4 = vor.u32 %v1440_v63, %v1075_v62  ;;  %v1101_v9 = vld [vmem:[%s2027_s0 + $0x70] sm:$0xf0] }
  0x35   :  { %989 = vmatpush.bf16.msrb.mxu3 %v1524_v5  ;;  %v1080_v5 = vor.u32 %v1436_v0, %v1077_v1  ;;  %v327_v0 = vpack.c.b16 %v287_v58, %v287_v58 }
  0x36   :  { %891 = vmatpush.bf16.msrb.mxu0 %v1499_v14  ;;  %v1100_v14 = vor.u32 %v1447_v7, %v1099_v6 }
  0x37   :  { %924 = vmatpush.bf16.msrb.mxu1 %v1507_v15  ;;  %v1104_v15 = vor.u32 %v1443_v8, %v1101_v9 }
  0x38   :  { %957 = vmatpush.bf16.msrb.mxu2 %v1515_v12  ;;  %v1444_v12 = vld [vmem:[%s2027_s0 + $0x5c] sm:$0xf] }
  0x39   :  { %990 = vmatpush.bf16.msrb.mxu3 %v1523_v13  ;;  %v1109_v13 = vld [vmem:[%s2027_s0 + $0x78] sm:$0xf0] }
  0x3a   :  { %892 = vmatpush.bf16.msrb.mxu0 %v1498_v18  ;;  %v1131_v18 = vld [vmem:[%s2027_s0 + $0x90] sm:$0xf] }
  0x3b   :  { %925 = vmatpush.bf16.msrb.mxu1 %v1506_v31  ;;  %v1132_v26 = vor.u32 %v1455_v19, %v1131_v18  ;;  %v1163_v31 = vld [vmem:[%s2027_s0 + $0xd0] sm:$0xf] }
  0x3c   :  { %958 = vmatpush.bf16.msrb.mxu2 %v1514_v16  ;;  %v1108_v16 = vor.u32 %v1448_v11, %v1107_v10 }
  0x3d   :  { %991 = vmatpush.bf16.msrb.mxu3 %v1522_v17  ;;  %v1112_v17 = vor.u32 %v1444_v12, %v1109_v13 }
  0x3e   :  { %893 = vmatpush.bf16.msrb.mxu0 %v1497_v34  ;;  %v1165_v34 = vld [vmem:[%s2027_s0 + $0xf0] sm:$0xf0] }
  0x3f   :  { %926 = vmatpush.bf16.msrb.mxu1 %v1505_v35  ;;  %v1171_v35 = vld [vmem:[%s2027_s0 + $0xd8] sm:$0xf] }
  0x40   :  { %959 = vmatpush.bf16.msrb.mxu2 %v1513_v32  ;;  %v1463_v32 = vld [vmem:[%s2027_s0 + $0xec] sm:$0xf0]  ;;  %v1172_v43 = vor.u32 %v1464_v36, %v1171_v35 }
  0x41   :  { %772 = vmatmul.bf16.gmra.mxu0 %v1116_v27  ;;  %992 = vmatpush.bf16.msrb.mxu3 %v1521_v33  ;;  %v1136_v27 = vor.u32 %v1451_v20, %v1133_v21  ;;  %v1459_v33 = vld [vmem:[%s2027_s0 + $0xd4] sm:$0xf]  ;;  %v1164_v39 = vor.u32 %v1463_v32, %v1163_v31 }
  0x42   :  { %805 = vmatmul.bf16.gmra.mxu1 %v1120_v28  ;;  %v1140_v28 = vor.u32 %v1456_v23, %v1139_v22  ;;  %v1168_v40 = vor.u32 %v1459_v33, %v1165_v34 }
  0x43   :  { %838 = vmatmul.bf16.gmra.mxu2 %v1124_v29  ;;  %v1144_v29 = vor.u32 %v1452_v24, %v1141_v25 }
  0x44   :  { %871 = vmatmul.bf16.gmra.mxu3 %v1128_v30  ;;  %v1942_v30 = vld [vmem:[%s2026_s2] ss:$0 sm:$0xff] }
  0x51   :  { %777 = vmatmul.bf16.gmra.mxu0 %v1148_v44  ;;  %v1176_v44 = vor.u32 %v1460_v37, %v1173_v38 }
  0x52   :  { %810 = vmatmul.bf16.gmra.mxu1 %v1152_v45 }
  0x53   :  { %843 = vmatmul.bf16.gmra.mxu2 %v1156_v46 }
  0x54   :  { %876 = vmatmul.bf16.gmra.mxu3 %v1160_v47 }
  0x61   :  { %782 = vmatmul.bf16.gmra.mxu0 %v322_v54  ;;  %v49_v54 = vld [vmem:[%s2027_s0 + $0x118] sm:$0xff] }
  0x62   :  { %815 = vmatmul.bf16.gmra.mxu1 %v323_v55  ;;  %v288_v59 = vunpack.c.l.b16 %v49_v54  ;;  %v289_v60 = vunpack.c.h.b16 %v49_v54 }
  0x63   :  { %848 = vmatmul.bf16.gmra.mxu2 %v324_v56 }
  0x64   :  { %881 = vmatmul.bf16.gmra.mxu3 %v325_v57  ;;  %v286_v57 = vunpack.c.l.b16 %v48_v52 }
  0x66   :  { %v326_v63 = vpack.c.b16 %v286_v57, %v286_v57 }
  0x71   :  { %894 = vmatmul.bf16.vlgmr.msrb.gmra.mxu0 %v1068_v2 }
  0x72   :  { %927 = vmatmul.bf16.vlgmr.msrb.gmra.mxu1 %v1072_v3 }
  0x73   :  { %960 = vmatmul.bf16.vlgmr.msrb.gmra.mxu2 %v1076_v4  ;;  %v328_v4 = vpack.c.b16 %v288_v59, %v288_v59 }
  0x74   :  { %993 = vmatmul.bf16.vlgmr.msrb.gmra.mxu3 %v1080_v5  ;;  %v329_v5 = vpack.c.b16 %v289_v60, %v289_v60 }
  0x81   :  { %899 = vmatmul.bf16.gmra.mxu0 %v1100_v14 }
  0x82   :  { %932 = vmatmul.bf16.gmra.mxu1 %v1104_v15 }
  0x83   :  { %965 = vmatmul.bf16.gmra.mxu2 %v1108_v16 }
  0x84   :  { %998 = vmatmul.bf16.gmra.mxu3 %v1112_v17 }
  0x91   :  { %904 = vmatmul.bf16.gmra.mxu0 %v1132_v26 }
  0x92   :  { %937 = vmatmul.bf16.gmra.mxu1 %v1136_v27 }
  0x93   :  { %970 = vmatmul.bf16.gmra.mxu2 %v1140_v28 }
  0x94   :  { %1003 = vmatmul.bf16.gmra.mxu3 %v1144_v29 }
  0x9e   :  { %v763_v41 = vpop.f32.mrf.mxu0 }
  0x9f   :  { %v796_v42 = vpop.f32.mrf.mxu1  ;;  %v764_v45 = vadd.f32 %v1942_v30, %v763_v41 }
  0xa1   :  { %v797_v46 = vadd.f32 %v796_v42, %v764_v45  ;;  %909 = vmatmul.bf16.gmra.mxu0 %v1164_v39 }
  0xa2   :  { %942 = vmatmul.bf16.gmra.mxu1 %v1168_v40 }
  0xa3   :  { %975 = vmatmul.bf16.gmra.mxu2 %v1172_v43 }
  0xa4   :  { %1008 = vmatmul.bf16.gmra.mxu3 %v1176_v44 }
  0xa6   :  { %v829_v47 = vpop.f32.mrf.mxu2  ;;  %v765_v50 = vpop.f32.mrf.mxu0 }
  0xa7   :  { %v862_v48 = vpop.f32.mrf.mxu3  ;;  %v830_v49 = vadd.f32 %v829_v47, %v797_v46  ;;  %v798_v51 = vpop.f32.mrf.mxu1  ;;  %v766_v53 = vadd.f32 %v1942_v30, %v765_v50 }
  0xa9   :  { %v1976_v55 = vadd.f32 %v862_v48, %v830_v49  ;;  %v799_v56 = vadd.f32 %v798_v51, %v766_v53 }
  0xae   :  { %v831_v61 = vpop.f32.mrf.mxu2  ;;  %v768_v2 = vpop.f32.mrf.mxu0 }
  0xaf   :  { %v864_v62 = vpop.f32.mrf.mxu3  ;;  %v832_v1 = vadd.f32 %v831_v61, %v799_v56  ;;  %v801_v3 = vpop.f32.mrf.mxu1  ;;  %v769_v6 = vadd.f32 %v1942_v30, %v768_v2 }
  0xb1   :  { %v1979_v7 = vadd.f32 %v864_v62, %v832_v1  ;;  %v802_v8 = vadd.f32 %v801_v3, %v769_v6  ;;  %914 = vmatmul.bf16.gmra.mxu0 %v326_v63 }
  0xb2   :  { %947 = vmatmul.bf16.gmra.mxu1 %v327_v0 }
  0xb3   :  { %980 = vmatmul.bf16.gmra.mxu2 %v328_v4 }
  0xb4   :  { %1013 = vmatmul.bf16.gmra.mxu3 %v329_v5 }
  0xb6   :  { %v834_v9 = vpop.f32.mrf.mxu2  ;;  %v770_v12 = vpop.f32.mrf.mxu0 }
  0xb7   :  { %v867_v10 = vpop.f32.mrf.mxu3  ;;  %v835_v11 = vadd.f32 %v834_v9, %v802_v8  ;;  %v803_v13 = vpop.f32.mrf.mxu1  ;;  %v771_v14 = vadd.f32 %v1942_v30, %v770_v12 }
  0xb9   :  { %v1982_v15 = vadd.f32 %v867_v10, %v835_v11  ;;  %v804_v16 = vadd.f32 %v803_v13, %v771_v14 }
  0xbe   :  { %v836_v17 = vpop.f32.mrf.mxu2  ;;  %v773_v20 = vpop.f32.mrf.mxu0 }
  0xbf   :  { %v869_v18 = vpop.f32.mrf.mxu3  ;;  %v837_v19 = vadd.f32 %v836_v17, %v804_v16  ;;  %v806_v21 = vpop.f32.mrf.mxu1  ;;  %v774_v22 = vadd.f32 %v1942_v30, %v773_v20 }
  0xc1   :  { %v1985_v23 = vadd.f32 %v869_v18, %v837_v19  ;;  %v807_v24 = vadd.f32 %v806_v21, %v774_v22 }
  0xc6   :  { %v839_v25 = vpop.f32.mrf.mxu2  ;;  %v775_v28 = vpop.f32.mrf.mxu0 }
  0xc7   :  { %v872_v26 = vpop.f32.mrf.mxu3  ;;  %v840_v27 = vadd.f32 %v839_v25, %v807_v24  ;;  %v808_v29 = vpop.f32.mrf.mxu1  ;;  %v776_v31 = vadd.f32 %v1942_v30, %v775_v28 }
  0xc9   :  { %v1988_v32 = vadd.f32 %v872_v26, %v840_v27  ;;  %v809_v33 = vadd.f32 %v808_v29, %v776_v31 }
  0xce   :  { %v841_v34 = vpop.f32.mrf.mxu2  ;;  %v778_v37 = vpop.f32.mrf.mxu0 }
  0xcf   :  { %v874_v35 = vpop.f32.mrf.mxu3  ;;  %v842_v36 = vadd.f32 %v841_v34, %v809_v33  ;;  %v811_v38 = vpop.f32.mrf.mxu1  ;;  %v779_v39 = vadd.f32 %v1942_v30, %v778_v37 }
  0xd1   :  { %v1991_v40 = vadd.f32 %v874_v35, %v842_v36  ;;  %v812_v41 = vadd.f32 %v811_v38, %v779_v39 }
  0xd6   :  { %v844_v42 = vpop.f32.mrf.mxu2  ;;  %v780_v45 = vpop.f32.mrf.mxu0 }
  0xd7   :  { %v877_v43 = vpop.f32.mrf.mxu3  ;;  %v845_v44 = vadd.f32 %v844_v42, %v812_v41  ;;  %v813_v46 = vpop.f32.mrf.mxu1  ;;  %v781_v47 = vadd.f32 %v1942_v30, %v780_v45 }
  0xd9   :  { %v1994_v48 = vadd.f32 %v877_v43, %v845_v44  ;;  %v814_v49 = vadd.f32 %v813_v46, %v781_v47 }
  0xde   :  { %v846_v50 = vpop.f32.mrf.mxu2  ;;  %v783_v53 = vpop.f32.mrf.mxu0 }
  0xdf   :  { %v879_v51 = vpop.f32.mrf.mxu3  ;;  %v847_v52 = vadd.f32 %v846_v50, %v814_v49  ;;  %v816_v54 = vpop.f32.mrf.mxu1  ;;  %v784_v56 = vadd.f32 %v1942_v30, %v783_v53 }
  0xe1   :  { %v1997_v57 = vadd.f32 %v879_v51, %v847_v52  ;;  %v817_v58 = vadd.f32 %v816_v54, %v784_v56 }
  0xe6   :  { %v849_v59 = vpop.f32.mrf.mxu2  ;;  %v785_v62 = vpop.f32.mrf.mxu0 }
  0xe7   :  { %v882_v60 = vpop.f32.mrf.mxu3  ;;  %v850_v61 = vadd.f32 %v849_v59, %v817_v58  ;;  %v818_v63 = vpop.f32.mrf.mxu1 }
  0xe9   :  { %v1999_v0 = vadd.f32 %v882_v60, %v850_v61 }
  0xee   :  { %v851_v1 = vpop.f32.mrf.mxu2  ;;  %v895_v3 = vpop.f32.mrf.mxu0 }
  0xef   :  { %v884_v2 = vpop.f32.mrf.mxu3  ;;  %v928_v4 = vpop.f32.mrf.mxu1  ;;  %v896_v5 = vadd.f32 %v895_v3, %v1976_v55 }
  0xf1   :  { %v929_v10 = vadd.f32 %v928_v4, %v896_v5 }
  0xf6   :  { %v961_v6 = vpop.f32.mrf.mxu2  ;;  %v897_v9 = vpop.f32.mrf.mxu0 }
  0xf7   :  { %v994_v8 = vpop.f32.mrf.mxu3  ;;  %v930_v30 = vpop.f32.mrf.mxu1  ;;  %v898_v11 = vadd.f32 %v897_v9, %v1979_v7  ;;  %v962_v12 = vadd.f32 %v961_v6, %v929_v10 }
  0xf9   :  { %v931_v13 = vadd.f32 %v930_v30, %v898_v11  ;;  %v995_v17 = vadd.f32 %v994_v8, %v962_v12 }
  0xfb   :  { %v1018_v22 = vmax.f32 %v995_v17, 0.0 }
  0xfe   :  { %v963_v14 = vpop.f32.mrf.mxu2  ;;  %v900_v19 = vpop.f32.mrf.mxu0 }
  0xff   :  { %v996_v16 = vpop.f32.mrf.mxu3  ;;  %v964_v18 = vadd.f32 %v963_v14, %v931_v13  ;;  %v933_v20 = vpop.f32.mrf.mxu1  ;;  %v901_v55 = vadd.f32 %v900_v19, %v1982_v15 }
 0x101   :  { %v997_v21 = vadd.f32 %v996_v16, %v964_v18  ;;  %v934_v29 = vadd.f32 %v933_v20, %v901_v55 }
 0x103   :  { %v1019_v24 = vmax.f32 %v997_v21, 0.0 }
 0x105   :  { %v1532_v25 = vpack.c.bf16 %v1019_v24, %v1018_v22 }
 0x106   :  { %v966_v26 = vpop.f32.mrf.mxu2  ;;  %v902_v7 = vpop.f32.mrf.mxu0 }
 0x107   :  { %v999_v27 = vpop.f32.mrf.mxu3  ;;  %1533 = vst [vmem:[%s2028_s3] sm:$0xff] %v1532_v25   ;;  %v935_v28 = vpop.f32.mrf.mxu1  ;;  %v903_v31 = vadd.f32 %v902_v7, %v1985_v23  ;;  %v967_v33 = vadd.f32 %v966_v26, %v934_v29 }
 0x109   :  { %v936_v34 = vadd.f32 %v935_v28, %v903_v31  ;;  %v1000_v37 = vadd.f32 %v999_v27, %v967_v33 }
 0x10b   :  { %v1020_v42 = vmax.f32 %v1000_v37, 0.0 }
 0x10e   :  { %v968_v35 = vpop.f32.mrf.mxu2  ;;  %v905_v39 = vpop.f32.mrf.mxu0 }
 0x10f   :  { %v1001_v36 = vpop.f32.mrf.mxu3  ;;  %v969_v38 = vadd.f32 %v968_v35, %v936_v34  ;;  %v938_v41 = vpop.f32.mrf.mxu1  ;;  %v906_v45 = vadd.f32 %v905_v39, %v1988_v32 }
 0x111   :  { %v1002_v15 = vadd.f32 %v1001_v36, %v969_v38  ;;  %v939_v50 = vadd.f32 %v938_v41, %v906_v45 }
 0x113   :  { %v1021_v43 = vmax.f32 %v1002_v15, 0.0 }
 0x115   :  { %v1537_v44 = vpack.c.bf16 %v1021_v43, %v1020_v42 }
 0x116   :  { %v971_v46 = vpop.f32.mrf.mxu2  ;;  %v907_v23 = vpop.f32.mrf.mxu0 }
 0x117   :  { %v1004_v47 = vpop.f32.mrf.mxu3  ;;  %1549 = vst [vmem:[%s2028_s3 + $0x8] sm:$0xff] %v1537_v44   ;;  %v940_v49 = vpop.f32.mrf.mxu1  ;;  %v908_v51 = vadd.f32 %v907_v23, %v1991_v40  ;;  %v972_v52 = vadd.f32 %v971_v46, %v939_v50 }
 0x119   :  { %v941_v53 = vadd.f32 %v940_v49, %v908_v51  ;;  %v1005_v58 = vadd.f32 %v1004_v47, %v972_v52 }
 0x11b   :  { %v1022_v62 = vmax.f32 %v1005_v58, 0.0 }
 0x11e   :  { %v973_v54 = vpop.f32.mrf.mxu2  ;;  %v910_v60 = vpop.f32.mrf.mxu0 }
 0x11f   :  { %v1006_v56 = vpop.f32.mrf.mxu3  ;;  %v974_v59 = vadd.f32 %v973_v54, %v941_v53  ;;  %v943_v61 = vpop.f32.mrf.mxu1  ;;  %v911_v2 = vadd.f32 %v910_v60, %v1994_v48 }
 0x121   :  { %v1007_v32 = vadd.f32 %v1006_v56, %v974_v59  ;;  %v944_v6 = vadd.f32 %v943_v61, %v911_v2 }
 0x123   :  { %v1023_v63 = vmax.f32 %v1007_v32, 0.0 }
 0x125   :  { %v1542_v1 = vpack.c.bf16 %v1023_v63, %v1022_v62 }
 0x126   :  { %v976_v3 = vpop.f32.mrf.mxu2  ;;  %v912_v40 = vpop.f32.mrf.mxu0 }
 0x127   :  { %v1009_v4 = vpop.f32.mrf.mxu3  ;;  %1550 = vst [vmem:[%s2028_s3 + $0x10] sm:$0xff] %v1542_v1   ;;  %v945_v5 = vpop.f32.mrf.mxu1  ;;  %v913_v8 = vadd.f32 %v912_v40, %v1997_v57  ;;  %v977_v9 = vadd.f32 %v976_v3, %v944_v6 }
 0x129   :  { %v946_v30 = vadd.f32 %v945_v5, %v913_v8  ;;  %v1010_v12 = vadd.f32 %v1009_v4, %v977_v9 }
 0x12b   :  { %v1024_v18 = vmax.f32 %v1010_v12, 0.0 }
 0x12e   :  { %v978_v10 = vpop.f32.mrf.mxu2  ;;  %v915_v14 = vpop.f32.mrf.mxu0 }
 0x12f   :  { %v1011_v11 = vpop.f32.mrf.mxu3  ;;  %v979_v13 = vadd.f32 %v978_v10, %v946_v30  ;;  %v948_v16 = vpop.f32.mrf.mxu1  ;;  %v916_v17 = vadd.f32 %v915_v14, %v1999_v0 }
 0x131   :  { %v1012_v48 = vadd.f32 %v1011_v11, %v979_v13  ;;  %v949_v21 = vadd.f32 %v948_v16, %v916_v17 }
 0x133   :  { %v1025_v19 = vmax.f32 %v1012_v48, 0.0 }
 0x135   :  { %v1547_v20 = vpack.c.bf16 %v1025_v19, %v1024_v18 }
 0x136   :  { %v981_v22 = vpop.f32.mrf.mxu2  ;;  %v917_v25 = vpop.f32.mrf.mxu0 }
 0x137   :  { %v1014_v24 = vpop.f32.mrf.mxu3  ;;  %1551 = vst [vmem:[%s2028_s3 + $0x18] sm:$0xff] %v1547_v20   ;;  %v982_v57 = vadd.f32 %v981_v22, %v949_v21  ;;  %v950_v55 = vpop.f32.mrf.mxu1 }
 0x139   :  { %v1015_v26 = vadd.f32 %v1014_v24, %v982_v57 }
 0x13b   :  { %v1026_v27 = vmax.f32 %v1015_v26, 0.0 }
 0x13d   :  { %v1035_v7 = vpack.c.bf16 %v1026_v27, %v1026_v27 }
 0x13e   :  { %v983_v28 = vpop.f32.mrf.mxu2 }
 0x13f   :  { %v1016_v29 = vpop.f32.mrf.mxu3  ;;  %1044 = vst [vmem:[%s2028_s3 + $0x20] sm:$0xf] %v1035_v7 }

// kernel: encoder_forward.8
= control target key start
LH: loop header
LB: loop body
LE: loop exit
PB: predicated region body
PF: predicated region fallthrough
CT: control target
= control target key end

     0   :  { %s4984_s1 = inlined_call_operand.vmem [shape: bf16[2048,256], index: 1, kind: input, shape index: {}]   ;;  %s4985_s0 = inlined_call_operand.vmem [shape: bf16[8,2048], index: 0, kind: input, shape index: {}]   ;;  %s4986_s2 = inlined_call_operand.vmem [shape: f32[1,256], index: 2, kind: input, shape index: {}]   ;;  %s4987_s3 = inlined_call_operand.vmem [shape: bf16[8,256], index: 3, kind: output, shape index: {}]  }
   0x1   :  { %v2102_v0 = vld [vmem:[%s4984_s1 + $0x70] sm:$0xf]  ;;  %v3083_v1 = vld [vmem:[%s4984_s1 + $0x74] sm:$0xf0]  ;;  %v2094_v11 = vld [vmem:[%s4984_s1 + $0x60] sm:$0xf] }
   0x2   :  { %v2166_v2 = vld [vmem:[%s4984_s1 + $0xf0] sm:$0xf]  ;;  %v2103_v3 = vor.u32 %v3083_v1, %v2102_v0  ;;  %v3099_v4 = vld [vmem:[%s4984_s1 + $0xf4] sm:$0xf0]  ;;  %v3081_v13 = vld [vmem:[%s4984_s1 + $0x64] sm:$0xf0] }
   0x3   :  { %v2230_v5 = vld [vmem:[%s4984_s1 + $0x170] sm:$0xf]  ;;  %v3115_v6 = vld [vmem:[%s4984_s1 + $0x174] sm:$0xf0]  ;;  %v2167_v7 = vor.u32 %v3099_v4, %v2166_v2  ;;  %v2158_v14 = vld [vmem:[%s4984_s1 + $0xe0] sm:$0xf]  ;;  %v2095_v16 = vor.u32 %v3081_v13, %v2094_v11 }
   0x4   :  { %v2231_v8 = vor.u32 %v3115_v6, %v2230_v5  ;;  %v2294_v9 = vld [vmem:[%s4984_s1 + $0x1f0] sm:$0xf]  ;;  %v3131_v10 = vld [vmem:[%s4984_s1 + $0x1f4] sm:$0xf0]  ;;  %1620 = vmatpush.bf16.msra.mxu0 %v2103_v3  ;;  %v3097_v15 = vld [vmem:[%s4984_s1 + $0xe4] sm:$0xf0] }
   0x5   :  { %v2295_v12 = vor.u32 %v3131_v10, %v2294_v9  ;;  %1633 = vmatpush.bf16.msra.mxu1 %v2167_v7  ;;  %v2159_v17 = vor.u32 %v3097_v15, %v2158_v14  ;;  %v2222_v18 = vld [vmem:[%s4984_s1 + $0x160] sm:$0xf]  ;;  %v3113_v19 = vld [vmem:[%s4984_s1 + $0x164] sm:$0xf0]  ;;  %v2086_v23 = vld [vmem:[%s4984_s1 + $0x50] sm:$0xf] }
   0x6   :  { %1646 = vmatpush.bf16.msra.mxu2 %v2231_v8  ;;  %v2286_v20 = vld [vmem:[%s4984_s1 + $0x1e0] sm:$0xf]  ;;  %v2223_v21 = vor.u32 %v3113_v19, %v2222_v18  ;;  %v3129_v22 = vld [vmem:[%s4984_s1 + $0x1e4] sm:$0xf0]  ;;  %v3079_v24 = vld [vmem:[%s4984_s1 + $0x54] sm:$0xf0] }
   0x7   :  { %1659 = vmatpush.bf16.msra.mxu3 %v2295_v12  ;;  %v2287_v25 = vor.u32 %v3129_v22, %v2286_v20  ;;  %v2150_v26 = vld [vmem:[%s4984_s1 + $0xd0] sm:$0xf]  ;;  %v3095_v27 = vld [vmem:[%s4984_s1 + $0xd4] sm:$0xf0]  ;;  %v2087_v29 = vor.u32 %v3079_v24, %v2086_v23  ;;  %v2078_v35 = vld [vmem:[%s4984_s1 + $0x40] sm:$0xf] }
   0x8   :  { %v2214_v28 = vld [vmem:[%s4984_s1 + $0x150] sm:$0xf]  ;;  %1621 = vmatpush.bf16.msra.mxu0 %v2095_v16  ;;  %v3111_v30 = vld [vmem:[%s4984_s1 + $0x154] sm:$0xf0]  ;;  %v2151_v33 = vor.u32 %v3095_v27, %v2150_v26  ;;  %v3077_v36 = vld [vmem:[%s4984_s1 + $0x44] sm:$0xf0] }
   0x9   :  { %v2278_v31 = vld [vmem:[%s4984_s1 + $0x1d0] sm:$0xf]  ;;  %v3127_v32 = vld [vmem:[%s4984_s1 + $0x1d4] sm:$0xf0]  ;;  %1634 = vmatpush.bf16.msra.mxu1 %v2159_v17  ;;  %v2215_v34 = vor.u32 %v3111_v30, %v2214_v28  ;;  %v2142_v37 = vld [vmem:[%s4984_s1 + $0xc0] sm:$0xf]  ;;  %v2079_v44 = vor.u32 %v3077_v36, %v2078_v35 }
   0xa   :  { %1647 = vmatpush.bf16.msra.mxu2 %v2223_v21  ;;  %v2279_v38 = vor.u32 %v3127_v32, %v2278_v31  ;;  %v3093_v39 = vld [vmem:[%s4984_s1 + $0xc4] sm:$0xf0]  ;;  %v2206_v40 = vld [vmem:[%s4984_s1 + $0x140] sm:$0xf]  ;;  %v2070_v47 = vld [vmem:[%s4984_s1 + $0x30] sm:$0xf] }
   0xb   :  { %1660 = vmatpush.bf16.msra.mxu3 %v2287_v25  ;;  %v3109_v41 = vld [vmem:[%s4984_s1 + $0x144] sm:$0xf0]  ;;  %v2270_v42 = vld [vmem:[%s4984_s1 + $0x1c0] sm:$0xf]  ;;  %v2143_v45 = vor.u32 %v3093_v39, %v2142_v37  ;;  %v3075_v48 = vld [vmem:[%s4984_s1 + $0x34] sm:$0xf0] }
   0xc   :  { %v3125_v43 = vld [vmem:[%s4984_s1 + $0x1c4] sm:$0xf0]  ;;  %1622 = vmatpush.bf16.msra.mxu0 %v2087_v29  ;;  %v2207_v46 = vor.u32 %v3109_v41, %v2206_v40  ;;  %v2134_v49 = vld [vmem:[%s4984_s1 + $0xb0] sm:$0xf]  ;;  %v3091_v51 = vld [vmem:[%s4984_s1 + $0xb4] sm:$0xf0]  ;;  %v2071_v56 = vor.u32 %v3075_v48, %v2070_v47 }
   0xd   :  { %1635 = vmatpush.bf16.msra.mxu1 %v2151_v33  ;;  %v2271_v50 = vor.u32 %v3125_v43, %v2270_v42  ;;  %v2198_v52 = vld [vmem:[%s4984_s1 + $0x130] sm:$0xf]  ;;  %v3107_v53 = vld [vmem:[%s4984_s1 + $0x134] sm:$0xf0]  ;;  %v2135_v57 = vor.u32 %v3091_v51, %v2134_v49  ;;  %v2062_v59 = vld [vmem:[%s4984_s1 + $0x20] sm:$0xf] }
   0xe   :  { %1648 = vmatpush.bf16.msra.mxu2 %v2215_v34  ;;  %v2262_v54 = vld [vmem:[%s4984_s1 + $0x1b0] sm:$0xf]  ;;  %v3123_v55 = vld [vmem:[%s4984_s1 + $0x1b4] sm:$0xf0]  ;;  %v2199_v58 = vor.u32 %v3107_v53, %v2198_v52  ;;  %v3073_v60 = vld [vmem:[%s4984_s1 + $0x24] sm:$0xf0] }
   0xf   :  { %1661 = vmatpush.bf16.msra.mxu3 %v2279_v38  ;;  %v2126_v61 = vld [vmem:[%s4984_s1 + $0xa0] sm:$0xf]  ;;  %v2263_v62 = vor.u32 %v3123_v55, %v2262_v54  ;;  %v3089_v63 = vld [vmem:[%s4984_s1 + $0xa4] sm:$0xf0]  ;;  %v2063_v4 = vor.u32 %v3073_v60, %v2062_v59  ;;  %v2054_v7 = vld [vmem:[%s4984_s1 + $0x10] sm:$0xf] }
  0x10   :  { %1623 = vmatpush.bf16.msra.mxu0 %v2079_v44  ;;  %v2190_v0 = vld [vmem:[%s4984_s1 + $0x120] sm:$0xf]  ;;  %v3105_v1 = vld [vmem:[%s4984_s1 + $0x124] sm:$0xf0]  ;;  %v2127_v5 = vor.u32 %v3089_v63, %v2126_v61  ;;  %v3071_v8 = vld [vmem:[%s4984_s1 + $0x14] sm:$0xf0] }
  0x11   :  { %1636 = vmatpush.bf16.msra.mxu1 %v2143_v45  ;;  %v2254_v2 = vld [vmem:[%s4984_s1 + $0x1a0] sm:$0xf]  ;;  %v3121_v3 = vld [vmem:[%s4984_s1 + $0x1a4] sm:$0xf0]  ;;  %v2191_v6 = vor.u32 %v3105_v1, %v2190_v0  ;;  %v2118_v9 = vld [vmem:[%s4984_s1 + $0x90] sm:$0xf]  ;;  %v2055_v16 = vor.u32 %v3071_v8, %v2054_v7 }
  0x12   :  { %1649 = vmatpush.bf16.msra.mxu2 %v2207_v46  ;;  %v2255_v10 = vor.u32 %v3121_v3, %v2254_v2  ;;  %v3087_v11 = vld [vmem:[%s4984_s1 + $0x94] sm:$0xf0]  ;;  %v2182_v12 = vld [vmem:[%s4984_s1 + $0x110] sm:$0xf]  ;;  %v2046_v17 = vld [vmem:[%s4984_s1] sm:$0xf] }
  0x13   :  { %1662 = vmatpush.bf16.msra.mxu3 %v2271_v50  ;;  %v3103_v13 = vld [vmem:[%s4984_s1 + $0x114] sm:$0xf0]  ;;  %v2246_v14 = vld [vmem:[%s4984_s1 + $0x190] sm:$0xf]  ;;  %v3069_v18 = vld [vmem:[%s4984_s1 + $0x4] sm:$0xf0]  ;;  %v2119_v19 = vor.u32 %v3087_v11, %v2118_v9 }
  0x14   :  { %1624 = vmatpush.bf16.msra.mxu0 %v2071_v56  ;;  %v3119_v15 = vld [vmem:[%s4984_s1 + $0x194] sm:$0xf0]  ;;  %v2183_v20 = vor.u32 %v3103_v13, %v2182_v12  ;;  %v2110_v21 = vld [vmem:[%s4984_s1 + $0x80] sm:$0xf]  ;;  %v3085_v22 = vld [vmem:[%s4984_s1 + $0x84] sm:$0xf0]  ;;  %v2047_v31 = vor.u32 %v3069_v18, %v2046_v17 }
  0x15   :  { %1637 = vmatpush.bf16.msra.mxu1 %v2135_v57  ;;  %v2174_v23 = vld [vmem:[%s4984_s1 + $0x100] sm:$0xf]  ;;  %v2247_v24 = vor.u32 %v3119_v15, %v2246_v14  ;;  %v3101_v25 = vld [vmem:[%s4984_s1 + $0x104] sm:$0xf0]  ;;  %v2358_v28 = vld [vmem:[%s4984_s1 + $0x270] sm:$0xf]  ;;  %v2111_v35 = vor.u32 %v3085_v22, %v2110_v21 }
  0x16   :  { %1650 = vmatpush.bf16.msra.mxu2 %v2199_v58  ;;  %v2238_v26 = vld [vmem:[%s4984_s1 + $0x180] sm:$0xf]  ;;  %v3117_v27 = vld [vmem:[%s4984_s1 + $0x184] sm:$0xf0]  ;;  %v3147_v29 = vld [vmem:[%s4984_s1 + $0x274] sm:$0xf0]  ;;  %v2175_v36 = vor.u32 %v3101_v25, %v2174_v23 }
  0x17   :  { %1663 = vmatpush.bf16.msra.mxu3 %v2263_v62  ;;  %v2422_v30 = vld [vmem:[%s4984_s1 + $0x2f0] sm:$0xf]  ;;  %v3163_v32 = vld [vmem:[%s4984_s1 + $0x2f4] sm:$0xf0]  ;;  %v2239_v39 = vor.u32 %v3117_v27, %v2238_v26  ;;  %v2359_v40 = vor.u32 %v3147_v29, %v2358_v28  ;;  %v2350_v43 = vld [vmem:[%s4984_s1 + $0x260] sm:$0xf] }
  0x18   :  { %1625 = vmatpush.bf16.msra.mxu0 %v2063_v4  ;;  %v2486_v33 = vld [vmem:[%s4984_s1 + $0x370] sm:$0xf]  ;;  %v3179_v34 = vld [vmem:[%s4984_s1 + $0x374] sm:$0xf0]  ;;  %v2423_v41 = vor.u32 %v3163_v32, %v2422_v30  ;;  %v3145_v44 = vld [vmem:[%s4984_s1 + $0x264] sm:$0xf0] }
  0x19   :  { %1638 = vmatpush.bf16.msra.mxu1 %v2127_v5  ;;  %v2550_v37 = vld [vmem:[%s4984_s1 + $0x3f0] sm:$0xf]  ;;  %v3195_v38 = vld [vmem:[%s4984_s1 + $0x3f4] sm:$0xf0]  ;;  %v2487_v42 = vor.u32 %v3179_v34, %v2486_v33  ;;  %v2414_v45 = vld [vmem:[%s4984_s1 + $0x2e0] sm:$0xf]  ;;  %v2351_v52 = vor.u32 %v3145_v44, %v2350_v43 }
  0x1a   :  { %1651 = vmatpush.bf16.msra.mxu2 %v2191_v6  ;;  %v2551_v46 = vor.u32 %v3195_v38, %v2550_v37  ;;  %v3161_v47 = vld [vmem:[%s4984_s1 + $0x2e4] sm:$0xf0]  ;;  %v2478_v48 = vld [vmem:[%s4984_s1 + $0x360] sm:$0xf]  ;;  %v2342_v53 = vld [vmem:[%s4984_s1 + $0x250] sm:$0xf] }
  0x1b   :  { %1664 = vmatpush.bf16.msra.mxu3 %v2255_v10  ;;  %v3177_v49 = vld [vmem:[%s4984_s1 + $0x364] sm:$0xf0]  ;;  %v2542_v50 = vld [vmem:[%s4984_s1 + $0x3e0] sm:$0xf]  ;;  %v2415_v54 = vor.u32 %v3161_v47, %v2414_v45  ;;  %v3143_v56 = vld [vmem:[%s4984_s1 + $0x254] sm:$0xf0] }
  0x1c   :  { %1626 = vmatpush.bf16.msra.mxu0 %v2055_v16  ;;  %v3193_v51 = vld [vmem:[%s4984_s1 + $0x3e4] sm:$0xf0]  ;;  %v2479_v55 = vor.u32 %v3177_v49, %v2478_v48  ;;  %v2406_v57 = vld [vmem:[%s4984_s1 + $0x2d0] sm:$0xf]  ;;  %v3159_v60 = vld [vmem:[%s4984_s1 + $0x2d4] sm:$0xf0]  ;;  %v2343_v3 = vor.u32 %v3143_v56, %v2342_v53 }
  0x1d   :  { %1639 = vmatpush.bf16.msra.mxu1 %v2119_v19  ;;  %v15_v58 = vld [vmem:[%s4985_s0 + $0x8] sm:$0xff]  ;;  %v2543_v59 = vor.u32 %v3193_v51, %v2542_v50  ;;  %v2470_v61 = vld [vmem:[%s4984_s1 + $0x350] sm:$0xf]  ;;  %v3175_v62 = vld [vmem:[%s4984_s1 + $0x354] sm:$0xf0]  ;;  %v2407_v7 = vor.u32 %v3159_v60, %v2406_v57 }
  0x1e   :  { %1652 = vmatpush.bf16.msra.mxu2 %v2183_v20  ;;  %v294_v63 = vunpack.c.l.b16 %v15_v58  ;;  %v295_v0 = vunpack.c.h.b16 %v15_v58  ;;  %v2534_v1 = vld [vmem:[%s4984_s1 + $0x3d0] sm:$0xf]  ;;  %v3191_v2 = vld [vmem:[%s4984_s1 + $0x3d4] sm:$0xf0]  ;;  %v14_v5 = vld [vmem:[%s4985_s0] sm:$0xff]  ;;  %v2471_v8 = vor.u32 %v3175_v62, %v2470_v61 }
  0x1f   :  { %1665 = vmatpush.bf16.msra.mxu3 %v2247_v24  ;;  %v2334_v9 = vld [vmem:[%s4984_s1 + $0x240] sm:$0xf]  ;;  %v3141_v10 = vld [vmem:[%s4984_s1 + $0x244] sm:$0xf0]  ;;  %v292_v12 = vunpack.c.l.b16 %v14_v5  ;;  %v293_v13 = vunpack.c.h.b16 %v14_v5  ;;  %v2535_v14 = vor.u32 %v3191_v2, %v2534_v1  ;;  %v2326_v25 = vld [vmem:[%s4984_s1 + $0x230] sm:$0xf] }
  0x20   :  { %1627 = vmatpush.bf16.msra.mxu0 %v2047_v31  ;;  %v3611_v4 = vpack.c.b16 %v294_v63, %v294_v63  ;;  %v3616_v6 = vpack.c.b16 %v295_v0, %v295_v0  ;;  %v2398_v11 = vld [vmem:[%s4984_s1 + $0x2c0] sm:$0xf]  ;;  %v3157_v15 = vld [vmem:[%s4984_s1 + $0x2c4] sm:$0xf0]  ;;  %v2335_v22 = vor.u32 %v3141_v10, %v2334_v9  ;;  %v3139_v26 = vld [vmem:[%s4984_s1 + $0x234] sm:$0xf0] }
  0x21   :  { %1640 = vmatpush.bf16.msra.mxu1 %v2111_v35  ;;  %v2462_v16 = vld [vmem:[%s4984_s1 + $0x340] sm:$0xf]  ;;  %v3173_v17 = vld [vmem:[%s4984_s1 + $0x344] sm:$0xf0]  ;;  %v3643_v20 = vpack.c.b16 %v292_v12, %v292_v12  ;;  %v3646_v21 = vpack.c.b16 %v293_v13, %v293_v13  ;;  %v2399_v23 = vor.u32 %v3157_v15, %v2398_v11  ;;  %v2390_v27 = vld [vmem:[%s4984_s1 + $0x2b0] sm:$0xf]  ;;  %v2327_v34 = vor.u32 %v3139_v26, %v2326_v25 }
  0x22   :  { %1653 = vmatpush.bf16.msra.mxu2 %v2175_v36  ;;  %v2526_v18 = vld [vmem:[%s4984_s1 + $0x3c0] sm:$0xf]  ;;  %v3189_v19 = vld [vmem:[%s4984_s1 + $0x3c4] sm:$0xf0]  ;;  %v2463_v24 = vor.u32 %v3173_v17, %v2462_v16  ;;  %v3155_v29 = vld [vmem:[%s4984_s1 + $0x2b4] sm:$0xf0] }
  0x23   :  { %1666 = vmatpush.bf16.msra.mxu3 %v2239_v39  ;;  %v2527_v28 = vor.u32 %v3189_v19, %v2526_v18  ;;  %v2454_v30 = vld [vmem:[%s4984_s1 + $0x330] sm:$0xf]  ;;  %v3171_v31 = vld [vmem:[%s4984_s1 + $0x334] sm:$0xf0]  ;;  %1628 = vmatmul.bf16.vlgmr.msra.gmra.mxu0 %v3643_v20  ;;  %v2391_v35 = vor.u32 %v3155_v29, %v2390_v27  ;;  %v2318_v37 = vld [vmem:[%s4984_s1 + $0x220] sm:$0xf] }
  0x24   :  { %1672 = vmatpush.bf16.msrb.mxu0 %v2359_v40  ;;  %v2518_v32 = vld [vmem:[%s4984_s1 + $0x3b0] sm:$0xf]  ;;  %v3187_v33 = vld [vmem:[%s4984_s1 + $0x3b4] sm:$0xf0]  ;;  %1641 = vmatmul.bf16.vlgmr.msra.gmra.mxu1 %v3646_v21  ;;  %v2455_v36 = vor.u32 %v3171_v31, %v2454_v30  ;;  %v3137_v38 = vld [vmem:[%s4984_s1 + $0x224] sm:$0xf0] }
  0x25   :  { %1685 = vmatpush.bf16.msrb.mxu1 %v2423_v41  ;;  %1654 = vmatmul.bf16.vlgmr.msra.gmra.mxu2 %v3611_v4  ;;  %v2382_v39 = vld [vmem:[%s4984_s1 + $0x2a0] sm:$0xf]  ;;  %v2519_v40 = vor.u32 %v3187_v33, %v2518_v32  ;;  %v3153_v41 = vld [vmem:[%s4984_s1 + $0x2a4] sm:$0xf0]  ;;  %v2310_v49 = vld [vmem:[%s4984_s1 + $0x210] sm:$0xf] }
  0x26   :  { %1698 = vmatpush.bf16.msrb.mxu2 %v2487_v42  ;;  %1667 = vmatmul.bf16.vlgmr.msra.gmra.mxu3 %v3616_v6  ;;  %v2446_v42 = vld [vmem:[%s4984_s1 + $0x320] sm:$0xf]  ;;  %v3169_v43 = vld [vmem:[%s4984_s1 + $0x324] sm:$0xf0]  ;;  %v2383_v47 = vor.u32 %v3153_v41, %v2382_v39  ;;  %v3135_v50 = vld [vmem:[%s4984_s1 + $0x214] sm:$0xf0] }
  0x27   :  { %1711 = vmatpush.bf16.msrb.mxu3 %v2551_v46  ;;  %v2510_v44 = vld [vmem:[%s4984_s1 + $0x3a0] sm:$0xf]  ;;  %v3185_v45 = vld [vmem:[%s4984_s1 + $0x3a4] sm:$0xf0]  ;;  %v2319_v46 = vor.u32 %v3137_v38, %v2318_v37  ;;  %v2447_v48 = vor.u32 %v3169_v43, %v2446_v42  ;;  %v2374_v51 = vld [vmem:[%s4984_s1 + $0x290] sm:$0xf] }
  0x28   :  { %1673 = vmatpush.bf16.msrb.mxu0 %v2351_v52  ;;  %v2511_v52 = vor.u32 %v3185_v45, %v2510_v44  ;;  %v3151_v53 = vld [vmem:[%s4984_s1 + $0x294] sm:$0xf0]  ;;  %v2502_v56 = vld [vmem:[%s4984_s1 + $0x390] sm:$0xf]  ;;  %v2302_v58 = vld [vmem:[%s4984_s1 + $0x200] sm:$0xf] }
  0x29   :  { %1686 = vmatpush.bf16.msrb.mxu1 %v2415_v54  ;;  %v2438_v54 = vld [vmem:[%s4984_s1 + $0x310] sm:$0xf]  ;;  %v3183_v57 = vld [vmem:[%s4984_s1 + $0x394] sm:$0xf0]  ;;  %v3133_v60 = vld [vmem:[%s4984_s1 + $0x204] sm:$0xf0]  ;;  %v2375_v63 = vor.u32 %v3151_v53, %v2374_v51 }
  0x2a   :  { %1699 = vmatpush.bf16.msrb.mxu2 %v2479_v55  ;;  %v3167_v55 = vld [vmem:[%s4984_s1 + $0x314] sm:$0xf0]  ;;  %v2366_v61 = vld [vmem:[%s4984_s1 + $0x280] sm:$0xf]  ;;  %v3149_v62 = vld [vmem:[%s4984_s1 + $0x284] sm:$0xf0]  ;;  %v2503_v5 = vor.u32 %v3183_v57, %v2502_v56  ;;  %v2303_v13 = vor.u32 %v3133_v60, %v2302_v58 }
  0x2b   :  { %1712 = vmatpush.bf16.msrb.mxu3 %v2543_v59  ;;  %v2311_v59 = vor.u32 %v3135_v50, %v2310_v49  ;;  %v2439_v0 = vor.u32 %v3167_v55, %v2438_v54  ;;  %v2430_v1 = vld [vmem:[%s4984_s1 + $0x300] sm:$0xf]  ;;  %v3165_v2 = vld [vmem:[%s4984_s1 + $0x304] sm:$0xf0]  ;;  %v16_v9 = vld [vmem:[%s4985_s0 + $0x10] sm:$0xff]  ;;  %v2367_v18 = vor.u32 %v3149_v62, %v2366_v61 }
  0x2c   :  { %1674 = vmatpush.bf16.msrb.mxu0 %v2343_v3  ;;  %v17_v3 = vld [vmem:[%s4985_s0 + $0x18] sm:$0xff]  ;;  %v2614_v10 = vld [vmem:[%s4984_s1 + $0x470] sm:$0xf]  ;;  %v2431_v19 = vor.u32 %v3165_v2, %v2430_v1  ;;  %v2606_v31 = vld [vmem:[%s4984_s1 + $0x460] sm:$0xf] }
  0x2d   :  { %1687 = vmatpush.bf16.msrb.mxu1 %v2407_v7  ;;  %v2494_v7 = vld [vmem:[%s4984_s1 + $0x380] sm:$0xf]  ;;  %v3211_v11 = vld [vmem:[%s4984_s1 + $0x474] sm:$0xf0]  ;;  %v2678_v12 = vld [vmem:[%s4984_s1 + $0x4f0] sm:$0xf]  ;;  %v298_v17 = vunpack.c.l.b16 %v17_v3  ;;  %v299_v25 = vunpack.c.h.b16 %v17_v3 }
  0x2e   :  { %1700 = vmatpush.bf16.msrb.mxu2 %v2471_v8  ;;  %v3181_v8 = vld [vmem:[%s4984_s1 + $0x384] sm:$0xf0]  ;;  %v2742_v15 = vld [vmem:[%s4984_s1 + $0x570] sm:$0xf]  ;;  %v3243_v16 = vld [vmem:[%s4984_s1 + $0x574] sm:$0xf0]  ;;  %v2615_v27 = vor.u32 %v3211_v11, %v2614_v10 }
  0x2f   :  { %1713 = vmatpush.bf16.msrb.mxu3 %v2535_v14  ;;  %v3227_v14 = vld [vmem:[%s4984_s1 + $0x4f4] sm:$0xf0]  ;;  %v2495_v26 = vor.u32 %v3181_v8, %v2494_v7  ;;  %v2743_v30 = vor.u32 %v3243_v16, %v2742_v15  ;;  %v3209_v32 = vld [vmem:[%s4984_s1 + $0x464] sm:$0xf0]  ;;  %v2670_v33 = vld [vmem:[%s4984_s1 + $0x4e0] sm:$0xf]  ;;  %v3794_v38 = vpack.c.b16 %v298_v17, %v298_v17  ;;  %v3804_v42 = vpack.c.b16 %v299_v25, %v299_v25 }
  0x30   :  { %1675 = vmatpush.bf16.msrb.mxu0 %v2335_v22  ;;  %v2806_v22 = vld [vmem:[%s4984_s1 + $0x5f0] sm:$0xf]  ;;  %v2679_v29 = vor.u32 %v3227_v14, %v2678_v12  ;;  %v3241_v37 = vld [vmem:[%s4984_s1 + $0x564] sm:$0xf0]  ;;  %v2798_v39 = vld [vmem:[%s4984_s1 + $0x5e0] sm:$0xf]  ;;  %v2607_v43 = vor.u32 %v3209_v32, %v2606_v31 }
  0x31   :  { %1688 = vmatpush.bf16.msrb.mxu1 %v2399_v23  ;;  %v3259_v23 = vld [vmem:[%s4984_s1 + $0x5f4] sm:$0xf0]  ;;  %v2662_v49 = vld [vmem:[%s4984_s1 + $0x4d0] sm:$0xf]  ;;  %v3205_v60 = vld [vmem:[%s4984_s1 + $0x444] sm:$0xf0] }
  0x32   :  { %1701 = vmatpush.bf16.msrb.mxu2 %v2463_v24  ;;  %v296_v24 = vunpack.c.l.b16 %v16_v9  ;;  %v3223_v51 = vld [vmem:[%s4984_s1 + $0x4d4] sm:$0xf0]  ;;  %v2790_v54 = vld [vmem:[%s4984_s1 + $0x5d0] sm:$0xf]  ;;  %v2654_v61 = vld [vmem:[%s4984_s1 + $0x4c0] sm:$0xf] }
  0x33   :  { %1714 = vmatpush.bf16.msrb.mxu3 %v2527_v28  ;;  %v297_v28 = vunpack.c.h.b16 %v16_v9  ;;  %v3239_v53 = vld [vmem:[%s4984_s1 + $0x554] sm:$0xf0]  ;;  %v2663_v57 = vor.u32 %v3223_v51, %v2662_v49  ;;  %v3237_v1 = vld [vmem:[%s4984_s1 + $0x544] sm:$0xf0]  ;;  %v2782_v2 = vld [vmem:[%s4984_s1 + $0x5c0] sm:$0xf] }
  0x34   :  { %1676 = vmatpush.bf16.msrb.mxu0 %v2327_v34  ;;  %v2807_v34 = vor.u32 %v3259_v23, %v2806_v22  ;;  %v3802_v41 = vpack.c.b16 %v296_v24, %v296_v24  ;;  %v3255_v55 = vld [vmem:[%s4984_s1 + $0x5d4] sm:$0xf0]  ;;  %v3253_v3 = vld [vmem:[%s4984_s1 + $0x5c4] sm:$0xf0]  ;;  %v2582_v9 = vld [vmem:[%s4984_s1 + $0x430] sm:$0xf] }
  0x35   :  { %1689 = vmatpush.bf16.msrb.mxu1 %v2391_v35  ;;  %v3225_v35 = vld [vmem:[%s4984_s1 + $0x4e4] sm:$0xf0]  ;;  %v3806_v44 = vpack.c.b16 %v297_v28, %v297_v28  ;;  %v2791_v62 = vor.u32 %v3255_v55, %v2790_v54  ;;  %v3203_v10 = vld [vmem:[%s4984_s1 + $0x434] sm:$0xf0]  ;;  %v2646_v11 = vld [vmem:[%s4984_s1 + $0x4b0] sm:$0xf]  ;;  %v2783_v12 = vor.u32 %v3253_v3, %v2782_v2 }
  0x36   :  { %1702 = vmatpush.bf16.msrb.mxu2 %v2455_v36  ;;  %v2734_v36 = vld [vmem:[%s4984_s1 + $0x560] sm:$0xf]  ;;  %v2671_v45 = vor.u32 %v3225_v35, %v2670_v33  ;;  %v2710_v14 = vld [vmem:[%s4984_s1 + $0x530] sm:$0xf]  ;;  %v3235_v15 = vld [vmem:[%s4984_s1 + $0x534] sm:$0xf0] }
  0x37   :  { %1715 = vmatpush.bf16.msrb.mxu3 %v2519_v40  ;;  %v3257_v40 = vld [vmem:[%s4984_s1 + $0x5e4] sm:$0xf0]  ;;  %v2774_v16 = vld [vmem:[%s4984_s1 + $0x5b0] sm:$0xf]  ;;  %v3251_v17 = vld [vmem:[%s4984_s1 + $0x5b4] sm:$0xf0]  ;;  %v2711_v22 = vor.u32 %v3235_v15, %v2710_v14 }
  0x38   :  { %1677 = vmatpush.bf16.msrb.mxu0 %v2319_v46  ;;  %v2735_v46 = vor.u32 %v3241_v37, %v2734_v36  ;;  %v2799_v50 = vor.u32 %v3257_v40, %v2798_v39  ;;  %v2574_v23 = vld [vmem:[%s4984_s1 + $0x420] sm:$0xf]  ;;  %v3201_v24 = vld [vmem:[%s4984_s1 + $0x424] sm:$0xf0]  ;;  %v2566_v35 = vld [vmem:[%s4984_s1 + $0x410] sm:$0xf] }
  0x39   :  { %1690 = vmatpush.bf16.msrb.mxu1 %v2383_v47  ;;  %v2598_v47 = vld [vmem:[%s4984_s1 + $0x450] sm:$0xf]  ;;  %v2638_v25 = vld [vmem:[%s4984_s1 + $0x4a0] sm:$0xf]  ;;  %v3249_v31 = vld [vmem:[%s4984_s1 + $0x5a4] sm:$0xf0]  ;;  %v2575_v32 = vor.u32 %v3201_v24, %v2574_v23 }
  0x3a   :  { %1703 = vmatpush.bf16.msrb.mxu2 %v2447_v48  ;;  %v3207_v48 = vld [vmem:[%s4984_s1 + $0x454] sm:$0xf0]  ;;  %v2702_v28 = vld [vmem:[%s4984_s1 + $0x520] sm:$0xf]  ;;  %v2630_v37 = vld [vmem:[%s4984_s1 + $0x490] sm:$0xf] }
  0x3b   :  { %1716 = vmatpush.bf16.msrb.mxu3 %v2511_v52  ;;  %v2726_v52 = vld [vmem:[%s4984_s1 + $0x550] sm:$0xf]  ;;  %v2599_v56 = vor.u32 %v3207_v48, %v2598_v47  ;;  %v3199_v36 = vld [vmem:[%s4984_s1 + $0x414] sm:$0xf0]  ;;  %v2558_v48 = vld [vmem:[%s4984_s1 + $0x400] sm:$0xf] }
  0x3c   :  { %1678 = vmatpush.bf16.msrb.mxu0 %v2311_v59  ;;  %v2727_v58 = vor.u32 %v3239_v53, %v2726_v52  ;;  %v2590_v59 = vld [vmem:[%s4984_s1 + $0x440] sm:$0xf]  ;;  %v3215_v40 = vld [vmem:[%s4984_s1 + $0x494] sm:$0xf0]  ;;  %v2567_v49 = vor.u32 %v3199_v36, %v2566_v35  ;;  %v3213_v52 = vld [vmem:[%s4984_s1 + $0x484] sm:$0xf0] }
  0x3d   :  { %1691 = vmatpush.bf16.msrb.mxu1 %v2375_v63  ;;  %v3221_v63 = vld [vmem:[%s4984_s1 + $0x4c4] sm:$0xf0]  ;;  %v3247_v47 = vld [vmem:[%s4984_s1 + $0x594] sm:$0xf0]  ;;  %v2622_v51 = vld [vmem:[%s4984_s1 + $0x480] sm:$0xf]  ;;  %v2631_v53 = vor.u32 %v3215_v40, %v2630_v37 }
  0x3e   :  { %1704 = vmatpush.bf16.msrb.mxu2 %v2439_v0  ;;  %v2718_v0 = vld [vmem:[%s4984_s1 + $0x540] sm:$0xf]  ;;  %v2655_v7 = vor.u32 %v3221_v63, %v2654_v61  ;;  %v19_v61 = vld [vmem:[%s4985_s0 + $0x28] sm:$0xff]  ;;  %v3275_v63 = vld [vmem:[%s4984_s1 + $0x674] sm:$0xf0] }
  0x3f   :  { %1717 = vmatpush.bf16.msrb.mxu3 %v2503_v5  ;;  %v2591_v5 = vor.u32 %v3205_v60, %v2590_v59  ;;  %v2719_v8 = vor.u32 %v3237_v1, %v2718_v0  ;;  %v2686_v55 = vld [vmem:[%s4984_s1 + $0x500] sm:$0xf]  ;;  %v3245_v60 = vld [vmem:[%s4984_s1 + $0x584] sm:$0xf0]  ;;  %v2934_v0 = vld [vmem:[%s4984_s1 + $0x6f0] sm:$0xf] }
  0x40   :  { %1679 = vmatpush.bf16.msrb.mxu0 %v2303_v13  ;;  %v3219_v13 = vld [vmem:[%s4984_s1 + $0x4b4] sm:$0xf0]  ;;  %v2750_v59 = vld [vmem:[%s4984_s1 + $0x580] sm:$0xf]  ;;  %v2998_v3 = vld [vmem:[%s4984_s1 + $0x770] sm:$0xf] }
  0x41   :  { %1692 = vmatpush.bf16.msrb.mxu1 %v2367_v18  ;;  %v2583_v18 = vor.u32 %v3203_v10, %v2582_v9  ;;  %v3291_v2 = vld [vmem:[%s4984_s1 + $0x6f4] sm:$0xf0]  ;;  %v3062_v10 = vld [vmem:[%s4984_s1 + $0x7f0] sm:$0xf]  ;;  %v2751_v14 = vor.u32 %v3245_v60, %v2750_v59  ;;  %v2926_v23 = vld [vmem:[%s4984_s1 + $0x6e0] sm:$0xf] }
  0x42   :  { %1705 = vmatpush.bf16.msrb.mxu2 %v2431_v19  ;;  %v2647_v19 = vor.u32 %v3219_v13, %v2646_v11  ;;  %v3323_v11 = vld [vmem:[%s4984_s1 + $0x7f4] sm:$0xf0]  ;;  %v2854_v37 = vld [vmem:[%s4984_s1 + $0x650] sm:$0xf]  ;;  %v3301_v59 = vld [vmem:[%s4984_s1 + $0x744] sm:$0xf0] }
  0x43   :  { %1718 = vmatpush.bf16.msrb.mxu3 %v2495_v26  ;;  %1680 = vmatmul.bf16.vlgmr.msrb.gmra.mxu0 %v3802_v41  ;;  %v2775_v26 = vor.u32 %v3251_v17, %v2774_v16  ;;  %v303_v16 = vunpack.c.h.b16 %v19_v61  ;;  %v2935_v17 = vor.u32 %v3291_v2, %v2934_v0  ;;  %v3063_v24 = vor.u32 %v3323_v11, %v3062_v10  ;;  %v2918_v40 = vld [vmem:[%s4984_s1 + $0x6d0] sm:$0xf]  ;;  %v3038_v60 = vld [vmem:[%s4984_s1 + $0x7c0] sm:$0xf]  ;;  %v3267_v2 = vld [vmem:[%s4984_s1 + $0x634] sm:$0xf0] }
  0x44   :  { %1724 = vmatpush.bf16.msra.mxu0 %v2615_v27  ;;  %1693 = vmatmul.bf16.vlgmr.msrb.gmra.mxu1 %v3806_v44  ;;  %v3217_v27 = vld [vmem:[%s4984_s1 + $0x4a4] sm:$0xf0]  ;;  %v3030_v10 = vld [vmem:[%s4984_s1 + $0x7b0] sm:$0xf]  ;;  %v3315_v11 = vld [vmem:[%s4984_s1 + $0x7b4] sm:$0xf0] }
  0x45   :  { %1737 = vmatpush.bf16.msra.mxu1 %v2679_v29  ;;  %1706 = vmatmul.bf16.vlgmr.msrb.gmra.mxu2 %v3794_v38  ;;  %v3233_v29 = vld [vmem:[%s4984_s1 + $0x524] sm:$0xf0]  ;;  %v2639_v33 = vor.u32 %v3217_v27, %v2638_v25  ;;  %v2990_v27 = vld [vmem:[%s4984_s1 + $0x760] sm:$0xf] }
  0x46   :  { %1750 = vmatpush.bf16.msra.mxu2 %v2743_v30  ;;  %1719 = vmatmul.bf16.vlgmr.msrb.gmra.mxu3 %v3804_v42  ;;  %v2766_v30 = vld [vmem:[%s4984_s1 + $0x5a0] sm:$0xf] }
  0x47   :  { %1763 = vmatpush.bf16.msra.mxu3 %v2807_v34  ;;  %v2703_v34 = vor.u32 %v3233_v29, %v2702_v28  ;;  %v2767_v39 = vor.u32 %v3249_v31, %v2766_v30  ;;  %v3305_v28 = vld [vmem:[%s4984_s1 + $0x764] sm:$0xf0]  ;;  %v3054_v31 = vld [vmem:[%s4984_s1 + $0x7e0] sm:$0xf] }
  0x48   :  { %1725 = vmatpush.bf16.msra.mxu0 %v2607_v43  ;;  %v2694_v43 = vld [vmem:[%s4984_s1 + $0x510] sm:$0xf]  ;;  %v2991_v36 = vor.u32 %v3305_v28, %v2990_v27 }
  0x49   :  { %1738 = vmatpush.bf16.msra.mxu1 %v2671_v45  ;;  %v3231_v45 = vld [vmem:[%s4984_s1 + $0x514] sm:$0xf0] }
  0x4a   :  { %1751 = vmatpush.bf16.msra.mxu2 %v2735_v46  ;;  %v2758_v46 = vld [vmem:[%s4984_s1 + $0x590] sm:$0xf]  ;;  %v2695_v54 = vor.u32 %v3231_v45, %v2694_v43  ;;  %v3287_v45 = vld [vmem:[%s4984_s1 + $0x6d4] sm:$0xf0] }
  0x4b   :  { %1764 = vmatpush.bf16.msra.mxu3 %v2799_v50  ;;  %v3197_v50 = vld [vmem:[%s4984_s1 + $0x404] sm:$0xf0] }
  0x4c   :  { %1726 = vmatpush.bf16.msra.mxu0 %v2599_v56  ;;  %v3229_v56 = vld [vmem:[%s4984_s1 + $0x504] sm:$0xf0]  ;;  %v2559_v1 = vor.u32 %v3197_v50, %v2558_v48  ;;  %v3046_v48 = vld [vmem:[%s4984_s1 + $0x7d0] sm:$0xf] }
  0x4d   :  { %1739 = vmatpush.bf16.msra.mxu1 %v2663_v57  ;;  %v18_v57 = vld [vmem:[%s4985_s0 + $0x20] sm:$0xff]  ;;  %v2687_v9 = vor.u32 %v3229_v56, %v2686_v55 }
  0x4e   :  { %1752 = vmatpush.bf16.msra.mxu2 %v2727_v58  ;;  %v2759_v58 = vor.u32 %v3247_v47, %v2758_v46  ;;  %v301_v13 = vunpack.c.h.b16 %v18_v57  ;;  %v2982_v46 = vld [vmem:[%s4984_s1 + $0x750] sm:$0xf]  ;;  %v3303_v47 = vld [vmem:[%s4984_s1 + $0x754] sm:$0xf0]  ;;  %v2910_v55 = vld [vmem:[%s4984_s1 + $0x6c0] sm:$0xf] }
  0x4f   :  { %1765 = vmatpush.bf16.msra.mxu3 %v2791_v62  ;;  %v2870_v62 = vld [vmem:[%s4984_s1 + $0x670] sm:$0xf] }
  0x50   :  { %1727 = vmatpush.bf16.msra.mxu0 %v2591_v5  ;;  %v3307_v5 = vld [vmem:[%s4984_s1 + $0x774] sm:$0xf0]  ;;  %v2871_v15 = vor.u32 %v3275_v63, %v2870_v62  ;;  %v4008_v30 = vpack.c.b16 %v301_v13, %v301_v13 }
  0x51   :  { %1740 = vmatpush.bf16.msra.mxu1 %v2655_v7  ;;  %v300_v7 = vunpack.c.l.b16 %v18_v57  ;;  %v3285_v57 = vld [vmem:[%s4984_s1 + $0x6c4] sm:$0xf0] }
  0x52   :  { %1753 = vmatpush.bf16.msra.mxu2 %v2719_v8  ;;  %v2623_v8 = vor.u32 %v3213_v52, %v2622_v51  ;;  %v2919_v51 = vor.u32 %v3287_v45, %v2918_v40  ;;  %v2983_v52 = vor.u32 %v3303_v47, %v2982_v46  ;;  %v2911_v63 = vor.u32 %v3285_v57, %v2910_v55  ;;  %v3295_v40 = vld [vmem:[%s4984_s1 + $0x714] sm:$0xf0]  ;;  %v2814_v46 = vld [vmem:[%s4984_s1 + $0x600] sm:$0xf]  ;;  %v20_v55 = vld [vmem:[%s4985_s0 + $0x30] sm:$0xff] }
  0x53   :  { %1766 = vmatpush.bf16.msra.mxu3 %v2783_v12  ;;  %v302_v12 = vunpack.c.l.b16 %v19_v61  ;;  %v3995_v25 = vpack.c.b16 %v300_v7, %v300_v7  ;;  %v3317_v61 = vld [vmem:[%s4984_s1 + $0x7c4] sm:$0xf0]  ;;  %v3283_v7 = vld [vmem:[%s4984_s1 + $0x6b4] sm:$0xf0]  ;;  %v3006_v57 = vld [vmem:[%s4984_s1 + $0x780] sm:$0xf] }
  0x54   :  { %1728 = vmatpush.bf16.msra.mxu0 %v2583_v18  ;;  %v2999_v18 = vor.u32 %v3307_v5, %v2998_v3  ;;  %v2902_v3 = vld [vmem:[%s4984_s1 + $0x6b0] sm:$0xf]  ;;  %v3039_v5 = vor.u32 %v3317_v61, %v3038_v60  ;;  %v3311_v45 = vld [vmem:[%s4984_s1 + $0x794] sm:$0xf0]  ;;  %v3082_v60 = vld [vmem:[%s4984_s1 + $0x74] sm:$0xf] }
  0x55   :  { %1741 = vmatpush.bf16.msra.mxu1 %v2647_v19  ;;  %v2862_v19 = vld [vmem:[%s4984_s1 + $0x660] sm:$0xf]  ;;  %v4006_v29 = vpack.c.b16 %v302_v12, %v302_v12  ;;  %v2903_v13 = vor.u32 %v3283_v7, %v2902_v3  ;;  %v2104_v61 = vld [vmem:[%s4984_s1 + $0x78] sm:$0xf0]  ;;  %v304_v3 = vunpack.c.l.b16 %v20_v55 }
  0x56   :  { %1754 = vmatpush.bf16.msra.mxu2 %v2711_v22  ;;  %v3273_v22 = vld [vmem:[%s4984_s1 + $0x664] sm:$0xf0] }
  0x57   :  { %1767 = vmatpush.bf16.msra.mxu3 %v2775_v26  ;;  %v3289_v26 = vld [vmem:[%s4984_s1 + $0x6e4] sm:$0xf0] }
  0x58   :  { %1729 = vmatpush.bf16.msra.mxu0 %v2575_v32  ;;  %v3321_v32 = vld [vmem:[%s4984_s1 + $0x7e4] sm:$0xf0]  ;;  %v2927_v35 = vor.u32 %v3289_v26, %v2926_v23 }
  0x59   :  { %1742 = vmatpush.bf16.msra.mxu1 %v2639_v33  ;;  %v4016_v33 = vpack.c.b16 %v303_v16, %v303_v16  ;;  %v3055_v43 = vor.u32 %v3321_v32, %v3054_v31  ;;  %v3265_v16 = vld [vmem:[%s4984_s1 + $0x624] sm:$0xf0]  ;;  %v2822_v32 = vld [vmem:[%s4984_s1 + $0x610] sm:$0xf] }
  0x5a   :  { %1755 = vmatpush.bf16.msra.mxu2 %v2703_v34  ;;  %v2863_v34 = vor.u32 %v3273_v22, %v2862_v19  ;;  %v3281_v19 = vld [vmem:[%s4984_s1 + $0x6a4] sm:$0xf0]  ;;  %v2958_v22 = vld [vmem:[%s4984_s1 + $0x720] sm:$0xf] }
  0x5b   :  { %1768 = vmatpush.bf16.msra.mxu3 %v2767_v39  ;;  %v3271_v39 = vld [vmem:[%s4984_s1 + $0x654] sm:$0xf0]  ;;  %v3297_v23 = vld [vmem:[%s4984_s1 + $0x724] sm:$0xf0] }
  0x5c   :  { %1730 = vmatpush.bf16.msra.mxu0 %v2567_v49  ;;  %v3319_v49 = vld [vmem:[%s4984_s1 + $0x7d4] sm:$0xf0]  ;;  %v2855_v50 = vor.u32 %v3271_v39, %v2854_v37  ;;  %v3313_v26 = vld [vmem:[%s4984_s1 + $0x7a4] sm:$0xf0]  ;;  %v2959_v31 = vor.u32 %v3297_v23, %v2958_v22  ;;  %v2950_v39 = vld [vmem:[%s4984_s1 + $0x710] sm:$0xf]  ;;  %v4205_v23 = vpack.c.b16 %v304_v3, %v304_v3 }
  0x5d   :  { %1743 = vmatpush.bf16.msra.mxu1 %v2631_v53  ;;  %v2846_v53 = vld [vmem:[%s4984_s1 + $0x640] sm:$0xf]  ;;  %v3047_v56 = vor.u32 %v3319_v49, %v3046_v48  ;;  %v3279_v37 = vld [vmem:[%s4984_s1 + $0x694] sm:$0xf0]  ;;  %v3261_v48 = vld [vmem:[%s4984_s1 + $0x604] sm:$0xf0] }
  0x5e   :  { %1756 = vmatpush.bf16.msra.mxu2 %v2695_v54  ;;  %v3269_v54 = vld [vmem:[%s4984_s1 + $0x644] sm:$0xf0]  ;;  %v2878_v49 = vld [vmem:[%s4984_s1 + $0x680] sm:$0xf]  ;;  %v3074_v3 = vld [vmem:[%s4984_s1 + $0x34] sm:$0xf] }
  0x5f   :  { %1769 = vmatpush.bf16.msra.mxu3 %v2759_v58  ;;  %v2974_v58 = vld [vmem:[%s4984_s1 + $0x740] sm:$0xf]  ;;  %v2847_v62 = vor.u32 %v3269_v54, %v2846_v53  ;;  %v3293_v54 = vld [vmem:[%s4984_s1 + $0x704] sm:$0xf0] }
  0x60   :  { %1731 = vmatpush.bf16.msra.mxu0 %v2559_v1  ;;  %v2975_v0 = vor.u32 %v3301_v59, %v2974_v58  ;;  %v2838_v1 = vld [vmem:[%s4984_s1 + $0x630] sm:$0xf]  ;;  %v2942_v53 = vld [vmem:[%s4984_s1 + $0x700] sm:$0xf]  ;;  %v3309_v58 = vld [vmem:[%s4984_s1 + $0x784] sm:$0xf0] }
  0x61   :  { %1744 = vmatpush.bf16.msra.mxu1 %v2623_v8  ;;  %v2966_v8 = vld [vmem:[%s4984_s1 + $0x730] sm:$0xf]  ;;  %v2839_v12 = vor.u32 %v3267_v2, %v2838_v1  ;;  %v21_v59 = vld [vmem:[%s4985_s0 + $0x38] sm:$0xff]  ;;  %v3114_v1 = vld [vmem:[%s4984_s1 + $0x174] sm:$0xf]  ;;  %v2943_v7 = vor.u32 %v3293_v54, %v2942_v53 }
  0x62   :  { %1757 = vmatpush.bf16.msra.mxu2 %v2687_v9  ;;  %v3299_v9 = vld [vmem:[%s4984_s1 + $0x734] sm:$0xf0]  ;;  %v2232_v2 = vld [vmem:[%s4984_s1 + $0x178] sm:$0xf0] }
  0x63   :  { %1770 = vmatpush.bf16.msra.mxu3 %v2751_v14  ;;  %1732 = vmatmul.bf16.vlgmr.msra.gmra.mxu0 %v3995_v25  ;;  %v2967_v14 = vor.u32 %v3299_v9, %v2966_v8  ;;  %v3130_v8 = vld [vmem:[%s4984_s1 + $0x1f4] sm:$0xf]  ;;  %v2296_v9 = vld [vmem:[%s4984_s1 + $0x1f8] sm:$0xf0] }
  0x64   :  { %1776 = vmatpush.bf16.msrb.mxu0 %v2871_v15  ;;  %1745 = vmatmul.bf16.vlgmr.msra.gmra.mxu1 %v4008_v30  ;;  %v2830_v15 = vld [vmem:[%s4984_s1 + $0x620] sm:$0xf]  ;;  %v2299_v22 = vor.u32 %v3130_v8, %v2296_v9  ;;  %v2136_v9 = vld [vmem:[%s4984_s1 + $0xb8] sm:$0xf0] }
  0x65   :  { %1789 = vmatpush.bf16.msrb.mxu1 %v2935_v17  ;;  %1758 = vmatmul.bf16.vlgmr.msra.gmra.mxu2 %v4006_v29  ;;  %v2894_v17 = vld [vmem:[%s4984_s1 + $0x6a0] sm:$0xf]  ;;  %v2831_v27 = vor.u32 %v3265_v16, %v2830_v15  ;;  %v2235_v16 = vor.u32 %v3114_v1, %v2232_v2 }
  0x66   :  { %1802 = vmatpush.bf16.msrb.mxu2 %v2999_v18  ;;  %1771 = vmatmul.bf16.vlgmr.msra.gmra.mxu3 %v4016_v33  ;;  %v3031_v18 = vor.u32 %v3315_v11, %v3030_v10  ;;  %v2895_v28 = vor.u32 %v3281_v19, %v2894_v17  ;;  %v306_v10 = vunpack.c.l.b16 %v21_v59  ;;  %v305_v11 = vunpack.c.h.b16 %v20_v55  ;;  %v3080_v17 = vld [vmem:[%s4984_s1 + $0x64] sm:$0xf] }
  0x67   :  { %1815 = vmatpush.bf16.msrb.mxu3 %v3063_v24  ;;  %v3022_v24 = vld [vmem:[%s4984_s1 + $0x7a0] sm:$0xf]  ;;  %v3096_v19 = vld [vmem:[%s4984_s1 + $0xe4] sm:$0xf] }
  0x68   :  { %1777 = vmatpush.bf16.msrb.mxu0 %v2863_v34  ;;  %v3263_v34 = vld [vmem:[%s4984_s1 + $0x614] sm:$0xf0]  ;;  %v3076_v55 = vld [vmem:[%s4984_s1 + $0x44] sm:$0xf] }
  0x69   :  { %1790 = vmatpush.bf16.msrb.mxu1 %v2927_v35  ;;  %v2886_v35 = vld [vmem:[%s4984_s1 + $0x690] sm:$0xf]  ;;  %v2823_v47 = vor.u32 %v3263_v34, %v2822_v32  ;;  %v3128_v32 = vld [vmem:[%s4984_s1 + $0x1e4] sm:$0xf]  ;;  %v2288_v34 = vld [vmem:[%s4984_s1 + $0x1e8] sm:$0xf0] }
  0x6a   :  { %1803 = vmatpush.bf16.msrb.mxu2 %v2991_v36  ;;  %v3023_v36 = vor.u32 %v3313_v26, %v3022_v24  ;;  %v2160_v24 = vld [vmem:[%s4984_s1 + $0xe8] sm:$0xf0]  ;;  %v3112_v26 = vld [vmem:[%s4984_s1 + $0x164] sm:$0xf] }
  0x6b   :  { %1816 = vmatpush.bf16.msrb.mxu3 %v3055_v43  ;;  %v3014_v43 = vld [vmem:[%s4984_s1 + $0x790] sm:$0xf] }
  0x6c   :  { %1778 = vmatpush.bf16.msrb.mxu0 %v2855_v50  ;;  %v3277_v50 = vld [vmem:[%s4984_s1 + $0x684] sm:$0xf0] }
  0x6d   :  { %1791 = vmatpush.bf16.msrb.mxu1 %v2919_v51  ;;  %v2887_v51 = vor.u32 %v3279_v37, %v2886_v35  ;;  %v2163_v37 = vor.u32 %v3096_v19, %v2160_v24  ;;  %v3088_v19 = vld [vmem:[%s4984_s1 + $0xa4] sm:$0xf]  ;;  %v2128_v24 = vld [vmem:[%s4984_s1 + $0xa8] sm:$0xf0] }
  0x6e   :  { %1804 = vmatpush.bf16.msrb.mxu2 %v2983_v52  ;;  %v2951_v52 = vor.u32 %v3295_v40, %v2950_v39  ;;  %v3078_v40 = vld [vmem:[%s4984_s1 + $0x54] sm:$0xf] }
  0x6f   :  { %1817 = vmatpush.bf16.msrb.mxu3 %v3047_v56  ;;  %v3015_v56 = vor.u32 %v3311_v45, %v3014_v43  ;;  %v2088_v43 = vld [vmem:[%s4984_s1 + $0x58] sm:$0xf0]  ;;  %v3094_v45 = vld [vmem:[%s4984_s1 + $0xd4] sm:$0xf] }
  0x70   :  { %1779 = vmatpush.bf16.msrb.mxu0 %v2847_v62  ;;  %v3098_v62 = vld [vmem:[%s4984_s1 + $0xf4] sm:$0xf] }
  0x71   :  { %1792 = vmatpush.bf16.msrb.mxu1 %v2911_v63  ;;  %v2815_v63 = vor.u32 %v3261_v48, %v2814_v46  ;;  %v2291_v46 = vor.u32 %v3128_v32, %v2288_v34  ;;  %v3110_v48 = vld [vmem:[%s4984_s1 + $0x154] sm:$0xf]  ;;  %v3120_v32 = vld [vmem:[%s4984_s1 + $0x1a4] sm:$0xf]  ;;  %v2256_v34 = vld [vmem:[%s4984_s1 + $0x1a8] sm:$0xf0] }
  0x72   :  { %1805 = vmatpush.bf16.msrb.mxu2 %v2975_v0  ;;  %v2168_v0 = vld [vmem:[%s4984_s1 + $0xf8] sm:$0xf0] }
  0x73   :  { %1818 = vmatpush.bf16.msrb.mxu3 %v3039_v5  ;;  %v2879_v5 = vor.u32 %v3277_v50, %v2878_v49  ;;  %v2171_v15 = vor.u32 %v3098_v62, %v2168_v0  ;;  %v2216_v49 = vld [vmem:[%s4984_s1 + $0x158] sm:$0xf0]  ;;  %v3126_v50 = vld [vmem:[%s4984_s1 + $0x1d4] sm:$0xf]  ;;  %v3124_v62 = vld [vmem:[%s4984_s1 + $0x1c4] sm:$0xf] }
  0x74   :  { %1780 = vmatpush.bf16.msrb.mxu0 %v2839_v12  ;;  %v3007_v12 = vor.u32 %v3309_v58, %v3006_v57  ;;  %v2219_v54 = vor.u32 %v3110_v48, %v2216_v49  ;;  %v3092_v57 = vld [vmem:[%s4984_s1 + $0xc4] sm:$0xf]  ;;  %v3102_v48 = vld [vmem:[%s4984_s1 + $0x114] sm:$0xf]  ;;  %v2184_v49 = vld [vmem:[%s4984_s1 + $0x118] sm:$0xf0] }
  0x75   :  { %1793 = vmatpush.bf16.msrb.mxu1 %v2903_v13  ;;  %v2107_v13 = vor.u32 %v3082_v60, %v2104_v61  ;;  %v3108_v60 = vld [vmem:[%s4984_s1 + $0x144] sm:$0xf]  ;;  %v2208_v61 = vld [vmem:[%s4984_s1 + $0x148] sm:$0xf0] }
  0x76   :  { %1806 = vmatpush.bf16.msrb.mxu2 %v2967_v14  ;;  %v307_v14 = vunpack.c.h.b16 %v21_v59  ;;  %v2144_v59 = vld [vmem:[%s4984_s1 + $0xc8] sm:$0xf0]  ;;  %v2211_v2 = vor.u32 %v3108_v60, %v2208_v61 }
  0x77   :  { %1819 = vmatpush.bf16.msrb.mxu3 %v3031_v18  ;;  %v2096_v18 = vld [vmem:[%s4984_s1 + $0x68] sm:$0xf0]  ;;  %v2147_v1 = vor.u32 %v3092_v57, %v2144_v59  ;;  %v3084_v57 = vld [vmem:[%s4984_s1 + $0x84] sm:$0xf] }
  0x78   :  { %1781 = vmatpush.bf16.msrb.mxu0 %v2831_v27  ;;  %v2224_v27 = vld [vmem:[%s4984_s1 + $0x168] sm:$0xf0]  ;;  %v4226_v35 = vpack.c.b16 %v307_v14, %v307_v14  ;;  %v3100_v59 = vld [vmem:[%s4984_s1 + $0x104] sm:$0xf] }
  0x79   :  { %1794 = vmatpush.bf16.msrb.mxu1 %v2895_v28  ;;  %v4216_v28 = vpack.c.b16 %v306_v10, %v306_v10  ;;  %v2227_v39 = vor.u32 %v3112_v26, %v2224_v27  ;;  %v3106_v10 = vld [vmem:[%s4984_s1 + $0x134] sm:$0xf]  ;;  %v3104_v26 = vld [vmem:[%s4984_s1 + $0x124] sm:$0xf]  ;;  %v2192_v27 = vld [vmem:[%s4984_s1 + $0x128] sm:$0xf0] }
  0x7a   :  { %1807 = vmatpush.bf16.msrb.mxu2 %v2959_v31  ;;  %v4218_v31 = vpack.c.b16 %v305_v11, %v305_v11  ;;  %v2200_v11 = vld [vmem:[%s4984_s1 + $0x138] sm:$0xf0]  ;;  %v2176_v61 = vld [vmem:[%s4984_s1 + $0x108] sm:$0xf0] }
  0x7b   :  { %1820 = vmatpush.bf16.msrb.mxu3 %v3023_v36  ;;  %v2099_v36 = vor.u32 %v3080_v17, %v2096_v18  ;;  %v3072_v17 = vld [vmem:[%s4984_s1 + $0x24] sm:$0xf]  ;;  %v2064_v18 = vld [vmem:[%s4984_s1 + $0x28] sm:$0xf0] }
  0x7c   :  { %1782 = vmatpush.bf16.msrb.mxu0 %v2823_v47  ;;  %v2152_v47 = vld [vmem:[%s4984_s1 + $0xd8] sm:$0xf0] }
  0x7d   :  { %1795 = vmatpush.bf16.msrb.mxu1 %v2887_v51  ;;  %v2280_v51 = vld [vmem:[%s4984_s1 + $0x1d8] sm:$0xf0]  ;;  %v2155_v53 = vor.u32 %v3094_v45, %v2152_v47  ;;  %v3086_v45 = vld [vmem:[%s4984_s1 + $0x94] sm:$0xf] }
  0x7e   :  { %1808 = vmatpush.bf16.msrb.mxu2 %v2951_v52  ;;  %v2091_v52 = vor.u32 %v3078_v40, %v2088_v43  ;;  %v2283_v58 = vor.u32 %v3126_v50, %v2280_v51  ;;  %v3070_v40 = vld [vmem:[%s4984_s1 + $0x14] sm:$0xf]  ;;  %v2056_v43 = vld [vmem:[%s4984_s1 + $0x18] sm:$0xf0] }
  0x7f   :  { %1821 = vmatpush.bf16.msrb.mxu3 %v3015_v56  ;;  %v2080_v56 = vld [vmem:[%s4984_s1 + $0x48] sm:$0xf0]  ;;  %v2120_v47 = vld [vmem:[%s4984_s1 + $0x98] sm:$0xf0]  ;;  %v3118_v50 = vld [vmem:[%s4984_s1 + $0x194] sm:$0xf] }
  0x80   :  { %1783 = vmatpush.bf16.msrb.mxu0 %v2815_v63  ;;  %v2272_v63 = vld [vmem:[%s4984_s1 + $0x1c8] sm:$0xf0]  ;;  %v2083_v0 = vor.u32 %v3076_v55, %v2080_v56  ;;  %v2248_v51 = vld [vmem:[%s4984_s1 + $0x198] sm:$0xf0]  ;;  %v2123_v55 = vor.u32 %v3086_v45, %v2120_v47  ;;  %v2187_v56 = vor.u32 %v3102_v48, %v2184_v49  ;;  %v3158_v45 = vld [vmem:[%s4984_s1 + $0x2d4] sm:$0xf] }
  0x81   :  { %1796 = vmatpush.bf16.msrb.mxu1 %v2879_v5  ;;  %v2072_v5 = vld [vmem:[%s4984_s1 + $0x38] sm:$0xf0]  ;;  %v2275_v8 = vor.u32 %v3124_v62, %v2272_v63  ;;  %v2251_v60 = vor.u32 %v3118_v50, %v2248_v51  ;;  %v3116_v62 = vld [vmem:[%s4984_s1 + $0x184] sm:$0xf]  ;;  %v2240_v63 = vld [vmem:[%s4984_s1 + $0x188] sm:$0xf0] }
  0x82   :  { %1809 = vmatpush.bf16.msrb.mxu2 %v2943_v7  ;;  %v3090_v7 = vld [vmem:[%s4984_s1 + $0xb4] sm:$0xf]  ;;  %v2075_v14 = vor.u32 %v3074_v3, %v2072_v5  ;;  %v2424_v5 = vld [vmem:[%s4984_s1 + $0x2f8] sm:$0xf0] }
  0x83   :  { %1822 = vmatpush.bf16.msrb.mxu3 %v3007_v12  ;;  %1784 = vmatmul.bf16.vlgmr.msrb.gmra.mxu0 %v4205_v23  ;;  %v3122_v12 = vld [vmem:[%s4984_s1 + $0x1b4] sm:$0xf]  ;;  %v2408_v47 = vld [vmem:[%s4984_s1 + $0x2d8] sm:$0xf0] }
  0x84   :  { %1828 = vmatpush.bf16.msra.mxu0 %v2107_v13  ;;  %1797 = vmatmul.bf16.vlgmr.msrb.gmra.mxu1 %v4218_v31  ;;  %v2264_v13 = vld [vmem:[%s4984_s1 + $0x1b8] sm:$0xf0]  ;;  %v3174_v48 = vld [vmem:[%s4984_s1 + $0x354] sm:$0xf] }
  0x85   :  { %1841 = vmatpush.bf16.msra.mxu1 %v2171_v15  ;;  %1810 = vmatmul.bf16.vlgmr.msrb.gmra.mxu2 %v4216_v28  ;;  %v2139_v15 = vor.u32 %v3090_v7, %v2136_v9  ;;  %v3178_v7 = vld [vmem:[%s4984_s1 + $0x374] sm:$0xf]  ;;  %v2472_v49 = vld [vmem:[%s4984_s1 + $0x358] sm:$0xf0] }
  0x86   :  { %1854 = vmatpush.bf16.msra.mxu2 %v2235_v16  ;;  %1823 = vmatmul.bf16.vlgmr.msrb.gmra.mxu3 %v4226_v35  ;;  %v2203_v16 = vor.u32 %v3106_v10, %v2200_v11  ;;  %v2179_v10 = vor.u32 %v3100_v59, %v2176_v61  ;;  %v3194_v11 = vld [vmem:[%s4984_s1 + $0x3f4] sm:$0xf]  ;;  %v2536_v51 = vld [vmem:[%s4984_s1 + $0x3d8] sm:$0xf0]  ;;  %v2528_v59 = vld [vmem:[%s4984_s1 + $0x3c8] sm:$0xf0] }
  0x87   :  { %1867 = vmatpush.bf16.msra.mxu3 %v2299_v22  ;;  %v2267_v22 = vor.u32 %v3122_v12, %v2264_v13  ;;  %v2552_v12 = vld [vmem:[%s4984_s1 + $0x3f8] sm:$0xf0]  ;;  %v2243_v13 = vor.u32 %v3116_v62, %v2240_v63  ;;  %v3190_v50 = vld [vmem:[%s4984_s1 + $0x3d4] sm:$0xf] }
  0x88   :  { %1829 = vmatpush.bf16.msra.mxu0 %v2099_v36  ;;  %v2067_v36 = vor.u32 %v3072_v17, %v2064_v18  ;;  %v3144_v17 = vld [vmem:[%s4984_s1 + $0x264] sm:$0xf]  ;;  %v2352_v18 = vld [vmem:[%s4984_s1 + $0x268] sm:$0xf0]  ;;  %v3138_v61 = vld [vmem:[%s4984_s1 + $0x234] sm:$0xf] }
  0x89   :  { %1842 = vmatpush.bf16.msra.mxu1 %v2163_v37  ;;  %v2131_v37 = vor.u32 %v3088_v19, %v2128_v24  ;;  %v3160_v19 = vld [vmem:[%s4984_s1 + $0x2e4] sm:$0xf]  ;;  %v2416_v24 = vld [vmem:[%s4984_s1 + $0x2e8] sm:$0xf0] }
  0x8a   :  { %1855 = vmatpush.bf16.msra.mxu2 %v2227_v39  ;;  %v2195_v39 = vor.u32 %v3104_v26, %v2192_v27  ;;  %v3176_v26 = vld [vmem:[%s4984_s1 + $0x364] sm:$0xf]  ;;  %v2480_v27 = vld [vmem:[%s4984_s1 + $0x368] sm:$0xf0] }
  0x8b   :  { %1868 = vmatpush.bf16.msra.mxu3 %v2291_v46  ;;  %v2259_v46 = vor.u32 %v3120_v32, %v2256_v34  ;;  %v3192_v32 = vld [vmem:[%s4984_s1 + $0x3e4] sm:$0xf]  ;;  %v2544_v34 = vld [vmem:[%s4984_s1 + $0x3e8] sm:$0xf0] }
  0x8c   :  { %1830 = vmatpush.bf16.msra.mxu0 %v2091_v52  ;;  %v2059_v52 = vor.u32 %v3070_v40, %v2056_v43  ;;  %v3142_v40 = vld [vmem:[%s4984_s1 + $0x254] sm:$0xf]  ;;  %v2344_v43 = vld [vmem:[%s4984_s1 + $0x258] sm:$0xf0] }
  0x8d   :  { %1843 = vmatpush.bf16.msra.mxu1 %v2155_v53  ;;  %v3068_v53 = vld [vmem:[%s4984_s1 + $0x4] sm:$0xf] }
  0x8e   :  { %1856 = vmatpush.bf16.msra.mxu2 %v2219_v54  ;;  %v2048_v54 = vld [vmem:[%s4984_s1 + $0x8] sm:$0xf0] }
  0x8f   :  { %1869 = vmatpush.bf16.msra.mxu3 %v2283_v58  ;;  %v2112_v58 = vld [vmem:[%s4984_s1 + $0x88] sm:$0xf0]  ;;  %v2051_v3 = vor.u32 %v3068_v53, %v2048_v54  ;;  %v2411_v53 = vor.u32 %v3158_v45, %v2408_v47  ;;  %v3140_v54 = vld [vmem:[%s4984_s1 + $0x244] sm:$0xf]  ;;  %v2312_v45 = vld [vmem:[%s4984_s1 + $0x218] sm:$0xf0] }
  0x90   :  { %1831 = vmatpush.bf16.msra.mxu0 %v2083_v0  ;;  %v3146_v0 = vld [vmem:[%s4984_s1 + $0x274] sm:$0xf]  ;;  %v2115_v9 = vor.u32 %v3084_v57, %v2112_v58  ;;  %v2464_v57 = vld [vmem:[%s4984_s1 + $0x348] sm:$0xf0]  ;;  %v3188_v58 = vld [vmem:[%s4984_s1 + $0x3c4] sm:$0xf] }
  0x91   :  { %1844 = vmatpush.bf16.msra.mxu1 %v2147_v1  ;;  %v2360_v1 = vld [vmem:[%s4984_s1 + $0x278] sm:$0xf0] }
  0x92   :  { %1857 = vmatpush.bf16.msra.mxu2 %v2211_v2  ;;  %v3162_v2 = vld [vmem:[%s4984_s1 + $0x2f4] sm:$0xf] }
  0x93   :  { %1870 = vmatpush.bf16.msra.mxu3 %v2275_v8  ;;  %v2488_v8 = vld [vmem:[%s4984_s1 + $0x378] sm:$0xf0] }
  0x94   :  { %1832 = vmatpush.bf16.msra.mxu0 %v2075_v14  ;;  %v2363_v14 = vor.u32 %v3146_v0, %v2360_v1  ;;  %v2328_v0 = vld [vmem:[%s4984_s1 + $0x238] sm:$0xf0]  ;;  %v3154_v1 = vld [vmem:[%s4984_s1 + $0x2b4] sm:$0xf] }
  0x95   :  { %1845 = vmatpush.bf16.msra.mxu1 %v2139_v15  ;;  %v2427_v15 = vor.u32 %v3162_v2, %v2424_v5  ;;  %v4488_v2 = vld [vmem:[%s4986_s2] sm:$0x3]  ;;  %v2392_v5 = vld [vmem:[%s4984_s1 + $0x2b8] sm:$0xf0] }
  0x96   :  { %1858 = vmatpush.bf16.msra.mxu2 %v2203_v16  ;;  %v2491_v16 = vor.u32 %v3178_v7, %v2488_v8  ;;  %v3170_v7 = vld [vmem:[%s4984_s1 + $0x334] sm:$0xf]  ;;  %v2456_v8 = vld [vmem:[%s4984_s1 + $0x338] sm:$0xf0] }
  0x97   :  { %1871 = vmatpush.bf16.msra.mxu3 %v2267_v22  ;;  %v2555_v22 = vor.u32 %v3194_v11, %v2552_v12  ;;  %v2331_v11 = vor.u32 %v3138_v61, %v2328_v0  ;;  %v280_v12 = vperm.slane %v4488_v2, 0  ;;  %v2496_v0 = vld [vmem:[%s4984_s1 + $0x388] sm:$0xf0] }
  0x98   :  { %1833 = vmatpush.bf16.msra.mxu0 %v2067_v36  ;;  %v2355_v36 = vor.u32 %v3144_v17, %v2352_v18  ;;  %v3152_v17 = vld [vmem:[%s4984_s1 + $0x2a4] sm:$0xf] }
  0x99   :  { %1846 = vmatpush.bf16.msra.mxu1 %v2131_v37  ;;  %v2419_v37 = vor.u32 %v3160_v19, %v2416_v24  ;;  %v2384_v19 = vld [vmem:[%s4984_s1 + $0x2a8] sm:$0xf0] }
  0x9a   :  { %1859 = vmatpush.bf16.msra.mxu2 %v2195_v39  ;;  %v2483_v39 = vor.u32 %v3176_v26, %v2480_v27  ;;  %v2448_v24 = vld [vmem:[%s4984_s1 + $0x328] sm:$0xf0]  ;;  %v3184_v26 = vld [vmem:[%s4984_s1 + $0x3a4] sm:$0xf] }
  0x9b   :  { %1872 = vmatpush.bf16.msra.mxu3 %v2259_v46  ;;  %v2547_v46 = vor.u32 %v3192_v32, %v2544_v34  ;;  %v2512_v27 = vld [vmem:[%s4984_s1 + $0x3a8] sm:$0xf0] }
  0x9c   :  { %1834 = vmatpush.bf16.msra.mxu0 %v2059_v52  ;;  %v2347_v52 = vor.u32 %v3142_v40, %v2344_v43  ;;  %v3134_v43 = vld [vmem:[%s4984_s1 + $0x214] sm:$0xf] }
  0x9d   :  { %1847 = vmatpush.bf16.msra.mxu1 %v2123_v55  ;;  %v2336_v55 = vld [vmem:[%s4984_s1 + $0x248] sm:$0xf0] }
  0x9e   :  { %1860 = vmatpush.bf16.msra.mxu2 %v2187_v56  ;;  %v3172_v56 = vld [vmem:[%s4984_s1 + $0x344] sm:$0xf] }
  0x9f   :  { %1873 = vmatpush.bf16.msra.mxu3 %v2251_v60  ;;  %v2339_v60 = vor.u32 %v3140_v54, %v2336_v55  ;;  %v2467_v63 = vor.u32 %v3172_v56, %v2464_v57  ;;  %v2504_v54 = vld [vmem:[%s4984_s1 + $0x398] sm:$0xf0]  ;;  %v2315_v55 = vor.u32 %v3134_v43, %v2312_v45  ;;  %v2736_v43 = vld [vmem:[%s4984_s1 + $0x568] sm:$0xf0]  ;;  %v3256_v45 = vld [vmem:[%s4984_s1 + $0x5e4] sm:$0xf] }
  0xa0   :  { %1835 = vmatpush.bf16.msra.mxu0 %v2051_v3  ;;  %v2531_v3 = vor.u32 %v3188_v58, %v2528_v59  ;;  %v1629_v32 = vpop.f32.mrf.mxu0  ;;  %v3148_v58 = vld [vmem:[%s4984_s1 + $0x284] sm:$0xf]  ;;  %v2368_v59 = vld [vmem:[%s4984_s1 + $0x288] sm:$0xf0] }
  0xa1   :  { %1848 = vmatpush.bf16.msra.mxu1 %v2115_v9  ;;  %v3186_v9 = vld [vmem:[%s4984_s1 + $0x3b4] sm:$0xf] }
  0xa2   :  { %1861 = vmatpush.bf16.msra.mxu2 %v2179_v10  ;;  %v2520_v10 = vld [vmem:[%s4984_s1 + $0x3b8] sm:$0xf0] }
  0xa3   :  { %1874 = vmatpush.bf16.msra.mxu3 %v2243_v13  ;;  %1836 = vmatmul.bf16.vlgmr.msra.gmra.mxu0 %v3643_v20  ;;  %v2539_v20 = vor.u32 %v3190_v50, %v2536_v51  ;;  %v2395_v13 = vor.u32 %v3154_v1, %v2392_v5  ;;  %v2523_v18 = vor.u32 %v3186_v9, %v2520_v10  ;;  %v3166_v50 = vld [vmem:[%s4984_s1 + $0x314] sm:$0xf]  ;;  %v2440_v51 = vld [vmem:[%s4984_s1 + $0x318] sm:$0xf0] }
  0xa4   :  { %1880 = vmatpush.bf16.msrb.mxu0 %v2363_v14  ;;  %1849 = vmatmul.bf16.vlgmr.msra.gmra.mxu1 %v3646_v21  ;;  %v2400_v21 = vld [vmem:[%s4984_s1 + $0x2c8] sm:$0xf0]  ;;  %v2459_v14 = vor.u32 %v3170_v7, %v2456_v8  ;;  %v2443_v57 = vor.u32 %v3166_v50, %v2440_v51  ;;  %v2616_v5 = vld [vmem:[%s4984_s1 + $0x478] sm:$0xf0]  ;;  %v3226_v7 = vld [vmem:[%s4984_s1 + $0x4f4] sm:$0xf] }
  0xa5   :  { %1893 = vmatpush.bf16.msrb.mxu1 %v2427_v15  ;;  %1862 = vmatmul.bf16.vlgmr.msra.gmra.mxu2 %v3611_v4  ;;  %v2475_v4 = vor.u32 %v3174_v48, %v2472_v49  ;;  %v3136_v15 = vld [vmem:[%s4984_s1 + $0x224] sm:$0xf]  ;;  %v2515_v48 = vor.u32 %v3184_v26, %v2512_v27  ;;  %v2376_v49 = vld [vmem:[%s4984_s1 + $0x298] sm:$0xf0]  ;;  %v3206_v50 = vld [vmem:[%s4984_s1 + $0x454] sm:$0xf] }
  0xa6   :  { %1906 = vmatpush.bf16.msrb.mxu2 %v2491_v16  ;;  %1875 = vmatmul.bf16.vlgmr.msra.gmra.mxu3 %v3616_v6  ;;  %v3156_v6 = vld [vmem:[%s4984_s1 + $0x2c4] sm:$0xf]  ;;  %v2320_v16 = vld [vmem:[%s4984_s1 + $0x228] sm:$0xf0]  ;;  %v2680_v10 = vld [vmem:[%s4984_s1 + $0x4f8] sm:$0xf0] }
  0xa7   :  { %1919 = vmatpush.bf16.msrb.mxu3 %v2555_v22  ;;  %v2403_v62 = vor.u32 %v3156_v6, %v2400_v21  ;;  %v3168_v22 = vld [vmem:[%s4984_s1 + $0x324] sm:$0xf]  ;;  %v2323_v34 = vor.u32 %v3136_v15, %v2320_v16  ;;  %v3258_v16 = vld [vmem:[%s4984_s1 + $0x5f4] sm:$0xf]  ;;  %v2683_v26 = vor.u32 %v3226_v7, %v2680_v10  ;;  %v2600_v51 = vld [vmem:[%s4984_s1 + $0x458] sm:$0xf0] }
  0xa8   :  { %1881 = vmatpush.bf16.msrb.mxu0 %v2355_v36  ;;  %v1630_v36 = vadd.f32 %v1629_v32, %v280_v12  ;;  %v2451_v40 = vor.u32 %v3168_v22, %v2448_v24  ;;  %v1655_v47 = vpop.f32.mrf.mxu2  ;;  %v3132_v6 = vld [vmem:[%s4984_s1 + $0x204] sm:$0xf]  ;;  %v1631_v8 = vpop.f32.mrf.mxu0  ;;  %v2744_v12 = vld [vmem:[%s4984_s1 + $0x578] sm:$0xf0]  ;;  %v3202_v7 = vld [vmem:[%s4984_s1 + $0x434] sm:$0xf] }
  0xa9   :  { %1894 = vmatpush.bf16.msrb.mxu1 %v2419_v37  ;;  %v1642_v37 = vpop.f32.mrf.mxu1  ;;  %v3208_v32 = vld [vmem:[%s4984_s1 + $0x464] sm:$0xf]  ;;  %v2584_v8 = vld [vmem:[%s4984_s1 + $0x438] sm:$0xf0] }
  0xaa   :  { %1907 = vmatpush.bf16.msrb.mxu2 %v2483_v39  ;;  %v2387_v39 = vor.u32 %v3152_v17, %v2384_v19  ;;  %v2808_v17 = vld [vmem:[%s4984_s1 + $0x5f8] sm:$0xf0] }
  0xab   :  { %1920 = vmatpush.bf16.msrb.mxu3 %v2547_v46  ;;  %v3150_v46 = vld [vmem:[%s4984_s1 + $0x294] sm:$0xf] }
  0xac   :  { %1882 = vmatpush.bf16.msrb.mxu0 %v2347_v52  ;;  %v1643_v52 = vadd.f32 %v1642_v37, %v1630_v36  ;;  %v2379_v56 = vor.u32 %v3150_v46, %v2376_v49  ;;  %v3224_v36 = vld [vmem:[%s4984_s1 + $0x4e4] sm:$0xf]  ;;  %v2811_v37 = vor.u32 %v3258_v16, %v2808_v17  ;;  %v2800_v46 = vld [vmem:[%s4984_s1 + $0x5e8] sm:$0xf0]  ;;  %v3250_v16 = vld [vmem:[%s4984_s1 + $0x5b4] sm:$0xf] }
  0xad   :  { %1895 = vmatpush.bf16.msrb.mxu1 %v2411_v53  ;;  %v1668_v53 = vpop.f32.mrf.mxu3 }
  0xae   :  { %1908 = vmatpush.bf16.msrb.mxu2 %v2475_v4  ;;  %v3182_v4 = vld [vmem:[%s4984_s1 + $0x394] sm:$0xf]  ;;  %v1656_v21 = vadd.f32 %v1655_v47, %v1643_v52 }
  0xaf   :  { %1921 = vmatpush.bf16.msrb.mxu3 %v2539_v20  ;;  %v2304_v20 = vld [vmem:[%s4984_s1 + $0x208] sm:$0xf0]  ;;  %v2507_v61 = vor.u32 %v3182_v4, %v2504_v54  ;;  %v3222_v52 = vld [vmem:[%s4984_s1 + $0x4d4] sm:$0xf]  ;;  %v2664_v4 = vld [vmem:[%s4984_s1 + $0x4d8] sm:$0xf0] }
  0xb0   :  { %1883 = vmatpush.bf16.msrb.mxu0 %v2339_v60  ;;  %v3164_v60 = vld [vmem:[%s4984_s1 + $0x304] sm:$0xf]  ;;  %v4578_v1 = vadd.f32 %v1668_v53, %v1656_v21  ;;  %v2307_v9 = vor.u32 %v3132_v6, %v2304_v20  ;;  %v2803_v53 = vor.u32 %v3256_v45, %v2800_v46  ;;  %v3238_v54 = vld [vmem:[%s4984_s1 + $0x554] sm:$0xf]  ;;  %v2603_v20 = vor.u32 %v3206_v50, %v2600_v51  ;;  %v2768_v46 = vld [vmem:[%s4984_s1 + $0x5a8] sm:$0xf0] }
  0xb1   :  { %1896 = vmatpush.bf16.msrb.mxu1 %v2403_v62  ;;  %v2432_v62 = vld [vmem:[%s4984_s1 + $0x308] sm:$0xf0]  ;;  %v3254_v6 = vld [vmem:[%s4984_s1 + $0x5d4] sm:$0xf]  ;;  %v2667_v21 = vor.u32 %v3222_v52, %v2664_v4  ;;  %v3248_v45 = vld [vmem:[%s4984_s1 + $0x5a4] sm:$0xf] }
  0xb2   :  { %1909 = vmatpush.bf16.msrb.mxu2 %v2467_v63  ;;  %v3180_v63 = vld [vmem:[%s4984_s1 + $0x384] sm:$0xf]  ;;  %v2435_v15 = vor.u32 %v3164_v60, %v2432_v62  ;;  %v2720_v60 = vld [vmem:[%s4984_s1 + $0x548] sm:$0xf0]  ;;  %v3198_v52 = vld [vmem:[%s4984_s1 + $0x414] sm:$0xf] }
  0xb3   :  { %1922 = vmatpush.bf16.msrb.mxu3 %v2531_v3  ;;  %v3210_v3 = vld [vmem:[%s4984_s1 + $0x474] sm:$0xf]  ;;  %v2499_v19 = vor.u32 %v3180_v63, %v2496_v0  ;;  %v2784_v62 = vld [vmem:[%s4984_s1 + $0x5c8] sm:$0xf0] }
  0xb4   :  { %1884 = vmatpush.bf16.msrb.mxu0 %v2331_v11  ;;  %v3242_v11 = vld [vmem:[%s4984_s1 + $0x574] sm:$0xf]  ;;  %v2619_v22 = vor.u32 %v3210_v3, %v2616_v5 }
  0xb5   :  { %1897 = vmatpush.bf16.msrb.mxu1 %v2395_v13  ;;  %v1644_v13 = vpop.f32.mrf.mxu1  ;;  %v1670_v24 = vpop.f32.mrf.mxu3  ;;  %v2747_v27 = vor.u32 %v3242_v11, %v2744_v12  ;;  %v3214_v4 = vld [vmem:[%s4984_s1 + $0x494] sm:$0xf] }
  0xb6   :  { %1910 = vmatpush.bf16.msrb.mxu2 %v2459_v14  ;;  %v2371_v14 = vor.u32 %v3148_v58, %v2368_v59  ;;  %v2592_v58 = vld [vmem:[%s4984_s1 + $0x448] sm:$0xf0]  ;;  %v3236_v59 = vld [vmem:[%s4984_s1 + $0x544] sm:$0xf]  ;;  %v2648_v13 = vld [vmem:[%s4984_s1 + $0x4b8] sm:$0xf0] }
  0xb7   :  { %1923 = vmatpush.bf16.msrb.mxu3 %v2523_v18  ;;  %v1657_v18 = vpop.f32.mrf.mxu2  ;;  %v2723_v5 = vor.u32 %v3236_v59, %v2720_v60  ;;  %v3200_v24 = vld [vmem:[%s4984_s1 + $0x424] sm:$0xf]  ;;  %v2624_v60 = vld [vmem:[%s4984_s1 + $0x488] sm:$0xf0] }
  0xb8   :  { %1885 = vmatpush.bf16.msrb.mxu0 %v2323_v34  ;;  %v2608_v34 = vld [vmem:[%s4984_s1 + $0x468] sm:$0xf0]  ;;  %v2587_v18 = vor.u32 %v3202_v7, %v2584_v8  ;;  %v3212_v59 = vld [vmem:[%s4984_s1 + $0x484] sm:$0xf]  ;;  %v3274_v8 = vld [vmem:[%s4984_s1 + $0x674] sm:$0xf] }
  0xb9   :  { %1898 = vmatpush.bf16.msrb.mxu1 %v2387_v39  ;;  %v2672_v39 = vld [vmem:[%s4984_s1 + $0x4e8] sm:$0xf0]  ;;  %v2611_v47 = vor.u32 %v3208_v32, %v2608_v34 }
  0xba   :  { %1911 = vmatpush.bf16.msrb.mxu2 %v2451_v40  ;;  %v3240_v40 = vld [vmem:[%s4984_s1 + $0x564] sm:$0xf] }
  0xbb   :  { %1924 = vmatpush.bf16.msrb.mxu3 %v2515_v48  ;;  %v2675_v48 = vor.u32 %v3224_v36, %v2672_v39  ;;  %v2739_v49 = vor.u32 %v3240_v40, %v2736_v43  ;;  %v2640_v36 = vld [vmem:[%s4984_s1 + $0x4a8] sm:$0xf0] }
  0xbc   :  { %1886 = vmatpush.bf16.msrb.mxu0 %v2315_v55  ;;  %v2728_v55 = vld [vmem:[%s4984_s1 + $0x558] sm:$0xf0]  ;;  %v2704_v39 = vld [vmem:[%s4984_s1 + $0x528] sm:$0xf0] }
  0xbd   :  { %1899 = vmatpush.bf16.msrb.mxu1 %v2379_v56  ;;  %v2731_v56 = vor.u32 %v3238_v54, %v2728_v55  ;;  %v2771_v55 = vor.u32 %v3248_v45, %v2768_v46 }
  0xbe   :  { %1912 = vmatpush.bf16.msrb.mxu2 %v2443_v57  ;;  %v3204_v57 = vld [vmem:[%s4984_s1 + $0x444] sm:$0xf] }
  0xbf   :  { %1925 = vmatpush.bf16.msrb.mxu3 %v2507_v61  ;;  %v3252_v61 = vld [vmem:[%s4984_s1 + $0x5c4] sm:$0xf]  ;;  %v2595_v63 = vor.u32 %v3204_v57, %v2592_v58 }
  0xc0   :  { %1887 = vmatpush.bf16.msrb.mxu0 %v2307_v9  ;;  %v1681_v0 = vpop.f32.mrf.mxu0  ;;  %v3218_v9 = vld [vmem:[%s4984_s1 + $0x4b4] sm:$0xf]  ;;  %v2787_v12 = vor.u32 %v3252_v61, %v2784_v62  ;;  %v3196_v58 = vld [vmem:[%s4984_s1 + $0x404] sm:$0xf] }
  0xc1   :  { %1900 = vmatpush.bf16.msrb.mxu1 %v2371_v14  ;;  %v1682_v10 = vadd.f32 %v1681_v0, %v4578_v1  ;;  %v1694_v11 = vpop.f32.mrf.mxu1  ;;  %v3234_v14 = vld [vmem:[%s4984_s1 + $0x534] sm:$0xf]  ;;  %v2776_v1 = vld [vmem:[%s4984_s1 + $0x5b8] sm:$0xf0]  ;;  %v3228_v61 = vld [vmem:[%s4984_s1 + $0x504] sm:$0xf] }
  0xc2   :  { %1913 = vmatpush.bf16.msrb.mxu2 %v2435_v15  ;;  %v2712_v15 = vld [vmem:[%s4984_s1 + $0x538] sm:$0xf0]  ;;  %v2779_v34 = vor.u32 %v3250_v16, %v2776_v1  ;;  %v2688_v0 = vld [vmem:[%s4984_s1 + $0x508] sm:$0xf0]  ;;  %v3322_v1 = vld [vmem:[%s4984_s1 + $0x7f4] sm:$0xf] }
  0xc3   :  { %1926 = vmatpush.bf16.msrb.mxu3 %v2499_v19  ;;  %1888 = vmatmul.bf16.vlgmr.msrb.gmra.mxu0 %v3802_v41  ;;  %v3220_v41 = vld [vmem:[%s4984_s1 + $0x4c4] sm:$0xf]  ;;  %v1695_v17 = vadd.f32 %v1694_v11, %v1682_v10  ;;  %v2651_v19 = vor.u32 %v3218_v9, %v2648_v13  ;;  %v2872_v9 = vld [vmem:[%s4984_s1 + $0x678] sm:$0xf0]  ;;  %v3290_v10 = vld [vmem:[%s4984_s1 + $0x6f4] sm:$0xf]  ;;  %v2691_v16 = vor.u32 %v3228_v61, %v2688_v0 }
  0xc4   :  { %1932 = vmatpush.bf16.msra.mxu0 %v2619_v22  ;;  %1901 = vmatmul.bf16.vlgmr.msrb.gmra.mxu1 %v3806_v44  ;;  %v2656_v44 = vld [vmem:[%s4984_s1 + $0x4c8] sm:$0xf0]  ;;  %v2715_v22 = vor.u32 %v3234_v14, %v2712_v15  ;;  %v3306_v13 = vld [vmem:[%s4984_s1 + $0x774] sm:$0xf]  ;;  %v3000_v14 = vld [vmem:[%s4984_s1 + $0x778] sm:$0xf0]  ;;  %v2627_v15 = vor.u32 %v3212_v59, %v2624_v60 }
  0xc5   :  { %1945 = vmatpush.bf16.msra.mxu1 %v2683_v26  ;;  %1914 = vmatmul.bf16.vlgmr.msrb.gmra.mxu2 %v3794_v38  ;;  %v2792_v38 = vld [vmem:[%s4984_s1 + $0x5d8] sm:$0xf0]  ;;  %v2659_v3 = vor.u32 %v3220_v41, %v2656_v44  ;;  %v2576_v26 = vld [vmem:[%s4984_s1 + $0x428] sm:$0xf0]  ;;  %v3266_v0 = vld [vmem:[%s4984_s1 + $0x634] sm:$0xf] }
  0xc6   :  { %1958 = vmatpush.bf16.msra.mxu2 %v2747_v27  ;;  %1927 = vmatmul.bf16.vlgmr.msrb.gmra.mxu3 %v3804_v42  ;;  %v2795_v42 = vor.u32 %v3254_v6, %v2792_v38  ;;  %v3216_v27 = vld [vmem:[%s4984_s1 + $0x4a4] sm:$0xf]  ;;  %v2632_v6 = vld [vmem:[%s4984_s1 + $0x498] sm:$0xf0]  ;;  %v3230_v38 = vld [vmem:[%s4984_s1 + $0x514] sm:$0xf] }
  0xc7   :  { %1971 = vmatpush.bf16.msra.mxu3 %v2811_v37  ;;  %v3232_v37 = vld [vmem:[%s4984_s1 + $0x524] sm:$0xf]  ;;  %v2643_v50 = vor.u32 %v3216_v27, %v2640_v36  ;;  %v2560_v41 = vld [vmem:[%s4984_s1 + $0x408] sm:$0xf0] }
  0xc8   :  { %1933 = vmatpush.bf16.msra.mxu0 %v2611_v47  ;;  %v1707_v32 = vpop.f32.mrf.mxu2  ;;  %v2579_v47 = vor.u32 %v3200_v24, %v2576_v26  ;;  %v2707_v51 = vor.u32 %v3232_v37, %v2704_v39  ;;  %v2563_v11 = vor.u32 %v3196_v58, %v2560_v41  ;;  %v3003_v24 = vor.u32 %v3306_v13, %v3000_v14  ;;  %v3272_v26 = vld [vmem:[%s4984_s1 + $0x664] sm:$0xf]  ;;  %v2864_v27 = vld [vmem:[%s4984_s1 + $0x668] sm:$0xf0] }
  0xc9   :  { %1946 = vmatpush.bf16.msra.mxu1 %v2675_v48  ;;  %v1708_v40 = vadd.f32 %v1707_v32, %v1695_v17  ;;  %v1720_v43 = vpop.f32.mrf.mxu3  ;;  %v1696_v54 = vpop.f32.mrf.mxu1  ;;  %v3064_v17 = vld [vmem:[%s4984_s1 + $0x7f8] sm:$0xf0]  ;;  %v3288_v32 = vld [vmem:[%s4984_s1 + $0x6e4] sm:$0xf]  ;;  %v2928_v36 = vld [vmem:[%s4984_s1 + $0x6e8] sm:$0xf0]  ;;  %v2867_v45 = vor.u32 %v3272_v26, %v2864_v27 }
  0xca   :  { %1959 = vmatpush.bf16.msra.mxu2 %v2739_v49  ;;  %v1683_v49 = vpop.f32.mrf.mxu0  ;;  %v3304_v37 = vld [vmem:[%s4984_s1 + $0x764] sm:$0xf]  ;;  %v2992_v39 = vld [vmem:[%s4984_s1 + $0x768] sm:$0xf0]  ;;  %v2931_v46 = vor.u32 %v3288_v32, %v2928_v36  ;;  %v2984_v54 = vld [vmem:[%s4984_s1 + $0x758] sm:$0xf0] }
  0xcb   :  { %1972 = vmatpush.bf16.msra.mxu3 %v2803_v53  ;;  %v4729_v48 = vadd.f32 %v1720_v43, %v1708_v40  ;;  %v2568_v53 = vld [vmem:[%s4984_s1 + $0x418] sm:$0xf0]  ;;  %v3320_v40 = vld [vmem:[%s4984_s1 + $0x7e4] sm:$0xf]  ;;  %v3056_v43 = vld [vmem:[%s4984_s1 + $0x7e8] sm:$0xf0] }
  0xcc   :  { %1934 = vmatpush.bf16.msra.mxu0 %v2603_v20  ;;  %v2696_v20 = vld [vmem:[%s4984_s1 + $0x518] sm:$0xf0]  ;;  %v2571_v57 = vor.u32 %v3198_v52, %v2568_v53  ;;  %v3270_v49 = vld [vmem:[%s4984_s1 + $0x654] sm:$0xf]  ;;  %v3059_v52 = vor.u32 %v3320_v40, %v3056_v43  ;;  %v2976_v58 = vld [vmem:[%s4984_s1 + $0x748] sm:$0xf0] }
  0xcd   :  { %1947 = vmatpush.bf16.msra.mxu1 %v2667_v21  ;;  %v3246_v21 = vld [vmem:[%s4984_s1 + $0x594] sm:$0xf]  ;;  %v2699_v44 = vor.u32 %v3230_v38, %v2696_v20  ;;  %v2920_v53 = vld [vmem:[%s4984_s1 + $0x6d8] sm:$0xf0]  ;;  %v2960_v26 = vld [vmem:[%s4984_s1 + $0x728] sm:$0xf0] }
  0xce   :  { %1960 = vmatpush.bf16.msra.mxu2 %v2731_v56  ;;  %v2760_v56 = vld [vmem:[%s4984_s1 + $0x598] sm:$0xf0]  ;;  %v3024_v36 = vld [vmem:[%s4984_s1 + $0x7a8] sm:$0xf0] }
  0xcf   :  { %1973 = vmatpush.bf16.msra.mxu3 %v2795_v42  ;;  %v2635_v42 = vor.u32 %v3214_v4, %v2632_v6  ;;  %v3302_v4 = vld [vmem:[%s4984_s1 + $0x754] sm:$0xf] }
  0xd0   :  { %1935 = vmatpush.bf16.msra.mxu0 %v2595_v63  ;;  %v1709_v62 = vpop.f32.mrf.mxu2  ;;  %v2763_v63 = vor.u32 %v3246_v21, %v2760_v56  ;;  %v2987_v20 = vor.u32 %v3302_v4, %v2984_v54  ;;  %v3284_v21 = vld [vmem:[%s4984_s1 + $0x6c4] sm:$0xf]  ;;  %v2912_v56 = vld [vmem:[%s4984_s1 + $0x6c8] sm:$0xf0]  ;;  %v2952_v4 = vld [vmem:[%s4984_s1 + $0x718] sm:$0xf0] }
  0xd1   :  { %1948 = vmatpush.bf16.msra.mxu1 %v2659_v3  ;;  %v3244_v3 = vld [vmem:[%s4984_s1 + $0x584] sm:$0xf]  ;;  %v1722_v7 = vpop.f32.mrf.mxu3  ;;  %v2915_v62 = vor.u32 %v3284_v21, %v2912_v56  ;;  %v3310_v54 = vld [vmem:[%s4984_s1 + $0x794] sm:$0xf] }
  0xd2   :  { %1961 = vmatpush.bf16.msra.mxu2 %v2723_v5  ;;  %v2752_v5 = vld [vmem:[%s4984_s1 + $0x588] sm:$0xf0]  ;;  %v3292_v56 = vld [vmem:[%s4984_s1 + $0x704] sm:$0xf] }
  0xd3   :  { %1974 = vmatpush.bf16.msra.mxu3 %v2787_v12  ;;  %v2936_v12 = vld [vmem:[%s4984_s1 + $0x6f8] sm:$0xf0] }
  0xd4   :  { %1936 = vmatpush.bf16.msra.mxu0 %v2587_v18  ;;  %v2755_v18 = vor.u32 %v3244_v3, %v2752_v5  ;;  %v2840_v3 = vld [vmem:[%s4984_s1 + $0x638] sm:$0xf0]  ;;  %v3282_v5 = vld [vmem:[%s4984_s1 + $0x6b4] sm:$0xf] }
  0xd5   :  { %1949 = vmatpush.bf16.msra.mxu1 %v2651_v19  ;;  %v2875_v19 = vor.u32 %v3274_v8, %v2872_v9  ;;  %v2904_v8 = vld [vmem:[%s4984_s1 + $0x6b8] sm:$0xf0]  ;;  %v3298_v9 = vld [vmem:[%s4984_s1 + $0x734] sm:$0xf]  ;;  %v2843_v13 = vor.u32 %v3266_v0, %v2840_v3 }
  0xd6   :  { %1962 = vmatpush.bf16.msra.mxu2 %v2715_v22  ;;  %v2939_v22 = vor.u32 %v3290_v10, %v2936_v12  ;;  %v2968_v10 = vld [vmem:[%s4984_s1 + $0x738] sm:$0xf0]  ;;  %v2907_v14 = vor.u32 %v3282_v5, %v2904_v8 }
  0xd7   :  { %1975 = vmatpush.bf16.msra.mxu3 %v2779_v34  ;;  %v3067_v34 = vor.u32 %v3322_v1, %v3064_v17  ;;  %v3032_v12 = vld [vmem:[%s4984_s1 + $0x7b8] sm:$0xf0]  ;;  %v2832_v1 = vld [vmem:[%s4984_s1 + $0x628] sm:$0xf0]  ;;  %v3280_v17 = vld [vmem:[%s4984_s1 + $0x6a4] sm:$0xf] }
  0xd8   :  { %1937 = vmatpush.bf16.msra.mxu0 %v2579_v47  ;;  %v2995_v47 = vor.u32 %v3304_v37, %v2992_v39 }
  0xd9   :  { %1950 = vmatpush.bf16.msra.mxu1 %v2643_v50  ;;  %v2856_v50 = vld [vmem:[%s4984_s1 + $0x658] sm:$0xf0] }
  0xda   :  { %1963 = vmatpush.bf16.msra.mxu2 %v2707_v51  ;;  %v3286_v51 = vld [vmem:[%s4984_s1 + $0x6d4] sm:$0xf]  ;;  %v2859_v6 = vor.u32 %v3270_v49, %v2856_v50  ;;  %v2824_v49 = vld [vmem:[%s4984_s1 + $0x618] sm:$0xf0] }
  0xdb   :  { %1976 = vmatpush.bf16.msra.mxu3 %v2771_v55  ;;  %v3048_v55 = vld [vmem:[%s4984_s1 + $0x7d8] sm:$0xf0]  ;;  %v2923_v38 = vor.u32 %v3286_v51, %v2920_v53  ;;  %v3278_v50 = vld [vmem:[%s4984_s1 + $0x694] sm:$0xf] }
  0xdc   :  { %1938 = vmatpush.bf16.msra.mxu0 %v2571_v57  ;;  %v3300_v57 = vld [vmem:[%s4984_s1 + $0x744] sm:$0xf]  ;;  %v3294_v53 = vld [vmem:[%s4984_s1 + $0x714] sm:$0xf] }
  0xdd   :  { %1951 = vmatpush.bf16.msra.mxu1 %v2635_v42  ;;  %v3316_v42 = vld [vmem:[%s4984_s1 + $0x7c4] sm:$0xf] }
  0xde   :  { %1964 = vmatpush.bf16.msra.mxu2 %v2699_v44  ;;  %v3040_v44 = vld [vmem:[%s4984_s1 + $0x7c8] sm:$0xf0] }
  0xdf   :  { %1977 = vmatpush.bf16.msra.mxu3 %v2763_v63  ;;  %v2979_v63 = vor.u32 %v3300_v57, %v2976_v58  ;;  %v2944_v57 = vld [vmem:[%s4984_s1 + $0x708] sm:$0xf0] }
  0xe0   :  { %1939 = vmatpush.bf16.msra.mxu0 %v2563_v11  ;;  %v1733_v41 = vpop.f32.mrf.mxu0  ;;  %v3314_v11 = vld [vmem:[%s4984_s1 + $0x7b4] sm:$0xf] }
  0xe1   :  { %1952 = vmatpush.bf16.msra.mxu1 %v2627_v15  ;;  %v1734_v59 = vadd.f32 %v1733_v41, %v4729_v48  ;;  %v1746_v61 = vpop.f32.mrf.mxu1  ;;  %v3043_v48 = vor.u32 %v3316_v42, %v3040_v44  ;;  %v2971_v15 = vor.u32 %v3298_v9, %v2968_v10  ;;  %v3308_v41 = vld [vmem:[%s4984_s1 + $0x784] sm:$0xf]  ;;  %v3008_v42 = vld [vmem:[%s4984_s1 + $0x788] sm:$0xf0] }
  0xe2   :  { %1965 = vmatpush.bf16.msra.mxu2 %v2691_v16  ;;  %v3264_v16 = vld [vmem:[%s4984_s1 + $0x624] sm:$0xf] }
  0xe3   :  { %1978 = vmatpush.bf16.msra.mxu3 %v2755_v18  ;;  %1940 = vmatmul.bf16.vlgmr.msra.gmra.mxu0 %v3995_v25  ;;  %v3318_v25 = vld [vmem:[%s4984_s1 + $0x7d4] sm:$0xf]  ;;  %v1747_v7 = vadd.f32 %v1746_v61, %v1734_v59  ;;  %v3035_v18 = vor.u32 %v3314_v11, %v3032_v12  ;;  %v2835_v39 = vor.u32 %v3264_v16, %v2832_v1 }
  0xe4   :  { %1984 = vmatpush.bf16.msrb.mxu0 %v2875_v19  ;;  %1953 = vmatmul.bf16.vlgmr.msra.gmra.mxu1 %v4008_v30  ;;  %v2848_v30 = vld [vmem:[%s4984_s1 + $0x648] sm:$0xf0]  ;;  %v2947_v61 = vor.u32 %v3292_v56, %v2944_v57 }
  0xe5   :  { %1997 = vmatpush.bf16.msrb.mxu1 %v2939_v22  ;;  %1966 = vmatmul.bf16.vlgmr.msra.gmra.mxu2 %v4006_v29  ;;  %v3268_v29 = vld [vmem:[%s4984_s1 + $0x644] sm:$0xf]  ;;  %v2896_v22 = vld [vmem:[%s4984_s1 + $0x6a8] sm:$0xf0] }
  0xe6   :  { %2010 = vmatpush.bf16.msrb.mxu2 %v3003_v24  ;;  %1979 = vmatmul.bf16.vlgmr.msra.gmra.mxu3 %v4016_v33  ;;  %v3051_v33 = vor.u32 %v3318_v25, %v3048_v55  ;;  %v2851_v60 = vor.u32 %v3268_v29, %v2848_v30  ;;  %v3296_v24 = vld [vmem:[%s4984_s1 + $0x724] sm:$0xf]  ;;  %v3016_v25 = vld [vmem:[%s4984_s1 + $0x798] sm:$0xf0]  ;;  %v2816_v29 = vld [vmem:[%s4984_s1 + $0x608] sm:$0xf0] }
  0xe7   :  { %2023 = vmatpush.bf16.msrb.mxu3 %v3067_v34  ;;  %v3312_v34 = vld [vmem:[%s4984_s1 + $0x7a4] sm:$0xf]  ;;  %v3019_v21 = vor.u32 %v3310_v54, %v3016_v25 }
  0xe8   :  { %1985 = vmatpush.bf16.msrb.mxu0 %v2867_v45  ;;  %v1759_v19 = vpop.f32.mrf.mxu2  ;;  %v1735_v37 = vpop.f32.mrf.mxu0  ;;  %v2899_v45 = vor.u32 %v3280_v17, %v2896_v22  ;;  %v3027_v51 = vor.u32 %v3312_v34, %v3024_v36  ;;  %v3276_v30 = vld [vmem:[%s4984_s1 + $0x684] sm:$0xf] }
  0xe9   :  { %1998 = vmatpush.bf16.msrb.mxu1 %v2931_v46  ;;  %v1760_v27 = vadd.f32 %v1759_v19, %v1747_v7  ;;  %v1772_v32 = vpop.f32.mrf.mxu3  ;;  %v1748_v40 = vpop.f32.mrf.mxu1  ;;  %v2963_v46 = vor.u32 %v3296_v24, %v2960_v26 }
  0xea   :  { %2011 = vmatpush.bf16.msrb.mxu2 %v2995_v47  ;;  %v3262_v47 = vld [vmem:[%s4984_s1 + $0x614] sm:$0xf] }
  0xeb   :  { %2024 = vmatpush.bf16.msrb.mxu3 %v3059_v52  ;;  %v1773_v43 = vadd.f32 %v1772_v32, %v1760_v27  ;;  %v2888_v52 = vld [vmem:[%s4984_s1 + $0x698] sm:$0xf0]  ;;  %v2827_v55 = vor.u32 %v3262_v47, %v2824_v49 }
  0xec   :  { %1986 = vmatpush.bf16.msrb.mxu0 %v2859_v6  ;;  %v2891_v6 = vor.u32 %v3278_v50, %v2888_v52 }
  0xed   :  { %1999 = vmatpush.bf16.msrb.mxu1 %v2923_v38  ;;  %v2955_v38 = vor.u32 %v3294_v53, %v2952_v4 }
  0xee   :  { %2012 = vmatpush.bf16.msrb.mxu2 %v2987_v20  ;;  %v3260_v20 = vld [vmem:[%s4984_s1 + $0x604] sm:$0xf] }
  0xef   :  { %2025 = vmatpush.bf16.msrb.mxu3 %v3051_v33  ;;  %v2880_v33 = vld [vmem:[%s4984_s1 + $0x688] sm:$0xf0]  ;;  %v2819_v59 = vor.u32 %v3260_v20, %v2816_v29 }
  0xf0   :  { %1987 = vmatpush.bf16.msrb.mxu0 %v2851_v60  ;;  %v1761_v58 = vpop.f32.mrf.mxu2  ;;  %v2883_v60 = vor.u32 %v3276_v30, %v2880_v33 }
  0xf1   :  { %2000 = vmatpush.bf16.msrb.mxu1 %v2915_v62  ;;  %v1774_v44 = vpop.f32.mrf.mxu3  ;;  %v3011_v62 = vor.u32 %v3308_v41, %v3008_v42 }
  0xf2   :  { %2013 = vmatpush.bf16.msrb.mxu2 %v2979_v63 }
  0xf3   :  { %2026 = vmatpush.bf16.msrb.mxu3 %v3043_v48 }
  0xf4   :  { %1988 = vmatpush.bf16.msrb.mxu0 %v2843_v13 }
  0xf5   :  { %2001 = vmatpush.bf16.msrb.mxu1 %v2907_v14 }
  0xf6   :  { %2014 = vmatpush.bf16.msrb.mxu2 %v2971_v15 }
  0xf7   :  { %2027 = vmatpush.bf16.msrb.mxu3 %v3035_v18 }
  0xf8   :  { %1989 = vmatpush.bf16.msrb.mxu0 %v2835_v39 }
  0xf9   :  { %2002 = vmatpush.bf16.msrb.mxu1 %v2899_v45 }
  0xfa   :  { %2015 = vmatpush.bf16.msrb.mxu2 %v2963_v46 }
  0xfb   :  { %2028 = vmatpush.bf16.msrb.mxu3 %v3027_v51 }
  0xfc   :  { %1990 = vmatpush.bf16.msrb.mxu0 %v2827_v55 }
  0xfd   :  { %2003 = vmatpush.bf16.msrb.mxu1 %v2891_v6 }
  0xfe   :  { %2016 = vmatpush.bf16.msrb.mxu2 %v2955_v38 }
  0xff   :  { %2029 = vmatpush.bf16.msrb.mxu3 %v3019_v21 }
 0x100   :  { %1991 = vmatpush.bf16.msrb.mxu0 %v2819_v59  ;;  %v1785_v63 = vpop.f32.mrf.mxu0 }
 0x101   :  { %2004 = vmatpush.bf16.msrb.mxu1 %v2883_v60  ;;  %v1786_v0 = vadd.f32 %v1785_v63, %v1773_v43  ;;  %v1798_v3 = vpop.f32.mrf.mxu1 }
 0x102   :  { %2017 = vmatpush.bf16.msrb.mxu2 %v2947_v61 }
 0x103   :  { %2030 = vmatpush.bf16.msrb.mxu3 %v3011_v62  ;;  %1992 = vmatmul.bf16.vlgmr.msrb.gmra.mxu0 %v4205_v23  ;;  %v1799_v5 = vadd.f32 %v1798_v3, %v1786_v0  ;;  %v281_v23 = vperm.slane %v4488_v2, 1 }
 0x104   :  { %2005 = vmatmul.bf16.vlgmr.msrb.gmra.mxu1 %v4218_v31 }
 0x105   :  { %2018 = vmatmul.bf16.vlgmr.msrb.gmra.mxu2 %v4216_v28 }
 0x106   :  { %2031 = vmatmul.bf16.vlgmr.msrb.gmra.mxu3 %v4226_v35 }
 0x108   :  { %v1811_v48 = vpop.f32.mrf.mxu2  ;;  %v1787_v9 = vpop.f32.mrf.mxu0 }
 0x109   :  { %v1812_v7 = vadd.f32 %v1811_v48, %v1799_v5  ;;  %v1824_v8 = vpop.f32.mrf.mxu3  ;;  %v1800_v10 = vpop.f32.mrf.mxu1 }
 0x10b   :  { %v1825_v11 = vadd.f32 %v1824_v8, %v1812_v7 }
 0x10d   :  { %v2036_v44 = vmax.f32 %v1825_v11, 0.0 }
 0x110   :  { %v1813_v12 = vpop.f32.mrf.mxu2 }
 0x111   :  { %v1826_v13 = vpop.f32.mrf.mxu3 }
 0x120   :  { %v1837_v14 = vpop.f32.mrf.mxu0 }
 0x121   :  { %v1838_v31 = vadd.f32 %v1837_v14, %v281_v23  ;;  %v1850_v15 = vpop.f32.mrf.mxu1 }
 0x123   :  { %v1851_v28 = vadd.f32 %v1850_v15, %v1838_v31 }
 0x128   :  { %v1863_v16 = vpop.f32.mrf.mxu2  ;;  %v1839_v18 = vpop.f32.mrf.mxu0 }
 0x129   :  { %v1864_v35 = vadd.f32 %v1863_v16, %v1851_v28  ;;  %v1876_v1 = vpop.f32.mrf.mxu3  ;;  %v1852_v19 = vpop.f32.mrf.mxu1 }
 0x12b   :  { %v1877_v17 = vadd.f32 %v1876_v1, %v1864_v35 }
 0x130   :  { %v1865_v22 = vpop.f32.mrf.mxu2 }
 0x131   :  { %v1878_v24 = vpop.f32.mrf.mxu3 }
 0x140   :  { %v1889_v26 = vpop.f32.mrf.mxu0 }
 0x141   :  { %v1902_v27 = vpop.f32.mrf.mxu1  ;;  %v1890_v45 = vadd.f32 %v1889_v26, %v1877_v17 }
 0x143   :  { %v1903_v50 = vadd.f32 %v1902_v27, %v1890_v45 }
 0x148   :  { %v1915_v32 = vpop.f32.mrf.mxu2  ;;  %v1891_v36 = vpop.f32.mrf.mxu0 }
 0x149   :  { %v1928_v34 = vpop.f32.mrf.mxu3  ;;  %v1904_v37 = vpop.f32.mrf.mxu1  ;;  %v1916_v52 = vadd.f32 %v1915_v32, %v1903_v50 }
 0x14b   :  { %v1929_v54 = vadd.f32 %v1928_v34, %v1916_v52 }
 0x150   :  { %v1917_v39 = vpop.f32.mrf.mxu2 }
 0x151   :  { %v1930_v2 = vpop.f32.mrf.mxu3 }
 0x160   :  { %v1941_v40 = vpop.f32.mrf.mxu0 }
 0x161   :  { %v1954_v43 = vpop.f32.mrf.mxu1  ;;  %v1942_v25 = vadd.f32 %v1941_v40, %v1929_v54 }
 0x163   :  { %v1955_v55 = vadd.f32 %v1954_v43, %v1942_v25 }
 0x168   :  { %v1967_v46 = vpop.f32.mrf.mxu2  ;;  %v1943_v49 = vpop.f32.mrf.mxu0 }
 0x169   :  { %v1980_v47 = vpop.f32.mrf.mxu3  ;;  %v1956_v51 = vpop.f32.mrf.mxu1  ;;  %v1968_v6 = vadd.f32 %v1967_v46, %v1955_v55 }
 0x16b   :  { %v1981_v38 = vadd.f32 %v1980_v47, %v1968_v6 }
 0x170   :  { %v1969_v53 = vpop.f32.mrf.mxu2 }
 0x171   :  { %v1982_v4 = vpop.f32.mrf.mxu3 }
 0x180   :  { %v1993_v20 = vpop.f32.mrf.mxu0 }
 0x181   :  { %v2006_v29 = vpop.f32.mrf.mxu1  ;;  %v1994_v30 = vadd.f32 %v1993_v20, %v1981_v38 }
 0x183   :  { %v2007_v21 = vadd.f32 %v2006_v29, %v1994_v30 }
 0x188   :  { %v2019_v33 = vpop.f32.mrf.mxu2  ;;  %v1995_v58 = vpop.f32.mrf.mxu0 }
 0x189   :  { %v2020_v56 = vadd.f32 %v2019_v33, %v2007_v21  ;;  %v2032_v57 = vpop.f32.mrf.mxu3  ;;  %v2008_v41 = vpop.f32.mrf.mxu1 }
 0x18b   :  { %v2033_v42 = vadd.f32 %v2032_v57, %v2020_v56 }
 0x18d   :  { %v2037_v59 = vmax.f32 %v2033_v42, 0.0 }
 0x18f   :  { %v2038_v60 = vpack.c.bf16 %v2037_v59, %v2036_v44 }
 0x190   :  { %v2021_v61 = vpop.f32.mrf.mxu2 }
 0x191   :  { %2039 = vst [vmem:[%s4987_s3] sm:$0xff] %v2038_v60  ;;  %v2034_v62 = vpop.f32.mrf.mxu3 }

// kernel: encoder_forward.9
= control target key start
LH: loop header
LB: loop body
LE: loop exit
PB: predicated region body
PF: predicated region fallthrough
CT: control target
= control target key end

     0   :  { %s1222_s1 = inlined_call_operand.vmem [shape: bf16[1024,128], index: 1, kind: input, shape index: {}]   ;;  %s1223_s2 = inlined_call_operand.vmem [shape: f32[1,128], index: 2, kind: input, shape index: {}]   ;;  %s1224_s0 = inlined_call_operand.vmem [shape: bf16[8,1024], index: 0, kind: input, shape index: {}]   ;;  %s1225_s3 = inlined_call_operand.vmem [shape: f32[8,128], index: 3, kind: output, shape index: {}]  }
   0x1   :  { %v934_v0 = vld [vmem:[%s1222_s1 + $0x38] sm:$0xff]  ;;  %v933_v4 = vld [vmem:[%s1222_s1 + $0x30] sm:$0xff]  ;;  %v932_v8 = vld [vmem:[%s1222_s1 + $0x28] sm:$0xff] }
   0x2   :  { %v942_v1 = vld [vmem:[%s1222_s1 + $0x78] sm:$0xff]  ;;  %562 = vmatpush.bf16.msra.mxu0 %v934_v0  ;;  %v941_v5 = vld [vmem:[%s1222_s1 + $0x70] sm:$0xff]  ;;  %v940_v9 = vld [vmem:[%s1222_s1 + $0x68] sm:$0xff] }
   0x3   :  { %v950_v2 = vld [vmem:[%s1222_s1 + $0xb8] sm:$0xff]  ;;  %575 = vmatpush.bf16.msra.mxu1 %v942_v1  ;;  %v949_v6 = vld [vmem:[%s1222_s1 + $0xb0] sm:$0xff]  ;;  %v948_v10 = vld [vmem:[%s1222_s1 + $0xa8] sm:$0xff] }
   0x4   :  { %v958_v3 = vld [vmem:[%s1222_s1 + $0xf8] sm:$0xff]  ;;  %588 = vmatpush.bf16.msra.mxu2 %v950_v2  ;;  %v957_v7 = vld [vmem:[%s1222_s1 + $0xf0] sm:$0xff]  ;;  %v956_v11 = vld [vmem:[%s1222_s1 + $0xe8] sm:$0xff] }
   0x5   :  { %601 = vmatpush.bf16.msra.mxu3 %v958_v3  ;;  %v931_v12 = vld [vmem:[%s1222_s1 + $0x20] sm:$0xff]  ;;  %v930_v16 = vld [vmem:[%s1222_s1 + $0x18] sm:$0xff]  ;;  %v929_v20 = vld [vmem:[%s1222_s1 + $0x10] sm:$0xff] }
   0x6   :  { %563 = vmatpush.bf16.msra.mxu0 %v933_v4  ;;  %v939_v13 = vld [vmem:[%s1222_s1 + $0x60] sm:$0xff]  ;;  %v938_v17 = vld [vmem:[%s1222_s1 + $0x58] sm:$0xff]  ;;  %v937_v21 = vld [vmem:[%s1222_s1 + $0x50] sm:$0xff] }
   0x7   :  { %576 = vmatpush.bf16.msra.mxu1 %v941_v5  ;;  %v947_v14 = vld [vmem:[%s1222_s1 + $0xa0] sm:$0xff]  ;;  %v946_v18 = vld [vmem:[%s1222_s1 + $0x98] sm:$0xff]  ;;  %v945_v22 = vld [vmem:[%s1222_s1 + $0x90] sm:$0xff] }
   0x8   :  { %589 = vmatpush.bf16.msra.mxu2 %v949_v6  ;;  %v955_v15 = vld [vmem:[%s1222_s1 + $0xe0] sm:$0xff]  ;;  %v954_v19 = vld [vmem:[%s1222_s1 + $0xd8] sm:$0xff]  ;;  %v953_v23 = vld [vmem:[%s1222_s1 + $0xd0] sm:$0xff] }
   0x9   :  { %602 = vmatpush.bf16.msra.mxu3 %v957_v7  ;;  %v928_v24 = vld [vmem:[%s1222_s1 + $0x8] sm:$0xff]  ;;  %v14_v29 = vld [vmem:[%s1224_s0] sm:$0xff]  ;;  %v966_v38 = vld [vmem:[%s1222_s1 + $0x138] sm:$0xff] }
   0xa   :  { %564 = vmatpush.bf16.msra.mxu0 %v932_v8  ;;  %v936_v25 = vld [vmem:[%s1222_s1 + $0x48] sm:$0xff]  ;;  %v927_v30 = vld [vmem:[%s1222_s1] sm:$0xff]  ;;  %v154_v36 = vunpack.c.l.b16 %v14_v29  ;;  %v155_v37 = vunpack.c.h.b16 %v14_v29  ;;  %v974_v39 = vld [vmem:[%s1222_s1 + $0x178] sm:$0xff] }
   0xb   :  { %577 = vmatpush.bf16.msra.mxu1 %v940_v9  ;;  %v944_v26 = vld [vmem:[%s1222_s1 + $0x88] sm:$0xff]  ;;  %v935_v31 = vld [vmem:[%s1222_s1 + $0x40] sm:$0xff]  ;;  %v982_v40 = vld [vmem:[%s1222_s1 + $0x1b8] sm:$0xff] }
   0xc   :  { %590 = vmatpush.bf16.msra.mxu2 %v948_v10  ;;  %v952_v27 = vld [vmem:[%s1222_s1 + $0xc8] sm:$0xff]  ;;  %v943_v34 = vld [vmem:[%s1222_s1 + $0x80] sm:$0xff]  ;;  %v990_v41 = vld [vmem:[%s1222_s1 + $0x1f8] sm:$0xff]  ;;  %v162_v44 = vpack.c.b16 %v154_v36, %v154_v36  ;;  %v163_v45 = vpack.c.b16 %v155_v37, %v155_v37 }
   0xd   :  { %603 = vmatpush.bf16.msra.mxu3 %v956_v11  ;;  %v15_v28 = vld [vmem:[%s1224_s0 + $0x8] sm:$0xff]  ;;  %v951_v35 = vld [vmem:[%s1222_s1 + $0xc0] sm:$0xff]  ;;  %v965_v46 = vld [vmem:[%s1222_s1 + $0x130] sm:$0xff] }
   0xe   :  { %565 = vmatpush.bf16.msra.mxu0 %v931_v12  ;;  %v156_v32 = vunpack.c.l.b16 %v15_v28  ;;  %v157_v33 = vunpack.c.h.b16 %v15_v28  ;;  %v973_v47 = vld [vmem:[%s1222_s1 + $0x170] sm:$0xff]  ;;  %v964_v50 = vld [vmem:[%s1222_s1 + $0x128] sm:$0xff]  ;;  %v963_v54 = vld [vmem:[%s1222_s1 + $0x120] sm:$0xff] }
   0xf   :  { %578 = vmatpush.bf16.msra.mxu1 %v939_v13  ;;  %v981_v48 = vld [vmem:[%s1222_s1 + $0x1b0] sm:$0xff]  ;;  %v972_v51 = vld [vmem:[%s1222_s1 + $0x168] sm:$0xff]  ;;  %v971_v55 = vld [vmem:[%s1222_s1 + $0x160] sm:$0xff] }
  0x10   :  { %591 = vmatpush.bf16.msra.mxu2 %v947_v14  ;;  %v164_v42 = vpack.c.b16 %v156_v32, %v156_v32  ;;  %v165_v43 = vpack.c.b16 %v157_v33, %v157_v33  ;;  %v989_v49 = vld [vmem:[%s1222_s1 + $0x1f0] sm:$0xff]  ;;  %v980_v52 = vld [vmem:[%s1222_s1 + $0x1a8] sm:$0xff]  ;;  %v979_v56 = vld [vmem:[%s1222_s1 + $0x1a0] sm:$0xff] }
  0x11   :  { %604 = vmatpush.bf16.msra.mxu3 %v955_v15  ;;  %v988_v53 = vld [vmem:[%s1222_s1 + $0x1e8] sm:$0xff]  ;;  %v987_v57 = vld [vmem:[%s1222_s1 + $0x1e0] sm:$0xff]  ;;  %v962_v58 = vld [vmem:[%s1222_s1 + $0x118] sm:$0xff] }
  0x12   :  { %566 = vmatpush.bf16.msra.mxu0 %v930_v16  ;;  %v970_v59 = vld [vmem:[%s1222_s1 + $0x158] sm:$0xff]  ;;  %v961_v62 = vld [vmem:[%s1222_s1 + $0x110] sm:$0xff]  ;;  %v960_v2 = vld [vmem:[%s1222_s1 + $0x108] sm:$0xff] }
  0x13   :  { %579 = vmatpush.bf16.msra.mxu1 %v938_v17  ;;  %v978_v60 = vld [vmem:[%s1222_s1 + $0x198] sm:$0xff]  ;;  %v969_v63 = vld [vmem:[%s1222_s1 + $0x150] sm:$0xff]  ;;  %v968_v3 = vld [vmem:[%s1222_s1 + $0x148] sm:$0xff] }
  0x14   :  { %592 = vmatpush.bf16.msra.mxu2 %v946_v18  ;;  %v986_v61 = vld [vmem:[%s1222_s1 + $0x1d8] sm:$0xff]  ;;  %v977_v0 = vld [vmem:[%s1222_s1 + $0x190] sm:$0xff]  ;;  %v976_v5 = vld [vmem:[%s1222_s1 + $0x188] sm:$0xff] }
  0x15   :  { %605 = vmatpush.bf16.msra.mxu3 %v954_v19  ;;  %v985_v1 = vld [vmem:[%s1222_s1 + $0x1d0] sm:$0xff]  ;;  %v984_v6 = vld [vmem:[%s1222_s1 + $0x1c8] sm:$0xff]  ;;  %v17_v7 = vld [vmem:[%s1224_s0 + $0x18] sm:$0xff] }
  0x16   :  { %567 = vmatpush.bf16.msra.mxu0 %v929_v20  ;;  %v16_v4 = vld [vmem:[%s1224_s0 + $0x10] sm:$0xff]  ;;  %v959_v10 = vld [vmem:[%s1222_s1 + $0x100] sm:$0xff]  ;;  %v160_v12 = vunpack.c.l.b16 %v17_v7  ;;  %v161_v13 = vunpack.c.h.b16 %v17_v7 }
  0x17   :  { %580 = vmatpush.bf16.msra.mxu1 %v937_v21  ;;  %v158_v8 = vunpack.c.l.b16 %v16_v4  ;;  %v159_v9 = vunpack.c.h.b16 %v16_v4  ;;  %v967_v11 = vld [vmem:[%s1222_s1 + $0x140] sm:$0xff] }
  0x18   :  { %593 = vmatpush.bf16.msra.mxu2 %v945_v22  ;;  %v975_v14 = vld [vmem:[%s1222_s1 + $0x180] sm:$0xff]  ;;  %v168_v18 = vpack.c.b16 %v160_v12, %v160_v12  ;;  %v169_v19 = vpack.c.b16 %v161_v13, %v161_v13 }
  0x19   :  { %606 = vmatpush.bf16.msra.mxu3 %v953_v23  ;;  %v983_v15 = vld [vmem:[%s1222_s1 + $0x1c0] sm:$0xff]  ;;  %v166_v16 = vpack.c.b16 %v158_v8, %v158_v8  ;;  %v167_v17 = vpack.c.b16 %v159_v9, %v159_v9 }
  0x1a   :  { %568 = vmatpush.bf16.msra.mxu0 %v928_v24 }
  0x1b   :  { %581 = vmatpush.bf16.msra.mxu1 %v936_v25 }
  0x1c   :  { %594 = vmatpush.bf16.msra.mxu2 %v944_v26  ;;  %v991_v26 = vld [vmem:[%s1223_s2] ss:$0 sm:$0xff] }
  0x1d   :  { %607 = vmatpush.bf16.msra.mxu3 %v952_v27 }
  0x1e   :  { %569 = vmatpush.bf16.msra.mxu0 %v927_v30 }
  0x1f   :  { %582 = vmatpush.bf16.msra.mxu1 %v935_v31 }
  0x20   :  { %595 = vmatpush.bf16.msra.mxu2 %v943_v34 }
  0x21   :  { %608 = vmatpush.bf16.msra.mxu3 %v951_v35  ;;  %570 = vmatmul.bf16.vlgmr.msra.gmra.mxu0 %v162_v44 }
  0x22   :  { %614 = vmatpush.bf16.msrb.mxu0 %v966_v38  ;;  %583 = vmatmul.bf16.vlgmr.msra.gmra.mxu1 %v163_v45 }
  0x23   :  { %627 = vmatpush.bf16.msrb.mxu1 %v974_v39  ;;  %596 = vmatmul.bf16.vlgmr.msra.gmra.mxu2 %v164_v42 }
  0x24   :  { %640 = vmatpush.bf16.msrb.mxu2 %v982_v40  ;;  %609 = vmatmul.bf16.vlgmr.msra.gmra.mxu3 %v165_v43 }
  0x25   :  { %653 = vmatpush.bf16.msrb.mxu3 %v990_v41 }
  0x26   :  { %615 = vmatpush.bf16.msrb.mxu0 %v965_v46 }
  0x27   :  { %628 = vmatpush.bf16.msrb.mxu1 %v973_v47 }
  0x28   :  { %641 = vmatpush.bf16.msrb.mxu2 %v981_v48 }
  0x29   :  { %654 = vmatpush.bf16.msrb.mxu3 %v989_v49 }
  0x2a   :  { %616 = vmatpush.bf16.msrb.mxu0 %v964_v50 }
  0x2b   :  { %629 = vmatpush.bf16.msrb.mxu1 %v972_v51 }
  0x2c   :  { %642 = vmatpush.bf16.msrb.mxu2 %v980_v52 }
  0x2d   :  { %655 = vmatpush.bf16.msrb.mxu3 %v988_v53 }
  0x2e   :  { %617 = vmatpush.bf16.msrb.mxu0 %v963_v54 }
  0x2f   :  { %630 = vmatpush.bf16.msrb.mxu1 %v971_v55 }
  0x30   :  { %643 = vmatpush.bf16.msrb.mxu2 %v979_v56 }
  0x31   :  { %656 = vmatpush.bf16.msrb.mxu3 %v987_v57 }
  0x32   :  { %618 = vmatpush.bf16.msrb.mxu0 %v962_v58 }
  0x33   :  { %631 = vmatpush.bf16.msrb.mxu1 %v970_v59 }
  0x34   :  { %644 = vmatpush.bf16.msrb.mxu2 %v978_v60 }
  0x35   :  { %657 = vmatpush.bf16.msrb.mxu3 %v986_v61 }
  0x36   :  { %619 = vmatpush.bf16.msrb.mxu0 %v961_v62 }
  0x37   :  { %632 = vmatpush.bf16.msrb.mxu1 %v969_v63 }
  0x38   :  { %645 = vmatpush.bf16.msrb.mxu2 %v977_v0 }
  0x39   :  { %658 = vmatpush.bf16.msrb.mxu3 %v985_v1 }
  0x3a   :  { %620 = vmatpush.bf16.msrb.mxu0 %v960_v2 }
  0x3b   :  { %633 = vmatpush.bf16.msrb.mxu1 %v968_v3 }
  0x3c   :  { %646 = vmatpush.bf16.msrb.mxu2 %v976_v5 }
  0x3d   :  { %659 = vmatpush.bf16.msrb.mxu3 %v984_v6 }
  0x3e   :  { %621 = vmatpush.bf16.msrb.mxu0 %v959_v10 }
  0x3f   :  { %634 = vmatpush.bf16.msrb.mxu1 %v967_v11 }
  0x40   :  { %647 = vmatpush.bf16.msrb.mxu2 %v975_v14 }
  0x41   :  { %660 = vmatpush.bf16.msrb.mxu3 %v983_v15  ;;  %622 = vmatmul.bf16.vlgmr.msrb.gmra.mxu0 %v166_v16 }
  0x42   :  { %635 = vmatmul.bf16.vlgmr.msrb.gmra.mxu1 %v167_v17 }
  0x43   :  { %648 = vmatmul.bf16.vlgmr.msrb.gmra.mxu2 %v168_v18 }
  0x44   :  { %661 = vmatmul.bf16.vlgmr.msrb.gmra.mxu3 %v169_v19 }
  0x9e   :  { %v571_v20 = vpop.f32.mrf.mxu0 }
  0x9f   :  { %v584_v21 = vpop.f32.mrf.mxu1  ;;  %v572_v29 = vadd.f32 %v991_v26, %v571_v20 }
  0xa1   :  { %v585_v30 = vadd.f32 %v584_v21, %v572_v29 }
  0xa6   :  { %v597_v22 = vpop.f32.mrf.mxu2  ;;  %v573_v24 = vpop.f32.mrf.mxu0 }
  0xa7   :  { %v610_v23 = vpop.f32.mrf.mxu3  ;;  %v586_v25 = vpop.f32.mrf.mxu1  ;;  %v598_v31 = vadd.f32 %v597_v22, %v585_v30 }
  0xa9   :  { %v611_v32 = vadd.f32 %v610_v23, %v598_v31 }
  0xae   :  { %v599_v27 = vpop.f32.mrf.mxu2 }
  0xaf   :  { %v612_v28 = vpop.f32.mrf.mxu3 }
  0xbe   :  { %v623_v33 = vpop.f32.mrf.mxu0 }
  0xbf   :  { %v636_v34 = vpop.f32.mrf.mxu1  ;;  %v624_v35 = vadd.f32 %v623_v33, %v611_v32 }
  0xc1   :  { %v637_v36 = vadd.f32 %v636_v34, %v624_v35 }
  0xc6   :  { %v649_v37 = vpop.f32.mrf.mxu2  ;;  %v625_v40 = vpop.f32.mrf.mxu0 }
  0xc7   :  { %v662_v38 = vpop.f32.mrf.mxu3  ;;  %v650_v39 = vadd.f32 %v649_v37, %v637_v36  ;;  %v638_v41 = vpop.f32.mrf.mxu1 }
  0xc9   :  { %v663_v42 = vadd.f32 %v662_v38, %v650_v39 }
  0xcb   :  { %666 = vst [vmem:[%s1225_s3] sm:$0xff] %v663_v42 }
  0xce   :  { %v651_v43 = vpop.f32.mrf.mxu2 }
  0xcf   :  { %v664_v44 = vpop.f32.mrf.mxu3 }

</bundles_post_ra>
